<compile_context>
chip_gen: v6e
topology: v6e:2x2x1
jax: 0.10.0
libtpu: 0.0.40
codegen_flags: <defaults>
</compile_context>

<pallas_src>
import math
import functools
import numpy as np

import jax
import jax.numpy as jnp
from jax.experimental import pallas as pl
from jax.experimental.pallas import tpu as pltpu

NLV_DENS = 6
CHANNEL = 4
MAX_PAD_BEG = (NLV_DENS - 1) // 2              # 2  (for kernel size 6)
MAX_PAD_END = (NLV_DENS - 1) - MAX_PAD_BEG     # 3
LANE = 128


def _gauss1d(kernel_size, sigma):
    """1-D Gaussian taps; outer(g, g) == MATLAB fspecial('gaussian', k, sigma)."""
    ax = np.arange(kernel_size, dtype=np.float64) - (kernel_size - 1) / 2.0
    g = np.exp(-(ax ** 2) / (2.0 * sigma ** 2))
    g /= g.sum()
    return g


def fspecial_gaussian(kernel_size, sigma):
    g = _gauss1d(kernel_size, sigma)
    return np.outer(g, g).astype(np.float32)


def _ldeb_kernel(x_ref, o_ref, *, H, Ww, taps_h, taps_v, coeffs):
    """x_ref: (NB, Hp, Wp) channel-summed, zero-padded input block.
       o_ref: (NB, H, Ww) lane-dense Densemap block (cropped to W outside)."""
    x = x_ref[...]  # (NB, Hp, Wp) f32

    num = None
    for i in range(len(taps_h)):
        k = i + 1
        pad_beg = (k - 1) // 2
        off = MAX_PAD_BEG - pad_beg          # receptive-field offset in padded buffer
        gh = taps_h[i]                       # 1-D horizontal taps
        gv = taps_v[i]                       # 1-D vertical taps (k^2 scale folded in)

        # 1-D horizontal (lane-axis) pass over all padded rows.
        h = gh[0] * x[:, :, off:off + Ww]
        for dx in range(1, k):
            h = h + gh[dx] * x[:, :, off + dx: off + dx + Ww]

        # 1-D vertical (sublane-axis) pass.
        c = gv[0] * h[:, off:off + H, :]
        for dy in range(1, k):
            c = c + gv[dy] * h[:, off + dy: off + dy + H, :]

        # ReLU, log2(.+1) (EUP), then accumulate the correlation directly with
        # the pre-folded coefficient (x_i - mean_x) / denom.
        y = jnp.log2(jnp.maximum(c, 0.0) + 1.0)
        contrib = coeffs[i] * y
        num = contrib if num is None else num + contrib

    o_ref[...] = num


def ldeb_forward(x, nlv_dens=NLV_DENS):
    """x: (N, C, H, W) -> (N, 1, H, W) float32 Densemap."""
    N, C, H, W = x.shape

    # Frozen per-size separable Gaussian taps (as in the module's __init__).
    taps_h, taps_v = [], []
    for i in range(nlv_dens):
        k = i + 1
        g = _gauss1d(k, k / 2.0)
        taps_h.append([float(v) for v in g])
        taps_v.append([float(v) * float(k * k) for v in g])  # fold (i+1)^2 scale

    # Correlation coefficients folded to one scalar per kernel size.
    x_vals = [math.log(i + 1, 2) for i in range(nlv_dens)]
    mean_x = sum(x_vals) / float(nlv_dens)
    denom = sum((v - mean_x) ** 2 for v in x_vals)
    coeffs = [float((v - mean_x) / denom) for v in x_vals]

    # Weight is repeated across input channels -> channel sum is exact.
    if C == 1:
        xs = x[:, 0].astype(jnp.float32)
    else:
        xs = jnp.sum(x.astype(jnp.float32), axis=1)          # (N, H, W)

    # Lane-dense working width + SAME halo (max over kernel sizes 1..6).
    Ww = -(-W // LANE) * LANE
    Hp = H + MAX_PAD_BEG + MAX_PAD_END
    Wp = Ww + MAX_PAD_BEG + MAX_PAD_END

    # Batch NB images per grid step, sized against a v7x-safe VMEM budget:
    # ~2x double-buffered in/out blocks + a few live intermediate planes.
    def _vmem_est(nb):
        return 4 * nb * (2 * Hp * Wp + 2 * H * Ww + 4 * Hp * Ww)

    budget = 48 * 1024 * 1024
    NB = max(1, min(N, 8))
    while NB > 1 and _vmem_est(NB) > budget:
        NB -= 1
    Np = -(-N // NB) * NB

    # Pad: batch to a multiple of NB (extra images are zeros -> harmless, cropped),
    # rows by (2, 3), cols by (2, Wp - W - 2) so every SAME halo reads zeros.
    xp = jnp.pad(xs, ((0, Np - N),
                      (MAX_PAD_BEG, MAX_PAD_END),
                      (MAX_PAD_BEG, Wp - W - MAX_PAD_BEG)))

    kernel = functools.partial(_ldeb_kernel, H=H, Ww=Ww,
                               taps_h=taps_h, taps_v=taps_v, coeffs=coeffs)

    vmem_limit = min(64 * 1024 * 1024,
                     max(32 * 1024 * 1024, 2 * _vmem_est(NB)))

    out = pl.pallas_call(
        kernel,
        out_shape=jax.ShapeDtypeStruct((Np, H, Ww), jnp.float32),
        grid=(Np // NB,),
        in_specs=[pl.BlockSpec((NB, Hp, Wp), lambda n: (n, 0, 0))],
        out_specs=pl.BlockSpec((NB, H, Ww), lambda n: (n, 0, 0)),
        compiler_params=pltpu.CompilerParams(
            dimension_semantics=("parallel",),
            vmem_limit_bytes=int(vmem_limit)),
    )(xp)

    # Crop padded batch / lane-padding, restore NCHW channel dim.
    return out[:N, :, :W][:, None, :, :]


def ldeb_reference(x, nlv_dens=NLV_DENS):
    """Pure-JAX reference matching the PyTorch forward."""
    N, C, H, W = x.shape
    outs = []
    for i in range(nlv_dens):
        k = i + 1
        w = jnp.asarray(fspecial_gaussian(k, k / 2.0))
        w4 = jnp.tile(w[None, None], (1, C, 1, 1))  # (1, C, k, k)
        pb = (k - 1) // 2
        pe = (k - 1) - pb
        y = jax.lax.conv_general_dilated(
            x.astype(jnp.float32), w4, window_strides=(1, 1),
            padding=((pb, pe), (pb, pe)),
            dimension_numbers=("NCHW", "OIHW", "NCHW"))
        outs.append(y * float(k * k))
    out = jnp.concatenate(outs, axis=1)
    out = jnp.log2(jnp.maximum(out, 0.0) + 1.0)
    X = jnp.asarray([math.log(i + 1, 2) for i in range(nlv_dens)],
                    jnp.float32).reshape(1, nlv_dens, 1, 1)
    meanX = jnp.mean(X, axis=1, keepdims=True)
    meanY = jnp.mean(out, axis=1, keepdims=True)
    num = jnp.sum((out - meanY) * (X - meanX), axis=1, keepdims=True)
    den = jnp.sum((X - meanX) ** 2, axis=1, keepdims=True)
    return num / den


if __name__ == "__main__":
    key = jax.random.PRNGKey(0)
    x = jax.random.uniform(key, (2, CHANNEL, 16, 16), dtype=jnp.float32)

    out = ldeb_forward(x)
    jax.block_until_ready(out)

    ref = ldeb_reference(x)
    assert out.shape == (2, 1, 16, 16), out.shape
    assert bool(jnp.allclose(out, ref, atol=1e-4, rtol=1e-4)), "mismatch vs reference"

    print("KERNEL_OK")
</pallas_src>

<mosaic_0001>
module attributes {stable_mosaic.version = 11 : i64} {
  func.func @_ldeb_kernel(%arg0: i32, %arg1: memref<2x21x133xf32, #tpu.memory_space<vmem>>, %arg2: memref<2x16x128xf32, #tpu.memory_space<vmem>>) attributes {dimension_semantics = [#tpu.dimension_semantics<parallel>], iteration_bounds = array<i64: 1>, scalar_prefetch = 0 : i64, scratch_operands = 0 : i64, tpu.core_type = #tpu.core_type<tc>, window_params = [{transform_indices = @transform_0, window_bounds = array<i64: 2, 21, 133>}, {transform_indices = @transform_1, window_bounds = array<i64: 2, 16, 128>}]} {
    %c0 = arith.constant 0 : index
    %c0_0 = arith.constant 0 : index
    %c0_1 = arith.constant 0 : index
    %0 = vector.load %arg1[%c0, %c0_0, %c0_1] : memref<2x21x133xf32, #tpu.memory_space<vmem>>, vector<2x21x133xf32>
    %1 = vector.extract_strided_slice %0 {offsets = [0, 0, 2], sizes = [2, 21, 128], strides = [1, 1, 1]} : vector<2x21x133xf32> to vector<2x21x128xf32>
    %cst = arith.constant 1.000000e+00 : f32
    %2 = vector.broadcast %cst : f32 to vector<2x21x128xf32>
    %3 = arith.mulf %2, %1 : vector<2x21x128xf32>
    %4 = vector.extract_strided_slice %3 {offsets = [0, 2, 0], sizes = [2, 16, 128], strides = [1, 1, 1]} : vector<2x21x128xf32> to vector<2x16x128xf32>
    %cst_2 = arith.constant 1.000000e+00 : f32
    %5 = vector.broadcast %cst_2 : f32 to vector<2x16x128xf32>
    %6 = arith.mulf %5, %4 : vector<2x16x128xf32>
    %cst_3 = arith.constant 0.000000e+00 : f32
    %7 = vector.broadcast %cst_3 : f32 to vector<2x16x128xf32>
    %8 = arith.maximumf %6, %7 : vector<2x16x128xf32>
    %cst_4 = arith.constant 1.000000e+00 : f32
    %9 = vector.broadcast %cst_4 : f32 to vector<2x16x128xf32>
    %10 = arith.addf %8, %9 : vector<2x16x128xf32>
    %11 = math.log %10 : vector<2x16x128xf32>
    %cst_5 = arith.constant 2.000000e+00 : f32
    %12 = math.log %cst_5 : f32
    %13 = vector.broadcast %12 : f32 to vector<2x16x128xf32>
    %14 = arith.divf %11, %13 : vector<2x16x128xf32>
    %cst_6 = arith.constant -3.461950e-01 : f32
    %15 = vector.broadcast %cst_6 : f32 to vector<2x16x128xf32>
    %16 = arith.mulf %15, %14 : vector<2x16x128xf32>
    %17 = vector.extract_strided_slice %0 {offsets = [0, 0, 2], sizes = [2, 21, 128], strides = [1, 1, 1]} : vector<2x21x133xf32> to vector<2x21x128xf32>
    %cst_7 = arith.constant 5.000000e-01 : f32
    %18 = vector.broadcast %cst_7 : f32 to vector<2x21x128xf32>
    %19 = arith.mulf %18, %17 : vector<2x21x128xf32>
    %20 = vector.extract_strided_slice %0 {offsets = [0, 0, 3], sizes = [2, 21, 128], strides = [1, 1, 1]} : vector<2x21x133xf32> to vector<2x21x128xf32>
    %cst_8 = arith.constant 5.000000e-01 : f32
    %21 = vector.broadcast %cst_8 : f32 to vector<2x21x128xf32>
    %22 = arith.mulf %21, %20 : vector<2x21x128xf32>
    %23 = arith.addf %19, %22 : vector<2x21x128xf32>
    %24 = vector.extract_strided_slice %23 {offsets = [0, 2, 0], sizes = [2, 16, 128], strides = [1, 1, 1]} : vector<2x21x128xf32> to vector<2x16x128xf32>
    %cst_9 = arith.constant 2.000000e+00 : f32
    %25 = vector.broadcast %cst_9 : f32 to vector<2x16x128xf32>
    %26 = arith.mulf %25, %24 : vector<2x16x128xf32>
    %27 = vector.extract_strided_slice %23 {offsets = [0, 3, 0], sizes = [2, 16, 128], strides = [1, 1, 1]} : vector<2x21x128xf32> to vector<2x16x128xf32>
    %cst_10 = arith.constant 2.000000e+00 : f32
    %28 = vector.broadcast %cst_10 : f32 to vector<2x16x128xf32>
    %29 = arith.mulf %28, %27 : vector<2x16x128xf32>
    %30 = arith.addf %26, %29 : vector<2x16x128xf32>
    %cst_11 = arith.constant 0.000000e+00 : f32
    %31 = vector.broadcast %cst_11 : f32 to vector<2x16x128xf32>
    %32 = arith.maximumf %30, %31 : vector<2x16x128xf32>
    %cst_12 = arith.constant 1.000000e+00 : f32
    %33 = vector.broadcast %cst_12 : f32 to vector<2x16x128xf32>
    %34 = arith.addf %32, %33 : vector<2x16x128xf32>
    %35 = math.log %34 : vector<2x16x128xf32>
    %cst_13 = arith.constant 2.000000e+00 : f32
    %36 = math.log %cst_13 : f32
    %37 = vector.broadcast %36 : f32 to vector<2x16x128xf32>
    %38 = arith.divf %35, %37 : vector<2x16x128xf32>
    %cst_14 = arith.constant -0.127357855 : f32
    %39 = vector.broadcast %cst_14 : f32 to vector<2x16x128xf32>
    %40 = arith.mulf %39, %38 : vector<2x16x128xf32>
    %41 = arith.addf %16, %40 : vector<2x16x128xf32>
    %42 = vector.extract_strided_slice %0 {offsets = [0, 0, 1], sizes = [2, 21, 128], strides = [1, 1, 1]} : vector<2x21x133xf32> to vector<2x21x128xf32>
    %cst_15 = arith.constant 0.307801336 : f32
    %43 = vector.broadcast %cst_15 : f32 to vector<2x21x128xf32>
    %44 = arith.mulf %43, %42 : vector<2x21x128xf32>
    %45 = vector.extract_strided_slice %0 {offsets = [0, 0, 2], sizes = [2, 21, 128], strides = [1, 1, 1]} : vector<2x21x133xf32> to vector<2x21x128xf32>
    %cst_16 = arith.constant 0.384397328 : f32
    %46 = vector.broadcast %cst_16 : f32 to vector<2x21x128xf32>
    %47 = arith.mulf %46, %45 : vector<2x21x128xf32>
    %48 = arith.addf %44, %47 : vector<2x21x128xf32>
    %49 = vector.extract_strided_slice %0 {offsets = [0, 0, 3], sizes = [2, 21, 128], strides = [1, 1, 1]} : vector<2x21x133xf32> to vector<2x21x128xf32>
    %cst_17 = arith.constant 0.307801336 : f32
    %50 = vector.broadcast %cst_17 : f32 to vector<2x21x128xf32>
    %51 = arith.mulf %50, %49 : vector<2x21x128xf32>
    %52 = arith.addf %48, %51 : vector<2x21x128xf32>
    %53 = vector.extract_strided_slice %52 {offsets = [0, 1, 0], sizes = [2, 16, 128], strides = [1, 1, 1]} : vector<2x21x128xf32> to vector<2x16x128xf32>
    %cst_18 = arith.constant 2.77021194 : f32
    %54 = vector.broadcast %cst_18 : f32 to vector<2x16x128xf32>
    %55 = arith.mulf %54, %53 : vector<2x16x128xf32>
    %56 = vector.extract_strided_slice %52 {offsets = [0, 2, 0], sizes = [2, 16, 128], strides = [1, 1, 1]} : vector<2x21x128xf32> to vector<2x16x128xf32>
    %cst_19 = arith.constant 3.45957613 : f32
    %57 = vector.broadcast %cst_19 : f32 to vector<2x16x128xf32>
    %58 = arith.mulf %57, %56 : vector<2x16x128xf32>
    %59 = arith.addf %55, %58 : vector<2x16x128xf32>
    %60 = vector.extract_strided_slice %52 {offsets = [0, 3, 0], sizes = [2, 16, 128], strides = [1, 1, 1]} : vector<2x21x128xf32> to vector<2x16x128xf32>
    %cst_20 = arith.constant 2.77021194 : f32
    %61 = vector.broadcast %cst_20 : f32 to vector<2x16x128xf32>
    %62 = arith.mulf %61, %60 : vector<2x16x128xf32>
    %63 = arith.addf %59, %62 : vector<2x16x128xf32>
    %cst_21 = arith.constant 0.000000e+00 : f32
    %64 = vector.broadcast %cst_21 : f32 to vector<2x16x128xf32>
    %65 = arith.maximumf %63, %64 : vector<2x16x128xf32>
    %cst_22 = arith.constant 1.000000e+00 : f32
    %66 = vector.broadcast %cst_22 : f32 to vector<2x16x128xf32>
    %67 = arith.addf %65, %66 : vector<2x16x128xf32>
    %68 = math.log %67 : vector<2x16x128xf32>
    %cst_23 = arith.constant 2.000000e+00 : f32
    %69 = math.log %cst_23 : f32
    %70 = vector.broadcast %69 : f32 to vector<2x16x128xf32>
    %71 = arith.divf %68, %70 : vector<2x16x128xf32>
    %cst_24 = arith.constant 6.53663184E-4 : f32
    %72 = vector.broadcast %cst_24 : f32 to vector<2x16x128xf32>
    %73 = arith.mulf %72, %71 : vector<2x16x128xf32>
    %74 = arith.addf %41, %73 : vector<2x16x128xf32>
    %75 = vector.extract_strided_slice %0 {offsets = [0, 0, 1], sizes = [2, 21, 128], strides = [1, 1, 1]} : vector<2x21x133xf32> to vector<2x21x128xf32>
    %cst_25 = arith.constant 0.218911752 : f32
    %76 = vector.broadcast %cst_25 : f32 to vector<2x21x128xf32>
    %77 = arith.mulf %76, %75 : vector<2x21x128xf32>
    %78 = vector.extract_strided_slice %0 {offsets = [0, 0, 2], sizes = [2, 21, 128], strides = [1, 1, 1]} : vector<2x21x133xf32> to vector<2x21x128xf32>
    %cst_26 = arith.constant 0.281088263 : f32
    %79 = vector.broadcast %cst_26 : f32 to vector<2x21x128xf32>
    %80 = arith.mulf %79, %78 : vector<2x21x128xf32>
    %81 = arith.addf %77, %80 : vector<2x21x128xf32>
    %82 = vector.extract_strided_slice %0 {offsets = [0, 0, 3], sizes = [2, 21, 128], strides = [1, 1, 1]} : vector<2x21x133xf32> to vector<2x21x128xf32>
    %cst_27 = arith.constant 0.281088263 : f32
    %83 = vector.broadcast %cst_27 : f32 to vector<2x21x128xf32>
    %84 = arith.mulf %83, %82 : vector<2x21x128xf32>
    %85 = arith.addf %81, %84 : vector<2x21x128xf32>
    %86 = vector.extract_strided_slice %0 {offsets = [0, 0, 4], sizes = [2, 21, 128], strides = [1, 1, 1]} : vector<2x21x133xf32> to vector<2x21x128xf32>
    %cst_28 = arith.constant 0.218911752 : f32
    %87 = vector.broadcast %cst_28 : f32 to vector<2x21x128xf32>
    %88 = arith.mulf %87, %86 : vector<2x21x128xf32>
    %89 = arith.addf %85, %88 : vector<2x21x128xf32>
    %90 = vector.extract_strided_slice %89 {offsets = [0, 1, 0], sizes = [2, 16, 128], strides = [1, 1, 1]} : vector<2x21x128xf32> to vector<2x16x128xf32>
    %cst_29 = arith.constant 3.50258803 : f32
    %91 = vector.broadcast %cst_29 : f32 to vector<2x16x128xf32>
    %92 = arith.mulf %91, %90 : vector<2x16x128xf32>
    %93 = vector.extract_strided_slice %89 {offsets = [0, 2, 0], sizes = [2, 16, 128], strides = [1, 1, 1]} : vector<2x21x128xf32> to vector<2x16x128xf32>
    %cst_30 = arith.constant 4.4974122 : f32
    %94 = vector.broadcast %cst_30 : f32 to vector<2x16x128xf32>
    %95 = arith.mulf %94, %93 : vector<2x16x128xf32>
    %96 = arith.addf %92, %95 : vector<2x16x128xf32>
    %97 = vector.extract_strided_slice %89 {offsets = [0, 3, 0], sizes = [2, 16, 128], strides = [1, 1, 1]} : vector<2x21x128xf32> to vector<2x16x128xf32>
    %cst_31 = arith.constant 4.4974122 : f32
    %98 = vector.broadcast %cst_31 : f32 to vector<2x16x128xf32>
    %99 = arith.mulf %98, %97 : vector<2x16x128xf32>
    %100 = arith.addf %96, %99 : vector<2x16x128xf32>
    %101 = vector.extract_strided_slice %89 {offsets = [0, 4, 0], sizes = [2, 16, 128], strides = [1, 1, 1]} : vector<2x21x128xf32> to vector<2x16x128xf32>
    %cst_32 = arith.constant 3.50258803 : f32
    %102 = vector.broadcast %cst_32 : f32 to vector<2x16x128xf32>
    %103 = arith.mulf %102, %101 : vector<2x16x128xf32>
    %104 = arith.addf %100, %103 : vector<2x16x128xf32>
    %cst_33 = arith.constant 0.000000e+00 : f32
    %105 = vector.broadcast %cst_33 : f32 to vector<2x16x128xf32>
    %106 = arith.maximumf %104, %105 : vector<2x16x128xf32>
    %cst_34 = arith.constant 1.000000e+00 : f32
    %107 = vector.broadcast %cst_34 : f32 to vector<2x16x128xf32>
    %108 = arith.addf %106, %107 : vector<2x16x128xf32>
    %109 = math.log %108 : vector<2x16x128xf32>
    %cst_35 = arith.constant 2.000000e+00 : f32
    %110 = math.log %cst_35 : f32
    %111 = vector.broadcast %110 : f32 to vector<2x16x128xf32>
    %112 = arith.divf %109, %111 : vector<2x16x128xf32>
    %cst_36 = arith.constant 0.0914792866 : f32
    %113 = vector.broadcast %cst_36 : f32 to vector<2x16x128xf32>
    %114 = arith.mulf %113, %112 : vector<2x16x128xf32>
    %115 = arith.addf %74, %114 : vector<2x16x128xf32>
    %116 = vector.extract_strided_slice %0 {offsets = [0, 0, 0], sizes = [2, 21, 128], strides = [1, 1, 1]} : vector<2x21x133xf32> to vector<2x21x128xf32>
    %cst_37 = arith.constant 0.168929592 : f32
    %117 = vector.broadcast %cst_37 : f32 to vector<2x21x128xf32>
    %118 = arith.mulf %117, %116 : vector<2x21x128xf32>
    %119 = vector.extract_strided_slice %0 {offsets = [0, 0, 1], sizes = [2, 21, 128], strides = [1, 1, 1]} : vector<2x21x133xf32> to vector<2x21x128xf32>
    %cst_38 = arith.constant 0.214751601 : f32
    %120 = vector.broadcast %cst_38 : f32 to vector<2x21x128xf32>
    %121 = arith.mulf %120, %119 : vector<2x21x128xf32>
    %122 = arith.addf %118, %121 : vector<2x21x128xf32>
    %123 = vector.extract_strided_slice %0 {offsets = [0, 0, 2], sizes = [2, 21, 128], strides = [1, 1, 1]} : vector<2x21x133xf32> to vector<2x21x128xf32>
    %cst_39 = arith.constant 0.232637629 : f32
    %124 = vector.broadcast %cst_39 : f32 to vector<2x21x128xf32>
    %125 = arith.mulf %124, %123 : vector<2x21x128xf32>
    %126 = arith.addf %122, %125 : vector<2x21x128xf32>
    %127 = vector.extract_strided_slice %0 {offsets = [0, 0, 3], sizes = [2, 21, 128], strides = [1, 1, 1]} : vector<2x21x133xf32> to vector<2x21x128xf32>
    %cst_40 = arith.constant 0.214751601 : f32
    %128 = vector.broadcast %cst_40 : f32 to vector<2x21x128xf32>
    %129 = arith.mulf %128, %127 : vector<2x21x128xf32>
    %130 = arith.addf %126, %129 : vector<2x21x128xf32>
    %131 = vector.extract_strided_slice %0 {offsets = [0, 0, 4], sizes = [2, 21, 128], strides = [1, 1, 1]} : vector<2x21x133xf32> to vector<2x21x128xf32>
    %cst_41 = arith.constant 0.168929592 : f32
    %132 = vector.broadcast %cst_41 : f32 to vector<2x21x128xf32>
    %133 = arith.mulf %132, %131 : vector<2x21x128xf32>
    %134 = arith.addf %130, %133 : vector<2x21x128xf32>
    %135 = vector.extract_strided_slice %134 {offsets = [0, 0, 0], sizes = [2, 16, 128], strides = [1, 1, 1]} : vector<2x21x128xf32> to vector<2x16x128xf32>
    %cst_42 = arith.constant 4.223240e+00 : f32
    %136 = vector.broadcast %cst_42 : f32 to vector<2x16x128xf32>
    %137 = arith.mulf %136, %135 : vector<2x16x128xf32>
    %138 = vector.extract_strided_slice %134 {offsets = [0, 1, 0], sizes = [2, 16, 128], strides = [1, 1, 1]} : vector<2x21x128xf32> to vector<2x16x128xf32>
    %cst_43 = arith.constant 5.368790e+00 : f32
    %139 = vector.broadcast %cst_43 : f32 to vector<2x16x128xf32>
    %140 = arith.mulf %139, %138 : vector<2x16x128xf32>
    %141 = arith.addf %137, %140 : vector<2x16x128xf32>
    %142 = vector.extract_strided_slice %134 {offsets = [0, 2, 0], sizes = [2, 16, 128], strides = [1, 1, 1]} : vector<2x21x128xf32> to vector<2x16x128xf32>
    %cst_44 = arith.constant 5.81594085 : f32
    %143 = vector.broadcast %cst_44 : f32 to vector<2x16x128xf32>
    %144 = arith.mulf %143, %142 : vector<2x16x128xf32>
    %145 = arith.addf %141, %144 : vector<2x16x128xf32>
    %146 = vector.extract_strided_slice %134 {offsets = [0, 3, 0], sizes = [2, 16, 128], strides = [1, 1, 1]} : vector<2x21x128xf32> to vector<2x16x128xf32>
    %cst_45 = arith.constant 5.368790e+00 : f32
    %147 = vector.broadcast %cst_45 : f32 to vector<2x16x128xf32>
    %148 = arith.mulf %147, %146 : vector<2x16x128xf32>
    %149 = arith.addf %145, %148 : vector<2x16x128xf32>
    %150 = vector.extract_strided_slice %134 {offsets = [0, 4, 0], sizes = [2, 16, 128], strides = [1, 1, 1]} : vector<2x21x128xf32> to vector<2x16x128xf32>
    %cst_46 = arith.constant 4.223240e+00 : f32
    %151 = vector.broadcast %cst_46 : f32 to vector<2x16x128xf32>
    %152 = arith.mulf %151, %150 : vector<2x16x128xf32>
    %153 = arith.addf %149, %152 : vector<2x16x128xf32>
    %cst_47 = arith.constant 0.000000e+00 : f32
    %154 = vector.broadcast %cst_47 : f32 to vector<2x16x128xf32>
    %155 = arith.maximumf %153, %154 : vector<2x16x128xf32>
    %cst_48 = arith.constant 1.000000e+00 : f32
    %156 = vector.broadcast %cst_48 : f32 to vector<2x16x128xf32>
    %157 = arith.addf %155, %156 : vector<2x16x128xf32>
    %158 = math.log %157 : vector<2x16x128xf32>
    %cst_49 = arith.constant 2.000000e+00 : f32
    %159 = math.log %cst_49 : f32
    %160 = vector.broadcast %159 : f32 to vector<2x16x128xf32>
    %161 = arith.divf %158, %160 : vector<2x16x128xf32>
    %cst_50 = arith.constant 0.161929116 : f32
    %162 = vector.broadcast %cst_50 : f32 to vector<2x16x128xf32>
    %163 = arith.mulf %162, %161 : vector<2x16x128xf32>
    %164 = arith.addf %115, %163 : vector<2x16x128xf32>
    %165 = vector.extract_strided_slice %0 {offsets = [0, 0, 0], sizes = [2, 21, 128], strides = [1, 1, 1]} : vector<2x21x133xf32> to vector<2x21x128xf32>
    %cst_51 = arith.constant 0.137194484 : f32
    %166 = vector.broadcast %cst_51 : f32 to vector<2x21x128xf32>
    %167 = arith.mulf %166, %165 : vector<2x21x128xf32>
    %168 = vector.extract_strided_slice %0 {offsets = [0, 0, 1], sizes = [2, 21, 128], strides = [1, 1, 1]} : vector<2x21x133xf32> to vector<2x21x128xf32>
    %cst_52 = arith.constant 0.171335176 : f32
    %169 = vector.broadcast %cst_52 : f32 to vector<2x21x128xf32>
    %170 = arith.mulf %169, %168 : vector<2x21x128xf32>
    %171 = arith.addf %167, %170 : vector<2x21x128xf32>
    %172 = vector.extract_strided_slice %0 {offsets = [0, 0, 2], sizes = [2, 21, 128], strides = [1, 1, 1]} : vector<2x21x133xf32> to vector<2x21x128xf32>
    %cst_53 = arith.constant 0.191470325 : f32
    %173 = vector.broadcast %cst_53 : f32 to vector<2x21x128xf32>
    %174 = arith.mulf %173, %172 : vector<2x21x128xf32>
    %175 = arith.addf %171, %174 : vector<2x21x128xf32>
    %176 = vector.extract_strided_slice %0 {offsets = [0, 0, 3], sizes = [2, 21, 128], strides = [1, 1, 1]} : vector<2x21x133xf32> to vector<2x21x128xf32>
    %cst_54 = arith.constant 0.191470325 : f32
    %177 = vector.broadcast %cst_54 : f32 to vector<2x21x128xf32>
    %178 = arith.mulf %177, %176 : vector<2x21x128xf32>
    %179 = arith.addf %175, %178 : vector<2x21x128xf32>
    %180 = vector.extract_strided_slice %0 {offsets = [0, 0, 4], sizes = [2, 21, 128], strides = [1, 1, 1]} : vector<2x21x133xf32> to vector<2x21x128xf32>
    %cst_55 = arith.constant 0.171335176 : f32
    %181 = vector.broadcast %cst_55 : f32 to vector<2x21x128xf32>
    %182 = arith.mulf %181, %180 : vector<2x21x128xf32>
    %183 = arith.addf %179, %182 : vector<2x21x128xf32>
    %184 = vector.extract_strided_slice %0 {offsets = [0, 0, 5], sizes = [2, 21, 128], strides = [1, 1, 1]} : vector<2x21x133xf32> to vector<2x21x128xf32>
    %cst_56 = arith.constant 0.137194484 : f32
    %185 = vector.broadcast %cst_56 : f32 to vector<2x21x128xf32>
    %186 = arith.mulf %185, %184 : vector<2x21x128xf32>
    %187 = arith.addf %183, %186 : vector<2x21x128xf32>
    %188 = vector.extract_strided_slice %187 {offsets = [0, 0, 0], sizes = [2, 16, 128], strides = [1, 1, 1]} : vector<2x21x128xf32> to vector<2x16x128xf32>
    %cst_57 = arith.constant 4.93900156 : f32
    %189 = vector.broadcast %cst_57 : f32 to vector<2x16x128xf32>
    %190 = arith.mulf %189, %188 : vector<2x16x128xf32>
    %191 = vector.extract_strided_slice %187 {offsets = [0, 1, 0], sizes = [2, 16, 128], strides = [1, 1, 1]} : vector<2x21x128xf32> to vector<2x16x128xf32>
    %cst_58 = arith.constant 6.1680665 : f32
    %192 = vector.broadcast %cst_58 : f32 to vector<2x16x128xf32>
    %193 = arith.mulf %192, %191 : vector<2x16x128xf32>
    %194 = arith.addf %190, %193 : vector<2x16x128xf32>
    %195 = vector.extract_strided_slice %187 {offsets = [0, 2, 0], sizes = [2, 16, 128], strides = [1, 1, 1]} : vector<2x21x128xf32> to vector<2x16x128xf32>
    %cst_59 = arith.constant 6.89293193 : f32
    %196 = vector.broadcast %cst_59 : f32 to vector<2x16x128xf32>
    %197 = arith.mulf %196, %195 : vector<2x16x128xf32>
    %198 = arith.addf %194, %197 : vector<2x16x128xf32>
    %199 = vector.extract_strided_slice %187 {offsets = [0, 3, 0], sizes = [2, 16, 128], strides = [1, 1, 1]} : vector<2x21x128xf32> to vector<2x16x128xf32>
    %cst_60 = arith.constant 6.89293193 : f32
    %200 = vector.broadcast %cst_60 : f32 to vector<2x16x128xf32>
    %201 = arith.mulf %200, %199 : vector<2x16x128xf32>
    %202 = arith.addf %198, %201 : vector<2x16x128xf32>
    %203 = vector.extract_strided_slice %187 {offsets = [0, 4, 0], sizes = [2, 16, 128], strides = [1, 1, 1]} : vector<2x21x128xf32> to vector<2x16x128xf32>
    %cst_61 = arith.constant 6.1680665 : f32
    %204 = vector.broadcast %cst_61 : f32 to vector<2x16x128xf32>
    %205 = arith.mulf %204, %203 : vector<2x16x128xf32>
    %206 = arith.addf %202, %205 : vector<2x16x128xf32>
    %207 = vector.extract_strided_slice %187 {offsets = [0, 5, 0], sizes = [2, 16, 128], strides = [1, 1, 1]} : vector<2x21x128xf32> to vector<2x16x128xf32>
    %cst_62 = arith.constant 4.93900156 : f32
    %208 = vector.broadcast %cst_62 : f32 to vector<2x16x128xf32>
    %209 = arith.mulf %208, %207 : vector<2x16x128xf32>
    %210 = arith.addf %206, %209 : vector<2x16x128xf32>
    %cst_63 = arith.constant 0.000000e+00 : f32
    %211 = vector.broadcast %cst_63 : f32 to vector<2x16x128xf32>
    %212 = arith.maximumf %210, %211 : vector<2x16x128xf32>
    %cst_64 = arith.constant 1.000000e+00 : f32
    %213 = vector.broadcast %cst_64 : f32 to vector<2x16x128xf32>
    %214 = arith.addf %212, %213 : vector<2x16x128xf32>
    %215 = math.log %214 : vector<2x16x128xf32>
    %cst_65 = arith.constant 2.000000e+00 : f32
    %216 = math.log %cst_65 : f32
    %217 = vector.broadcast %216 : f32 to vector<2x16x128xf32>
    %218 = arith.divf %215, %217 : vector<2x16x128xf32>
    %cst_66 = arith.constant 0.219490811 : f32
    %219 = vector.broadcast %cst_66 : f32 to vector<2x16x128xf32>
    %220 = arith.mulf %219, %218 : vector<2x16x128xf32>
    %221 = arith.addf %164, %220 : vector<2x16x128xf32>
    %c0_67 = arith.constant 0 : index
    %c0_68 = arith.constant 0 : index
    %c0_69 = arith.constant 0 : index
    %222 = vector.load %arg2[%c0_67, %c0_68, %c0_69] : memref<2x16x128xf32, #tpu.memory_space<vmem>>, vector<2x16x128xf32>
    tpu.vector_store %arg2[%c0_67, %c0_68, %c0_69], %221 {strides = array<i32>} : memref<2x16x128xf32, #tpu.memory_space<vmem>>, vector<2x16x128xf32>,
    return
  }
  func.func @transform_0(%arg0: i32) -> (i32, i32, i32) {
    %c0_i32 = arith.constant 0 : i32
    %c0_i32_0 = arith.constant 0 : i32
    %c0_i32_1 = arith.constant 0 : i32
    return %arg0, %c0_i32, %c0_i32_0 : i32, i32, i32
  }
  func.func @transform_1(%arg0: i32) -> (i32, i32, i32) {
    %c0_i32 = arith.constant 0 : i32
    %c0_i32_0 = arith.constant 0 : i32
    %c0_i32_1 = arith.constant 0 : i32
    return %arg0, %c0_i32, %c0_i32_0 : i32, i32, i32
  }
}

</mosaic_0001>

<bundles_post_ra>
// kernel: tpu_custom_call.1
= control target key start
LH: loop header
LB: loop body
LE: loop exit
PB: predicated region body
PF: predicated region fallthrough
CT: control target
= control target key end

     0   :  { %s2457_s14 = smov 127   ;;  %s3891_s0 = inlined_call_operand.vmem [shape: f32[2,21,133], index: 0, kind: input, shape index: {}]   ;;  %s3892_s1 = inlined_call_operand.hbm [shape: f32[2,16,128], index: 1, kind: output, shape index: {}]  }
   0x1   :  { %v2480_v0 = vld [vmem:[%s3891_s0 + $0x10] sm:$0xff]  ;;  %v2485_v1 = vld [vmem:[%s3891_s0] sm:$0xff]  ;;  %v2490_v2 = vld [vmem:[%s3891_s0 + $0x18] sm:$0xff] }
   0x2   :  { %v2493_v3 = vmul.f32 0.5, %v2480_v0  ;;  %v2496_v4 = vmul.f32 0.5, %v2485_v1  ;;  %v2501_v5 = vld [vmem:[%s3891_s0 + $0x8] sm:$0xff]  ;;  %v2508_v6 = vmul.f32 0.5, %v2490_v2  ;;  %v2521_v9 = vld [vmem:[%s3891_s0 + $0x20] sm:$0x1f] }
   0x3   :  { %v2511_v7 = vmul.f32 0.5, %v2501_v5  ;;  %v2516_v8 = vld [vmem:[%s3891_s0 + $0x28] sm:$0x1f]  ;;  %v2531_v11 = vmul.f32 0.5, %v2521_v9  ;;  %v2536_v12 = vld [vmem:[%s3891_s0 + $0x38] sm:$0xff]  ;;  %v2541_v13 = vld [vmem:[%s3891_s0 + $0x30] sm:$0xff] }
   0x4   :  { %3922 = vst [vmem:[#allocation5_spill] sm:$0xff] %v2493_v3  ;;  %3923 = vst [vmem:[#allocation6_spill] sm:$0xff] %v2496_v4  ;;  %122 = vrot.lane.b32.xlu1 %v2493_v3, %s2457_s14  ;;  %118 = vrot.lane.b32.xlu0 %v2496_v4, %s2457_s14  ;;  %v2528_v10 = vmul.f32 0.5, %v2516_v8  ;;  %v2548_v14 = vmul.f32 0.5, %v2536_v12  ;;  %v2551_v15 = vmul.f32 0.5, %v2541_v13  ;;  %v2556_v16 = vld [vmem:[%s3891_s0 + $0x48] sm:$0xff] }
   0x5   :  { %3924 = vst [vmem:[#allocation7_spill] sm:$0xff] %v2508_v6  ;;  %3925 = vst [vmem:[#allocation8_spill] sm:$0xff] %v2511_v7  ;;  %v2561_v17 = vld [vmem:[%s3891_s0 + $0x40] sm:$0xff]  ;;  %v2568_v18 = vmul.f32 0.5, %v2556_v16  ;;  %v2576_v20 = vld [vmem:[%s3891_s0 + $0x58] sm:$0x1f] }
   0x6   :  { %3926 = vst [vmem:[#allocation9_spill] sm:$0xff] %v2528_v10  ;;  %3927 = vst [vmem:[#allocation10_spill] sm:$0xff] %v2531_v11  ;;  %v2571_v19 = vmul.f32 0.5, %v2561_v17  ;;  %v2581_v21 = vld [vmem:[%s3891_s0 + $0x50] sm:$0x1f]  ;;  %v2588_v22 = vmul.f32 0.5, %v2576_v20 }
   0x7   :  { %3928 = vst [vmem:[#allocation11_spill] sm:$0xff] %v2548_v14  ;;  %3929 = vst [vmem:[#allocation12_spill] sm:$0xff] %v2551_v15  ;;  %v2591_v23 = vmul.f32 0.5, %v2581_v21 }
   0x8   :  { %124 = vrot.lane.b32.xlu1 %v2508_v6, %s2457_s14  ;;  %120 = vrot.lane.b32.xlu0 %v2511_v7, %s2457_s14  ;;  %3930 = vst [vmem:[#allocation13_spill] sm:$0xff] %v2568_v18  ;;  %3931 = vst [vmem:[#allocation14_spill] sm:$0xff] %v2571_v19 }
   0x9   :  { %3932 = vst [vmem:[#allocation15_spill] sm:$0xff] %v2588_v22  ;;  %3933 = vst [vmem:[#allocation16_spill] sm:$0xff] %v2591_v23 }
   0xc   :  { %128 = vrot.lane.b32.xlu1 %v2528_v10, %s2457_s14  ;;  %126 = vrot.lane.b32.xlu0 %v2531_v11, %s2457_s14 }
  0x10   :  { %132 = vrot.lane.b32.xlu1 %v2548_v14, %s2457_s14  ;;  %130 = vrot.lane.b32.xlu0 %v2551_v15, %s2457_s14 }
  0x14   :  { %136 = vrot.lane.b32.xlu1 %v2568_v18, %s2457_s14  ;;  %134 = vrot.lane.b32.xlu0 %v2571_v19, %s2457_s14 }
  0x15   :  { %6 = vsyncpa [#allocation3], 0  ;;  %v339_v24 = vmul.f32 0.38439733, %v2501_v5  ;;  %v338_v25 = vmul.f32 0.38439733, %v2485_v1 }
  0x16   :  { %v341_v26 = vmul.f32 0.38439733, %v2490_v2  ;;  %v340_v27 = vmul.f32 0.38439733, %v2480_v0  ;;  %v343_v28 = vmul.f32 0.38439733, %v2516_v8 }
  0x17   :  { %v342_v29 = vmul.f32 0.38439733, %v2521_v9  ;;  %v345_v30 = vmul.f32 0.38439733, %v2536_v12  ;;  %v344_v31 = vmul.f32 0.38439733, %v2541_v13 }
  0x18   :  { %140 = vrot.lane.b32.xlu1 %v2588_v22, %s2457_s14  ;;  %138 = vrot.lane.b32.xlu0 %v2591_v23, %s2457_s14  ;;  %v347_v32 = vmul.f32 0.38439733, %v2556_v16  ;;  %v346_v33 = vmul.f32 0.38439733, %v2561_v17  ;;  %v349_v34 = vmul.f32 0.38439733, %v2576_v20 }
  0x19   :  { %v348_v35 = vmul.f32 0.38439733, %v2581_v21  ;;  %v2622_v36 = vmul.f32 0.30780134, %v2501_v5  ;;  %v2625_v37 = vmul.f32 0.30780134, %v2485_v1 }
  0x1a   :  { %s2458_s2 = smov 126   ;;  %v2632_v38 = vmul.f32 0.30780134, %v2490_v2  ;;  %v2635_v39 = vmul.f32 0.30780134, %v2480_v0  ;;  %s2459_s3 = smov 125  }
  0x1b   :  { %v2642_v40 = vmul.f32 0.30780134, %v2516_v8  ;;  %v2645_v41 = vmul.f32 0.30780134, %v2521_v9  ;;  %v2652_v42 = vmul.f32 0.30780134, %v2536_v12 }
  0x1c   :  { %364 = vrot.lane.b32.xlu1 %v339_v24, %s2457_s14  ;;  %362 = vrot.lane.b32.xlu0 %v338_v25, %s2457_s14  ;;  %v2655_v43 = vmul.f32 0.30780134, %v2541_v13  ;;  %v2662_v44 = vmul.f32 0.30780134, %v2556_v16  ;;  %v2665_v45 = vmul.f32 0.30780134, %v2561_v17 }
  0x1d   :  { %v2672_v46 = vmul.f32 0.30780134, %v2576_v20  ;;  %v2675_v47 = vmul.f32 0.30780134, %v2581_v21  ;;  %v793_v48 = vmul.f32 0.28108826, %v2501_v5 }
  0x1e   :  { %v792_v49 = vmul.f32 0.28108826, %v2485_v1  ;;  %v795_v50 = vmul.f32 0.28108826, %v2490_v2  ;;  %v794_v51 = vmul.f32 0.28108826, %v2480_v0 }
  0x1f   :  { %v797_v52 = vmul.f32 0.28108826, %v2516_v8  ;;  %v796_v53 = vmul.f32 0.28108826, %v2521_v9  ;;  %v799_v54 = vmul.f32 0.28108826, %v2536_v12 }
  0x20   :  { %368 = vrot.lane.b32.xlu1 %v341_v26, %s2457_s14  ;;  %366 = vrot.lane.b32.xlu0 %v340_v27, %s2457_s14  ;;  %v798_v55 = vmul.f32 0.28108826, %v2541_v13  ;;  %v801_v56 = vmul.f32 0.28108826, %v2556_v16  ;;  %v800_v57 = vmul.f32 0.28108826, %v2561_v17 }
  0x21   :  { %v803_v58 = vmul.f32 0.28108826, %v2576_v20  ;;  %v802_v59 = vmul.f32 0.28108826, %v2581_v21  ;;  %v2722_v62 = vmul.f32 0.21891175, %v2501_v5 }
  0x22   :  { %v2725_v63 = vmul.f32 0.21891175, %v2485_v1  ;;  %v2736_v26 = vmul.f32 0.21891175, %v2490_v2  ;;  %v2739_v5 = vmul.f32 0.21891175, %v2480_v0 }
  0x23   :  { %vm142_vm0 = vcmask 1039360   ;;  %vm452_vm1 = vcmask 1031168   ;;  %vm197_vm2 = vcmask 1046528   ;;  %vm575_vm3 = vcmask 1045504   ;;  %s2460_s4 = smov 1   ;;  %s2462_s30 = smov 123  }
  0x24   :  { %372 = vrot.lane.b32.xlu1 %v343_v28, %s2457_s14  ;;  %370 = vrot.lane.b32.xlu0 %v342_v29, %s2457_s14  ;;  %v2750_v28 = vmul.f32 0.21891175, %v2516_v8  ;;  %v2753_v29 = vmul.f32 0.21891175, %v2521_v9  ;;  %vm704_vm4 = vcmask 1040384   ;;  %vm960_vm5 = vcmask 1022976  }
  0x25   :  { %vm1127_vm6 = vcmask 1044480   ;;  %vm1552_vm7 = vcmask 1014784   ;;  %vm1661_vm8 = vcmask 1043456   ;;  %vm2009_vm9 = vcmask 1006592  }
  0x26   :  { %vm2136_vm10 = vcmask 1042432   ;;  %vm1708_vm11 = vcmask 1041408   ;;  %vm749_vm12 = vcmask 7168  }
  0x28   :  { %376 = vrot.lane.b32.xlu1 %v345_v30, %s2457_s14  ;;  %374 = vrot.lane.b32.xlu0 %v344_v31, %s2457_s14  ;;  %v2764_v30 = vmul.f32 0.21891175, %v2536_v12  ;;  %v2767_v31 = vmul.f32 0.21891175, %v2541_v13 }
  0x2c   :  { %380 = vrot.lane.b32.xlu1 %v347_v32, %s2457_s14  ;;  %378 = vrot.lane.b32.xlu0 %v346_v33, %s2457_s14 }
  0x30   :  { %384 = vrot.lane.b32.xlu1 %v349_v34, %s2457_s14  ;;  %382 = vrot.lane.b32.xlu0 %v348_v35, %s2457_s14 }
  0x34   :  { %430 = vrot.lane.b32.xlu1 %v2622_v36, %s2458_s2  ;;  %428 = vrot.lane.b32.xlu0 %v2625_v37, %s2458_s2 }
  0x38   :  { %434 = vrot.lane.b32.xlu1 %v2632_v38, %s2458_s2  ;;  %432 = vrot.lane.b32.xlu0 %v2635_v39, %s2458_s2 }
  0x3c   :  { %438 = vrot.lane.b32.xlu1 %v2642_v40, %s2458_s2  ;;  %436 = vrot.lane.b32.xlu0 %v2645_v41, %s2458_s2 }
  0x40   :  { %442 = vrot.lane.b32.xlu1 %v2652_v42, %s2458_s2  ;;  %440 = vrot.lane.b32.xlu0 %v2655_v43, %s2458_s2 }
  0x44   :  { %446 = vrot.lane.b32.xlu1 %v2662_v44, %s2458_s2  ;;  %444 = vrot.lane.b32.xlu0 %v2665_v45, %s2458_s2 }
  0x48   :  { %450 = vrot.lane.b32.xlu1 %v2672_v46, %s2458_s2  ;;  %448 = vrot.lane.b32.xlu0 %v2675_v47, %s2458_s2 }
  0x4c   :  { %818 = vrot.lane.b32.xlu1 %v793_v48, %s2457_s14  ;;  %816 = vrot.lane.b32.xlu0 %v792_v49, %s2457_s14 }
  0x50   :  { %822 = vrot.lane.b32.xlu1 %v795_v50, %s2457_s14  ;;  %820 = vrot.lane.b32.xlu0 %v794_v51, %s2457_s14 }
  0x54   :  { %826 = vrot.lane.b32.xlu1 %v797_v52, %s2457_s14  ;;  %824 = vrot.lane.b32.xlu0 %v796_v53, %s2457_s14 }
  0x58   :  { %830 = vrot.lane.b32.xlu1 %v799_v54, %s2457_s14  ;;  %828 = vrot.lane.b32.xlu0 %v798_v55, %s2457_s14 }
  0x5c   :  { %834 = vrot.lane.b32.xlu1 %v801_v56, %s2457_s14  ;;  %832 = vrot.lane.b32.xlu0 %v800_v57, %s2457_s14 }
  0x60   :  { %838 = vrot.lane.b32.xlu1 %v803_v58, %s2457_s14  ;;  %836 = vrot.lane.b32.xlu0 %v802_v59, %s2457_s14 }
  0x64   :  { %872 = vrot.lane.b32.xlu1 %v793_v48, %s2458_s2  ;;  %870 = vrot.lane.b32.xlu0 %v792_v49, %s2458_s2 }
  0x68   :  { %876 = vrot.lane.b32.xlu1 %v795_v50, %s2458_s2  ;;  %874 = vrot.lane.b32.xlu0 %v794_v51, %s2458_s2 }
  0x6c   :  { %880 = vrot.lane.b32.xlu1 %v797_v52, %s2458_s2  ;;  %878 = vrot.lane.b32.xlu0 %v796_v53, %s2458_s2 }
  0x70   :  { %884 = vrot.lane.b32.xlu1 %v799_v54, %s2458_s2  ;;  %882 = vrot.lane.b32.xlu0 %v798_v55, %s2458_s2 }
  0x74   :  { %888 = vrot.lane.b32.xlu1 %v801_v56, %s2458_s2  ;;  %886 = vrot.lane.b32.xlu0 %v800_v57, %s2458_s2 }
  0x76   :  { %v2715_v60 = vpop.permute.xlu1 %122  ;;  %v2717_v61 = vpop.permute.xlu0 %118 }
  0x77   :  { %3934 = vst [vmem:[#allocation17_spill] sm:$0xff] %v2715_v60  ;;  %3935 = vst [vmem:[#allocation18_spill] sm:$0xff] %v2717_v61 }
  0x78   :  { %892 = vrot.lane.b32.xlu1 %v803_v58, %s2458_s2  ;;  %890 = vrot.lane.b32.xlu0 %v802_v59, %s2458_s2 }
  0x7a   :  { %v2727_v24 = vpop.permute.xlu1 %124  ;;  %v2729_v25 = vpop.permute.xlu0 %120 }
  0x7b   :  { %3936 = vst [vmem:[#allocation19_spill] sm:$0xff] %v2729_v25 }
  0x7c   :  { %938 = vrot.lane.b32.xlu1 %v2722_v62, %s2459_s3  ;;  %936 = vrot.lane.b32.xlu0 %v2725_v63, %s2459_s3 }
  0x7e   :  { %v2741_v27 = vpop.permute.xlu1 %128  ;;  %v2743_v1 = vpop.permute.xlu0 %126 }
  0x7f   :  { %3937 = vst [vmem:[#allocation20_spill] sm:$0xff] %v2741_v27  ;;  %3938 = vst [vmem:[#allocation21_spill] sm:$0xff] %v2743_v1 }
  0x80   :  { %942 = vrot.lane.b32.xlu1 %v2736_v26, %s2459_s3  ;;  %940 = vrot.lane.b32.xlu0 %v2739_v5, %s2459_s3 }
  0x82   :  { %v2755_v2 = vpop.permute.xlu1 %132  ;;  %v2757_v0 = vpop.permute.xlu0 %130 }
  0x83   :  { %3939 = vst [vmem:[#allocation22_spill] sm:$0xff] %v2755_v2  ;;  %3940 = vst [vmem:[#allocation23_spill] sm:$0xff] %v2757_v0 }
  0x84   :  { %946 = vrot.lane.b32.xlu1 %v2750_v28, %s2459_s3  ;;  %944 = vrot.lane.b32.xlu0 %v2753_v29, %s2459_s3 }
  0x86   :  { %v2769_v8 = vpop.permute.xlu1 %136  ;;  %v2771_v9 = vpop.permute.xlu0 %134 }
  0x87   :  { %3941 = vst [vmem:[#allocation24_spill] sm:$0xff] %v2769_v8  ;;  %3942 = vst [vmem:[#allocation25_spill] sm:$0xff] %v2771_v9 }
  0x88   :  { %950 = vrot.lane.b32.xlu1 %v2764_v30, %s2459_s3  ;;  %948 = vrot.lane.b32.xlu0 %v2767_v31, %s2459_s3 }
  0x8a   :  { %v2777_v32 = vpop.permute.xlu1 %140  ;;  %v2779_v33 = vpop.permute.xlu0 %138 }
  0x8b   :  { %3943 = vst [vmem:[#allocation26_spill] sm:$0xff] %v2777_v32  ;;  %3944 = vst [vmem:[#allocation27_spill] sm:$0xff] %v2779_v33 }
  0x8e   :  { %v365_v34 = vpop.permute.xlu1 %364  ;;  %v363_v12 = vpop.permute.xlu0 %362 }
  0x8f   :  { %v386_v58 = vsel %vm142_vm0, %v363_v12, %v365_v34  ;;  %v405_v22 = vadd.f32 %v365_v34, %v2622_v36 }
  0x90   :  { %v404_v33 = vadd.f32 %v386_v58, %v2625_v37 }
  0x92   :  { %v369_v35 = vpop.permute.xlu1 %368  ;;  %v367_v48 = vpop.permute.xlu0 %366 }
  0x93   :  { %v387_v59 = vsel %vm142_vm0, %v367_v48, %v369_v35  ;;  %v407_v23 = vadd.f32 %v369_v35, %v2632_v38 }
  0x94   :  { %v406_v32 = vadd.f32 %v387_v59, %v2635_v39 }
  0x96   :  { %v373_v13 = vpop.permute.xlu1 %372  ;;  %v371_v49 = vpop.permute.xlu0 %370 }
  0x97   :  { %v388_v0 = vsel %vm142_vm0, %v371_v49, %v373_v13  ;;  %v409_v36 = vadd.f32 %v373_v13, %v2642_v40 }
  0x98   :  { %v408_v34 = vadd.f32 %v388_v0, %v2645_v41 }
  0x9a   :  { %v377_v50 = vpop.permute.xlu1 %376  ;;  %v375_v51 = vpop.permute.xlu0 %374 }
  0x9b   :  { %v389_v37 = vsel %vm142_vm0, %v375_v51, %v377_v50  ;;  %v411_v49 = vadd.f32 %v377_v50, %v2652_v42 }
  0x9c   :  { %v410_v13 = vadd.f32 %v389_v37, %v2655_v43 }
  0x9e   :  { %v381_v52 = vpop.permute.xlu1 %380  ;;  %v379_v53 = vpop.permute.xlu0 %378 }
  0x9f   :  { %v413_v41 = vadd.f32 %v381_v52, %v2662_v44 }
  0xa2   :  { %v385_v54 = vpop.permute.xlu1 %384  ;;  %v383_v55 = vpop.permute.xlu0 %382 }
  0xa3   :  { %v391_v44 = vsel %vm142_vm0, %v383_v55, %v385_v54 }
  0xa6   :  { %v431_v56 = vpop.permute.xlu1 %430  ;;  %v429_v57 = vpop.permute.xlu0 %428 }
  0xa7   :  { %v453_v14 = vsel %vm452_vm1, %v429_v57, %v431_v56  ;;  %v472_v15 = vadd.f32 %v431_v56, %v405_v22 }
  0xa8   :  { %v471_v9 = vadd.f32 %v453_v14, %v404_v33 }
  0xa9   :  { %v496_v39 = vmul.f32 3.4595761, %v472_v15  ;;  %v484_v57 = vmul.f32 2.770212, %v472_v15 }
  0xaa   :  { %v435_v18 = vpop.permute.xlu1 %434  ;;  %v433_v19 = vpop.permute.xlu0 %432  ;;  %v483_v59 = vmul.f32 2.770212, %v471_v9 }
  0xab   :  { %v474_v2 = vadd.f32 %v435_v18, %v407_v23  ;;  %v454_v12 = vsel %vm452_vm1, %v433_v19, %v435_v18  ;;  %v390_v23 = vsel %vm142_vm0, %v379_v53, %v381_v52  ;;  %v495_v19 = vmul.f32 3.4595761, %v471_v9 }
  0xac   :  { %v473_v48 = vadd.f32 %v454_v12, %v406_v32  ;;  %v522_v58 = vrot.slane %v496_v39, 1  ;;  %v412_v53 = vadd.f32 %v390_v23, %v2665_v45 }
  0xad   :  { %v498_v38 = vmul.f32 3.4595761, %v474_v2  ;;  %v486_v32 = vmul.f32 2.770212, %v474_v2  ;;  %v415_v2 = vadd.f32 %v385_v54, %v2672_v46 }
  0xae   :  { %v497_v22 = vmul.f32 3.4595761, %v473_v48  ;;  %v439_v35 = vpop.permute.xlu1 %438  ;;  %v437_v56 = vpop.permute.xlu0 %436  ;;  %v485_v0 = vmul.f32 2.770212, %v473_v48  ;;  %v579_v48 = vrot.slane %v484_v57, 2 }
  0xaf   :  { %v476_v18 = vadd.f32 %v439_v35, %v409_v36  ;;  %v455_v14 = vsel %vm452_vm1, %v437_v56, %v439_v35  ;;  %v523_v40 = vrot.slane %v498_v38, 1  ;;  %v519_v38 = vrot.slane %v495_v19, 1 }
  0xb0   :  { %v475_v33 = vadd.f32 %v455_v14, %v408_v34  ;;  %v520_v12 = vrot.slane %v497_v22, 1  ;;  %v580_v34 = vrot.slane %v486_v32, 2  ;;  %v577_v52 = vrot.slane %v485_v0, 2 }
  0xb1   :  { %v500_v51 = vmul.f32 3.4595761, %v476_v18  ;;  %v488_v36 = vmul.f32 2.770212, %v476_v18  ;;  %v524_v43 = vsel %vm197_vm2, %v522_v58, %v523_v40  ;;  %v576_v18 = vrot.slane %v483_v59, 2 }
  0xb2   :  { %v443_v42 = vpop.permute.xlu1 %442  ;;  %v441_v50 = vpop.permute.xlu0 %440  ;;  %v499_v56 = vmul.f32 3.4595761, %v475_v33  ;;  %v487_v15 = vmul.f32 2.770212, %v475_v33  ;;  %v521_v37 = vsel %vm197_vm2, %v519_v38, %v520_v12  ;;  %v552_v14 = vadd.f32 %v524_v43, %v484_v57 }
  0xb3   :  { %v527_v35 = vrot.slane %v500_v51, 1  ;;  %v456_v9 = vsel %vm452_vm1, %v441_v50, %v443_v42  ;;  %v478_v45 = vadd.f32 %v443_v42, %v411_v49  ;;  %v584_v46 = vrot.slane %v488_v36, 2 }
  0xb4   :  { %v525_v19 = vrot.slane %v499_v56, 1  ;;  %v414_v51 = vadd.f32 %v391_v44, %v2675_v47  ;;  %v477_v58 = vadd.f32 %v456_v9, %v410_v13  ;;  %v581_v54 = vsel %vm575_vm3, %v579_v48, %v580_v34 }
  0xb5   :  { %v556_v39 = vadd.f32 %v527_v35, %v488_v36  ;;  %v2806_v55 = vadd.f32 %v521_v37, %v483_v59  ;;  %v578_v33 = vsel %vm575_vm3, %v576_v18, %v577_v52  ;;  %v528_v50 = vsel %vm197_vm2, %v523_v40, %v527_v35 }
  0xb6   :  { %v447_v22 = vpop.permute.xlu1 %446  ;;  %v445_v23 = vpop.permute.xlu0 %444  ;;  %v582_v38 = vrot.slane %v487_v15, 2  ;;  %v502_v42 = vmul.f32 3.4595761, %v478_v45  ;;  %v2812_v47 = vsel %vm575_vm3, %v580_v34, %v584_v46  ;;  %v526_v13 = vsel %vm197_vm2, %v520_v12, %v525_v19 }
  0xb7   :  { %v480_v8 = vadd.f32 %v447_v22, %v413_v41  ;;  %v613_v49 = vadd.f32 %v584_v46, %v556_v39  ;;  %v457_v57 = vsel %vm452_vm1, %v445_v23, %v447_v22  ;;  %v555_v41 = vadd.f32 %v525_v19, %v487_v15 }
  0xb8   :  { %v609_v59 = vadd.f32 %v581_v54, %v552_v14  ;;  %v2815_v43 = vadd.f32 %v528_v50, %v486_v32  ;;  %v501_v44 = vmul.f32 3.4595761, %v477_v58  ;;  %v479_v9 = vadd.f32 %v457_v57, %v412_v53 }
  0xb9   :  { %v504_v10 = vmul.f32 3.4595761, %v480_v8  ;;  %v583_v35 = vsel %vm575_vm3, %v577_v52, %v582_v38  ;;  %v490_v48 = vmul.f32 2.770212, %v478_v45  ;;  %v625_v22 = vmax.f32 %v613_v49, 0.0 }
  0xba   :  { %v451_v36 = vpop.permute.xlu1 %450  ;;  %v449_v56 = vpop.permute.xlu0 %448  ;;  %v553_v23 = vadd.f32 %v526_v13, %v485_v0  ;;  %v532_v18 = vrot.slane %v502_v42, 1  ;;  %v503_v34 = vmul.f32 3.4595761, %v479_v9  ;;  %v612_v15 = vadd.f32 %v582_v38, %v555_v41 }
  0xbb   :  { %v482_v40 = vadd.f32 %v451_v36, %v415_v2  ;;  %v533_v37 = vrot.slane %v504_v10, 1  ;;  %v458_v39 = vsel %vm452_vm1, %v449_v56, %v451_v36  ;;  %v489_v32 = vmul.f32 2.770212, %v477_v58 }
  0xbc   :  { %v481_v19 = vadd.f32 %v458_v39, %v414_v51  ;;  %v529_v53 = vrot.slane %v501_v44, 1  ;;  %v492_v2 = vmul.f32 2.770212, %v480_v8  ;;  %v491_v54 = vmul.f32 2.770212, %v479_v9 }
  0xbd   :  { %v506_v14 = vmul.f32 3.4595761, %v482_v40  ;;  %v530_v52 = vrot.slane %v503_v34, 1  ;;  %v534_v10 = vsel %vm197_vm2, %v532_v18, %v533_v37  ;;  %v494_v45 = vmul.f32 2.770212, %v482_v40 }
  0xbe   :  { %v2819_v46 = vpop.permute.xlu1 %818  ;;  %v2821_v12 = vpop.permute.xlu0 %816  ;;  %v505_v49 = vmul.f32 3.4595761, %v481_v19  ;;  %v610_v0 = vadd.f32 %v583_v35, %v553_v23  ;;  %v493_v57 = vmul.f32 2.770212, %v481_v19  ;;  %v621_v58 = vmax.f32 %v609_v59, 0.0 }
  0xbf   :  { %v537_v50 = vrot.slane %v506_v14, 1  ;;  %v531_v42 = vsel %vm197_vm2, %v529_v53, %v530_v52  ;;  %v637_v38 = vadd.f32 1.0, %v625_v22  ;;  %v624_v51 = vmax.f32 %v612_v15, 0.0 }
  0xc0   :  { %v535_v8 = vrot.slane %v505_v49, 1  ;;  %v586_v41 = vrot.slane %v489_v32, 2  ;;  %v558_v44 = vadd.f32 %v534_v10, %v490_v48  ;;  %v590_v9 = vrot.slane %v492_v2, 2 }
  0xc1   :  { %v562_v13 = vadd.f32 %v537_v50, %v494_v45  ;;  %v587_v39 = vrot.slane %v491_v54, 2  ;;  %v557_v40 = vadd.f32 %v531_v42, %v489_v32  ;;  %v538_v18 = vsel %vm197_vm2, %v533_v37, %v537_v50 }
  0xc2   :  { %v2825_v36 = vpop.permute.xlu1 %822  ;;  %v2827_v56 = vpop.permute.xlu0 %820  ;;  %v594_v35 = vrot.slane %v494_v45, 2  ;;  %v561_v23 = vadd.f32 %v535_v8, %v493_v57  ;;  %v536_v34 = vsel %vm197_vm2, %v530_v52, %v535_v8  ;;  %v592_v14 = vrot.slane %v493_v57, 2 }
  0xc3   :  { %v633_v59 = vadd.f32 1.0, %v621_v58  ;;  %v608_v22 = vadd.f32 %v578_v33, %v2806_v55  ;;  %2299 = vlog2.f32 %v637_v38  ;;  %v636_v15 = vadd.f32 1.0, %v624_v51 }
  0xc4   :  { %v589_v10 = vrot.slane %v490_v48, 2  ;;  %v619_v49 = vadd.f32 %v594_v35, %v562_v13  ;;  %v588_v32 = vsel %vm575_vm3, %v586_v41, %v587_v39  ;;  %v618_v42 = vadd.f32 %v592_v14, %v561_v23 }
  0xc5   :  { %2301 = vlog2.f32 %v633_v59  ;;  %v620_v37 = vmax.f32 %v608_v22, 0.0  ;;  %v560_v45 = vadd.f32 %v538_v18, %v492_v2  ;;  %v559_v50 = vadd.f32 %v536_v34, %v491_v54 }
  0xc6   :  { %v2831_v19 = vpop.permute.xlu1 %826  ;;  %v2833_v53 = vpop.permute.xlu0 %824  ;;  %v591_v52 = vsel %vm575_vm3, %v589_v10, %v590_v9  ;;  %v614_v57 = vadd.f32 %v588_v32, %v557_v40  ;;  %v611_v33 = vadd.f32 %v2812_v47, %v2815_v43  ;;  %v622_v48 = vmax.f32 %v610_v0, 0.0 }
  0xc7   :  { %v632_v58 = vadd.f32 1.0, %v620_v37  ;;  %v615_v55 = vadd.f32 %v591_v52, %v558_v44  ;;  %2303 = vlog2.f32 %v636_v15  ;;  %v631_v38 = vmax.f32 %v619_v49, 0.0 }
  0xc8   :  { %v593_v51 = vsel %vm575_vm3, %v587_v39, %v592_v14  ;;  %v630_v13 = vmax.f32 %v618_v42, 0.0  ;;  %v626_v54 = vmax.f32 %v614_v57, 0.0  ;;  %v595_v41 = vsel %vm575_vm3, %v590_v9, %v594_v35 }
  0xc9   :  { %2305 = vlog2.f32 %v632_v58  ;;  %v627_v2 = vmax.f32 %v615_v55, 0.0  ;;  %v616_v40 = vadd.f32 %v593_v51, %v559_v50  ;;  %v623_v18 = vmax.f32 %v611_v33, 0.0 }
  0xca   :  { %v2838_v8 = vpop.permute.xlu1 %830  ;;  %v2840_v11 = vpop.permute.xlu0 %828  ;;  %v634_v23 = vadd.f32 1.0, %v622_v48  ;;  %v638_v47 = vadd.f32 1.0, %v626_v54  ;;  %v617_v43 = vadd.f32 %v595_v41, %v560_v45  ;;  %v643_v0 = vadd.f32 1.0, %v631_v38 }
  0xcb   :  { %v639_v59 = vadd.f32 1.0, %v627_v2  ;;  %v635_v22 = vadd.f32 1.0, %v623_v18  ;;  %v642_v39 = vadd.f32 1.0, %v630_v13  ;;  %v628_v15 = vmax.f32 %v616_v40, 0.0 }
  0xcc   :  { %2307 = vlog2.f32 %v634_v23  ;;  %v629_v14 = vmax.f32 %v617_v43, 0.0 }
  0xcd   :  { %2309 = vlog2.f32 %v639_v59  ;;  %v640_v49 = vadd.f32 1.0, %v628_v15 }
  0xce   :  { %v2846_v34 = vpop.permute.xlu1 %834  ;;  %v2848_v44 = vpop.permute.xlu0 %832  ;;  %2311 = vlog2.f32 %v638_v47  ;;  %v641_v35 = vadd.f32 1.0, %v629_v14 }
  0xcf   :  { %2313 = vlog2.f32 %v635_v22 }
  0xd0   :  { %2315 = vlog2.f32 %v643_v0  ;;  %v2300_v32 = vpop.eup %2299 }
  0xd1   :  { %2317 = vlog2.f32 %v642_v39  ;;  %v655_v51 = vmul.f32 0.6931472, %v2300_v32 }
  0xd2   :  { %v2850_v10 = vpop.permute.xlu1 %838  ;;  %v2852_v9 = vpop.permute.xlu0 %836  ;;  %2319 = vlog2.f32 %v641_v35 }
  0xd3   :  { %v2302_v42 = vpop.eup %2301  ;;  %2321 = vlog2.f32 %v640_v49  ;;  %v673_v15 = vmul.f32 1.442695, %v655_v51 }
  0xd4   :  { %v647_v37 = vmul.f32 0.6931472, %v2302_v42  ;;  %v2304_v52 = vpop.eup %2303 }
  0xd5   :  { %v653_v18 = vmul.f32 0.6931472, %v2304_v52 }
  0xd6   :  { %v2854_v45 = vpop.permute.xlu1 %872  ;;  %v2856_v50 = vpop.permute.xlu0 %870  ;;  %v669_v57 = vmul.f32 1.442695, %v647_v37 }
  0xd7   :  { %v2306_v58 = vpop.eup %2305 }
  0xd8   :  { %v2858_v55 = vmul.f32 0.0006536632, %v669_v57  ;;  %v645_v33 = vmul.f32 0.6931472, %v2306_v58  ;;  %v672_v57 = vmul.f32 1.442695, %v653_v18 }
  0xd9   :  { %v2308_v13 = vpop.eup %2307 }
  0xda   :  { %v2860_v48 = vpop.permute.xlu1 %876  ;;  %v2862_v38 = vpop.permute.xlu0 %874  ;;  %v706_v2 = vrot.slane %v2858_v55, 7  ;;  %v668_v54 = vmul.f32 1.442695, %v645_v33  ;;  %v649_v40 = vmul.f32 0.6931472, %v2308_v13 }
  0xdb   :  { %v2310_v41 = vpop.eup %2309 }
  0xdc   :  { %v2312_v23 = vpop.eup %2311  ;;  %727 = vrot.lane.b32.xlu1 %v706_v2, %s2460_s4  ;;  %v680_v59 = vmul.f32 0.0006536632, %v668_v54  ;;  %v659_v47 = vmul.f32 0.6931472, %v2310_v41  ;;  %v670_v14 = vmul.f32 1.442695, %v649_v40 }
  0xdd   :  { %v2314_v22 = vpop.eup %2313  ;;  %v657_v39 = vmul.f32 0.6931472, %v2312_v23  ;;  %v685_v23 = vmul.f32 0.0006536632, %v673_v15 }
  0xde   :  { %v2866_v43 = vpop.permute.xlu1 %880  ;;  %v2868_v0 = vpop.permute.xlu0 %878  ;;  %v705_v49 = vrot.slane %v680_v59, 7  ;;  %v675_v32 = vmul.f32 1.442695, %v659_v47  ;;  %v651_v42 = vmul.f32 0.6931472, %v2314_v22 }
  0xdf   :  { %v2316_v35 = vpop.eup %2315  ;;  %v674_v52 = vmul.f32 1.442695, %v657_v39  ;;  %v682_v13 = vmul.f32 0.0006536632, %v670_v14  ;;  %v840_v39 = vsel %vm142_vm0, %v2821_v12, %v2819_v46 }
  0xe0   :  { %v2318_v37 = vpop.eup %2317  ;;  %725 = vrot.lane.b32.xlu0 %v705_v49, %s2460_s4  ;;  %v2871_v55 = vmul.f32 0.0006536632, %v675_v32  ;;  %v671_v33 = vmul.f32 1.442695, %v651_v42  ;;  %v667_v59 = vmul.f32 0.6931472, %v2316_v35 }
  0xe1   :  { %v2320_v58 = vpop.eup %2319  ;;  %v2877_v51 = vmul.f32 0.0006536632, %v674_v52  ;;  %v684_v32 = vmul.f32 0.0006536632, %v672_v57  ;;  %v707_v52 = vrot.slane %v682_v13, 7  ;;  %v841_v57 = vsel %vm142_vm0, %v2827_v56, %v2825_v36 }
  0xe2   :  { %v2873_v54 = vpop.permute.xlu1 %884  ;;  %v2875_v41 = vpop.permute.xlu0 %882  ;;  %v716_v47 = vrot.slane %v2871_v55, 7  ;;  %v683_v22 = vmul.f32 0.0006536632, %v671_v33  ;;  %v663_v18 = vmul.f32 0.6931472, %v2320_v58  ;;  %v859_v58 = vadd.f32 %v2819_v46, %v2722_v62 }
  0xe3   :  { %v2322_v40 = vpop.eup %2321  ;;  %v715_v14 = vrot.slane %v2877_v51, 7  ;;  %v665_v55 = vmul.f32 0.6931472, %v2318_v37  ;;  %v858_v33 = vadd.f32 %v840_v39, %v2725_v63  ;;  %v894_v13 = vsel %vm452_vm1, %v2856_v50, %v2854_v45 }
  0xe4   :  { %v661_v42 = vmul.f32 0.6931472, %v2322_v40  ;;  %739 = vrot.lane.b32.xlu1 %v716_v47, %s2460_s4  ;;  %v709_v4 = vrot.slane %v683_v22, 7  ;;  %v677_v35 = vmul.f32 1.442695, %v663_v18  ;;  %v713_v37 = vrot.slane %v685_v23, 7 }
  0xe5   :  { %737 = vrot.lane.b32.xlu0 %v715_v14, %s2460_s4  ;;  %v679_v40 = vmul.f32 1.442695, %v667_v59  ;;  %v708_v62 = vsel %vm704_vm4, %v705_v49, %v707_v52  ;;  %v711_v46 = vrot.slane %v684_v32, 7  ;;  %v678_v56 = vmul.f32 1.442695, %v665_v55 }
  0xe6   :  { %v2885_v3 = vpop.permute.xlu1 %888  ;;  %v2887_v15 = vpop.permute.xlu0 %886  ;;  %v676_v12 = vmul.f32 1.442695, %v661_v42  ;;  %v710_v51 = vsel %vm704_vm4, %v706_v2, %v709_v4  ;;  %v689_v22 = vmul.f32 0.0006536632, %v677_v35  ;;  %v861_v59 = vadd.f32 %v2825_v36, %v2736_v26 }
  0xe7   :  { %v913_v50 = vadd.f32 %v2854_v45, %v859_v58  ;;  %v912_v2 = vadd.f32 %v894_v13, %v858_v33  ;;  %v691_v23 = vmul.f32 0.0006536632, %v679_v40  ;;  %v860_v42 = vadd.f32 %v841_v57, %v2739_v5 }
  0xe8   :  { %731 = vrot.lane.b32.xlu1 %v710_v51, %s2460_s4  ;;  %v688_v18 = vmul.f32 0.0006536632, %v676_v12  ;;  %v842_v49 = vsel %vm142_vm0, %v2833_v53, %v2831_v19  ;;  %v714_v32 = vsel %vm704_vm4, %v709_v4, %v713_v37  ;;  %v719_v35 = vrot.slane %v689_v22, 7 }
  0xe9   :  { %729 = vrot.lane.b32.xlu0 %v708_v62, %s2460_s4  ;;  %v895_v26 = vsel %vm452_vm1, %v2862_v38, %v2860_v48  ;;  %v712_v36 = vsel %vm704_vm4, %v707_v52, %v711_v46  ;;  %v690_v55 = vmul.f32 0.0006536632, %v678_v56  ;;  %v915_v5 = vadd.f32 %v2860_v48, %v861_v59 }
  0xea   :  { %v2902_v63 = vpop.permute.xlu1 %892  ;;  %v2904_v39 = vpop.permute.xlu0 %890  ;;  %v717_v45 = vrot.slane %v688_v18, 7  ;;  %v863_v33 = vadd.f32 %v2831_v19, %v2750_v28  ;;  %v862_v38 = vadd.f32 %v842_v49, %v2753_v29  ;;  %v723_v57 = vrot.slane %v691_v23, 7 }
  0xeb   :  { %v2927_v52 = vmul.f32 0.21891175, %v2556_v16  ;;  %v914_v13 = vadd.f32 %v895_v26, %v860_v42  ;;  %v896_v48 = vsel %vm452_vm1, %v2868_v0, %v2866_v43  ;;  %v720_v51 = vsel %vm704_vm4, %v716_v47, %v719_v35 }
  0xec   :  { %735 = vrot.lane.b32.xlu1 %v714_v32, %s2460_s4  ;;  %v2934_v37 = vmul.f32 0.21891175, %v2561_v17  ;;  %v718_v28 = vsel %vm704_vm4, %v715_v14, %v717_v45  ;;  %v721_v29 = vrot.slane %v690_v55, 7  ;;  %v2939_v16 = vmul.f32 0.21891175, %v2576_v20 }
  0xed   :  { %733 = vrot.lane.b32.xlu0 %v712_v36, %s2460_s4  ;;  %v2942_v46 = vmul.f32 0.21891175, %v2581_v21  ;;  %v917_v17 = vadd.f32 %v2866_v43, %v863_v33  ;;  %v916_v18 = vadd.f32 %v896_v48, %v862_v38  ;;  %v724_v56 = vsel %vm704_vm4, %v719_v35, %v723_v57 }
  0xee   :  { %v939_v58 = vpop.permute.xlu1 %938  ;;  %v937_v12 = vpop.permute.xlu0 %936  ;;  %v722_v21 = vsel %vm704_vm4, %v717_v45, %v721_v29 }
  0xef   :  { %v980_v53 = vadd.f32 %v939_v58, %v913_v50  ;;  %v961_v4 = vsel %vm960_vm5, %v937_v12, %v939_v58 }
  0xf0   :  { %v979_v40 = vadd.f32 %v961_v4, %v912_v2  ;;  %743 = vrot.lane.b32.xlu1 %v720_v51, %s2460_s4 }
  0xf1   :  { %v1004_v19 = vmul.f32 4.497412, %v980_v53  ;;  %741 = vrot.lane.b32.xlu0 %v718_v28, %s2460_s4  ;;  %v2948_v59 = vmul.f32 3.502588, %v980_v53 }
  0xf2   :  { %v943_v22 = vpop.permute.xlu1 %942  ;;  %v941_v62 = vpop.permute.xlu0 %940  ;;  %v1003_v0 = vmul.f32 4.497412, %v979_v40  ;;  %v991_v50 = vmul.f32 3.502588, %v979_v40 }
  0xf3   :  { %v982_v47 = vadd.f32 %v943_v22, %v915_v5  ;;  %v962_v14 = vsel %vm960_vm5, %v941_v62, %v943_v22  ;;  %v1030_v23 = vrot.slane %v1004_v19, 1  ;;  %v1074_v42 = vrot.slane %v1004_v19, 2 }
  0xf4   :  { %v981_v20 = vadd.f32 %v962_v14, %v914_v13  ;;  %747 = vrot.lane.b32.xlu1 %v724_v56, %s2460_s4  ;;  %v1027_v43 = vrot.slane %v1003_v0, 1  ;;  %v1071_v35 = vrot.slane %v1003_v0, 2  ;;  %v1131_v4 = vrot.slane %v2948_v59, 3 }
  0xf5   :  { %v1006_v2 = vmul.f32 4.497412, %v982_v47  ;;  %v994_v49 = vmul.f32 3.502588, %v982_v47  ;;  %745 = vrot.lane.b32.xlu0 %v722_v21, %s2460_s4  ;;  %v1128_v33 = vrot.slane %v991_v50, 3 }
  0xf6   :  { %v947_v32 = vpop.permute.xlu1 %946  ;;  %v945_v26 = vpop.permute.xlu0 %944  ;;  %v993_v58 = vmul.f32 3.502588, %v981_v20  ;;  %v1005_v12 = vmul.f32 4.497412, %v981_v20 }
  0xf7   :  { %v1031_v36 = vrot.slane %v1006_v2, 1  ;;  %v1075_v55 = vrot.slane %v1006_v2, 2  ;;  %v984_v5 = vadd.f32 %v947_v32, %v917_v17  ;;  %v963_v53 = vsel %vm960_vm5, %v945_v26, %v947_v32 }
  0xf8   :  { %v983_v45 = vadd.f32 %v963_v53, %v916_v18  ;;  %954 = vrot.lane.b32.xlu1 %v2927_v52, %s2459_s3  ;;  %v1132_v38 = vrot.slane %v994_v49, 3  ;;  %v1028_v57 = vrot.slane %v1005_v12, 1  ;;  %v1072_v40 = vrot.slane %v1005_v12, 2 }
  0xf9   :  { %v996_v13 = vmul.f32 3.502588, %v984_v5  ;;  %952 = vrot.lane.b32.xlu0 %v2934_v37, %s2459_s3  ;;  %v1032_v48 = vsel %vm197_vm2, %v1030_v23, %v1031_v36  ;;  %v1008_v51 = vmul.f32 4.497412, %v984_v5  ;;  %v1076_v19 = vsel %vm575_vm3, %v1074_v42, %v1075_v55 }
  0xfa   :  { %v995_v28 = vmul.f32 3.502588, %v983_v45  ;;  %v1007_v29 = vmul.f32 4.497412, %v983_v45  ;;  %v1029_v22 = vsel %vm197_vm2, %v1027_v43, %v1028_v57  ;;  %v1073_v62 = vsel %vm575_vm3, %v1071_v35, %v1072_v40 }
  0xfb   :  { %v1129_v0 = vrot.slane %v993_v58, 3  ;;  %v1059_v47 = vadd.f32 %v1029_v22, %v991_v50  ;;  %v1035_v17 = vrot.slane %v1008_v51, 1  ;;  %v1079_v18 = vrot.slane %v1008_v51, 2 }
  0xfc   :  { %v1033_v56 = vrot.slane %v1007_v29, 1  ;;  %v1060_v14 = vadd.f32 %v1032_v48, %v2948_v59  ;;  %958 = vrot.lane.b32.xlu1 %v2939_v16, %s2459_s3  ;;  %v1136_v2 = vrot.slane %v996_v13, 3  ;;  %v1077_v20 = vrot.slane %v1007_v29, 2 }
  0xfd   :  { %v1134_v21 = vrot.slane %v995_v28, 3  ;;  %v1103_v23 = vadd.f32 %v1073_v62, %v1059_v47  ;;  %956 = vrot.lane.b32.xlu0 %v2942_v46, %s2459_s3  ;;  %v1036_v42 = vsel %vm197_vm2, %v1031_v36, %v1035_v17  ;;  %v1064_v32 = vadd.f32 %v1035_v17, %v996_v13 }
  0xfe   :  { %v1080_v50 = vsel %vm575_vm3, %v1075_v55, %v1079_v18  ;;  %v1062_v26 = vadd.f32 %v1036_v42, %v994_v49  ;;  %v1034_v43 = vsel %vm197_vm2, %v1028_v57, %v1033_v56  ;;  %v1063_v35 = vadd.f32 %v1033_v56, %v995_v28 }
  0xff   :  { %v1078_v59 = vsel %vm575_vm3, %v1072_v40, %v1077_v20  ;;  %v1130_v12 = vsel %vm1127_vm6, %v1128_v33, %v1129_v0  ;;  %v1108_v5 = vadd.f32 %v1079_v18, %v1064_v32  ;;  %v1061_v53 = vadd.f32 %v1034_v43, %v993_v58 }
 0x100   :  { %v1106_v45 = vadd.f32 %v1080_v50, %v1062_v26  ;;  %v1107_v48 = vadd.f32 %v1077_v20, %v1063_v35  ;;  %v1135_v51 = vsel %vm1127_vm6, %v1129_v0, %v1134_v21  ;;  %v1104_v29 = vadd.f32 %v1076_v19, %v1060_v14 }
 0x101   :  { %v1137_v36 = vsel %vm1127_vm6, %v1132_v38, %v1136_v2  ;;  %v1165_v13 = vadd.f32 %v1136_v2, %v1108_v5  ;;  %v1105_v22 = vadd.f32 %v1078_v59, %v1061_v53  ;;  %v1133_v49 = vsel %vm1127_vm6, %v1131_v4, %v1132_v38 }
 0x102   :  { %v1164_v55 = vadd.f32 %v1134_v21, %v1107_v48  ;;  %v1160_v57 = vadd.f32 %v1130_v12, %v1103_v23  ;;  %v1161_v40 = vadd.f32 %v1133_v49, %v1104_v29  ;;  %v1163_v17 = vadd.f32 %v1137_v36, %v1106_v45 }
 0x103   :  { %v1177_v28 = vmax.f32 %v1165_v13, 0.0  ;;  %v1162_v62 = vadd.f32 %v1135_v51, %v1105_v22 }
 0x104   :  { %v1176_v47 = vmax.f32 %v1164_v55, 0.0  ;;  %v1172_v33 = vmax.f32 %v1160_v57, 0.0  ;;  %v1173_v18 = vmax.f32 %v1161_v40, 0.0  ;;  %v1175_v0 = vmax.f32 %v1163_v17, 0.0 }
 0x105   :  { %v1189_v58 = vadd.f32 1.0, %v1177_v28  ;;  %v1174_v19 = vmax.f32 %v1162_v62, 0.0 }
 0x106   :  { %v1188_v56 = vadd.f32 1.0, %v1176_v47  ;;  %v1184_v20 = vadd.f32 1.0, %v1172_v33  ;;  %v1185_v14 = vadd.f32 1.0, %v1173_v18  ;;  %v1187_v2 = vadd.f32 1.0, %v1175_v0 }
 0x107   :  { %2323 = vlog2.f32 %v1189_v58  ;;  %v1186_v21 = vadd.f32 1.0, %v1174_v19  ;;  %v951_v19 = vpop.permute.xlu1 %950 }
 0x108   :  { %2325 = vlog2.f32 %v1188_v56 }
 0x109   :  { %2327 = vlog2.f32 %v1185_v14  ;;  %v949_v14 = vpop.permute.xlu0 %948 }
 0x10a   :  { %2329 = vlog2.f32 %v1184_v20 }
 0x10b   :  { %2331 = vlog2.f32 %v1187_v2 }
 0x10c   :  { %2333 = vlog2.f32 %v1186_v21 }
 0x114   :  { %v2324_v4 = vpop.eup %2323 }
 0x115   :  { %v2326_v38 = vpop.eup %2325  ;;  %v1207_v23 = vmul.f32 0.6931472, %v2324_v4 }
 0x116   :  { %v2328_v42 = vpop.eup %2327  ;;  %v1205_v32 = vmul.f32 0.6931472, %v2326_v38 }
 0x117   :  { %v2330_v50 = vpop.eup %2329  ;;  %v1199_v26 = vmul.f32 0.6931472, %v2328_v42  ;;  %v1225_v59 = vmul.f32 1.442695, %v1207_v23  ;;  %v843_v42 = vsel %vm142_vm0, %v2840_v11, %v2838_v8  ;;  %v964_v11 = vsel %vm960_vm5, %v949_v14, %v951_v19 }
 0x118   :  { %v2332_v43 = vpop.eup %2331  ;;  %v1197_v35 = vmul.f32 0.6931472, %v2330_v50  ;;  %v1224_v45 = vmul.f32 1.442695, %v1205_v32  ;;  %v865_v50 = vadd.f32 %v2838_v8, %v2764_v30  ;;  %v844_v30 = vsel %vm142_vm0, %v2848_v44, %v2846_v34 }
 0x119   :  { %v2334_v12 = vpop.eup %2333  ;;  %v1221_v5 = vmul.f32 1.442695, %v1199_v26  ;;  %v1203_v53 = vmul.f32 0.6931472, %v2332_v43  ;;  %v1237_v55 = vmul.f32 0.09147929, %v1225_v59  ;;  %v864_v26 = vadd.f32 %v843_v42, %v2767_v31 }
 0x11a   :  { %v1220_v48 = vmul.f32 1.442695, %v1197_v35  ;;  %v1201_v51 = vmul.f32 0.6931472, %v2334_v12  ;;  %v1236_v28 = vmul.f32 0.09147929, %v1224_v45  ;;  %v897_v35 = vsel %vm452_vm1, %v2875_v41, %v2873_v54 }
 0x11b   :  { %v1233_v29 = vmul.f32 0.09147929, %v1221_v5  ;;  %v1223_v36 = vmul.f32 1.442695, %v1203_v53  ;;  %v1264_v17 = vrot.slane %v1237_v55, 7  ;;  %v919_v12 = vadd.f32 %v2873_v54, %v865_v50 }
 0x11c   :  { %v1232_v13 = vmul.f32 0.09147929, %v1220_v48  ;;  %v1222_v22 = vmul.f32 1.442695, %v1201_v51  ;;  %v1262_v18 = vrot.slane %v1236_v28, 7  ;;  %v918_v5 = vadd.f32 %v897_v35, %v864_v26 }
 0x11d   :  { %v1257_v49 = vrot.slane %v1233_v29, 7  ;;  %v1235_v57 = vmul.f32 0.09147929, %v1223_v36  ;;  %v867_v31 = vadd.f32 %v2846_v34, %v2927_v52  ;;  %v845_v8 = vsel %vm142_vm0, %v2852_v9, %v2850_v10 }
 0x11e   :  { %v1256_v62 = vrot.slane %v1232_v13, 7  ;;  %v1234_v40 = vmul.f32 0.09147929, %v1222_v22  ;;  %v986_v41 = vadd.f32 %v951_v19, %v919_v12  ;;  %v985_v54 = vadd.f32 %v964_v11, %v918_v5 }
 0x11f   :  { %1278 = vrot.lane.b32.xlu1 %v1257_v49, %s2460_s4  ;;  %v1260_v47 = vrot.slane %v1235_v57, 7  ;;  %v866_v51 = vadd.f32 %v844_v30, %v2934_v37  ;;  %v869_v36 = vadd.f32 %v2850_v10, %v2939_v16  ;;  %v868_v44 = vadd.f32 %v845_v8, %v2942_v46 }
 0x120   :  { %1276 = vrot.lane.b32.xlu0 %v1256_v62, %s2460_s4  ;;  %v1258_v33 = vrot.slane %v1234_v40, 7  ;;  %v898_v34 = vsel %vm452_vm1, %v2887_v15, %v2885_v3  ;;  %v921_v52 = vadd.f32 %v2885_v3, %v867_v31  ;;  %v899_v9 = vsel %vm452_vm1, %v2904_v39, %v2902_v63 }
 0x121   :  { %v1261_v58 = vsel %vm704_vm4, %v1257_v49, %v1260_v47  ;;  %v1265_v20 = vsel %vm704_vm4, %v1260_v47, %v1264_v17  ;;  %v998_v13 = vmul.f32 3.502588, %v986_v41  ;;  %v1010_v22 = vmul.f32 4.497412, %v986_v41 }
 0x122   :  { %v1259_v56 = vsel %vm704_vm4, %v1256_v62, %v1258_v33  ;;  %v1263_v0 = vsel %vm704_vm4, %v1258_v33, %v1262_v18  ;;  %v1009_v37 = vmul.f32 4.497412, %v985_v54  ;;  %v920_v49 = vadd.f32 %v898_v34, %v866_v51 }
 0x123   :  { %1282 = vrot.lane.b32.xlu1 %v1261_v58, %s2460_s4  ;;  %v997_v57 = vmul.f32 3.502588, %v985_v54  ;;  %v923_v16 = vadd.f32 %v2902_v63, %v869_v36  ;;  %v922_v46 = vadd.f32 %v899_v9, %v868_v44  ;;  %v1141_v15 = vrot.slane %v998_v13, 3 }
 0x124   :  { %1280 = vrot.lane.b32.xlu0 %v1259_v56, %s2460_s4  ;;  %v1040_v33 = vrot.slane %v1010_v22, 1  ;;  %v1084_v17 = vrot.slane %v1010_v22, 2  ;;  %v1037_v39 = vrot.slane %v1009_v37, 1  ;;  %v1081_v58 = vrot.slane %v1009_v37, 2 }
 0x125   :  { %v1138_v56 = vrot.slane %v997_v57, 3 }
 0x127   :  { %1286 = vrot.lane.b32.xlu1 %v1265_v20, %s2460_s4 }
 0x128   :  { %1284 = vrot.lane.b32.xlu0 %v1263_v0, %s2460_s4 }
 0x14e   :  { %v2986_v2 = vpop.permute.xlu1 %727 }
 0x14f   :  { %3945 = vst [vmem:[#allocation28_spill] sm:$0xff] %v2986_v2 }
 0x152   :  { %v2988_v21 = vpop.permute.xlu0 %725 }
 0x153   :  { %3946 = vst [vmem:[#allocation29_spill] sm:$0xff] %v2988_v21 }
 0x156   :  { %v2990_v4 = vpop.permute.xlu1 %739 }
 0x157   :  { %3947 = vst [vmem:[#allocation30_spill] sm:$0xff] %v2990_v4  ;;  %v2992_v38 = vpop.permute.xlu0 %737 }
 0x158   :  { %3948 = vst [vmem:[#allocation31_spill] sm:$0xff] %v2992_v38 }
 0x15a   :  { %v2994_v23 = vpop.permute.xlu1 %731 }
 0x15b   :  { %3949 = vst [vmem:[#allocation32_spill] sm:$0xff] %v2994_v23  ;;  %v2999_v32 = vpop.permute.xlu0 %729 }
 0x15c   :  { %3950 = vst [vmem:[#allocation33_spill] sm:$0xff] %v2999_v32 }
 0x15e   :  { %v3004_v43 = vpop.permute.xlu1 %735 }
 0x15f   :  { %3951 = vst [vmem:[#allocation34_spill] sm:$0xff] %v3004_v43  ;;  %v3009_v59 = vpop.permute.xlu0 %733 }
 0x160   :  { %3952 = vst [vmem:[#allocation35_spill] sm:$0xff] %v3009_v59 }
 0x162   :  { %v3012_v53 = vpop.permute.xlu1 %743 }
 0x163   :  { %3953 = vst [vmem:[#allocation36_spill] sm:$0xff] %v3012_v53  ;;  %v3015_v45 = vpop.permute.xlu0 %741 }
 0x164   :  { %3954 = vst [vmem:[#allocation37_spill] sm:$0xff] %v3015_v45 }
 0x166   :  { %v3025_v48 = vpop.permute.xlu1 %747 }
 0x167   :  { %3955 = vst [vmem:[#allocation38_spill] sm:$0xff] %v3025_v48  ;;  %v3028_v29 = vpop.permute.xlu0 %745 }
 0x168   :  { %3956 = vst [vmem:[#allocation39_spill] sm:$0xff] %v3028_v29 }
 0x16a   :  { %v955_v55 = vpop.permute.xlu1 %954 }
 0x16b   :  { %v988_v28 = vadd.f32 %v955_v55, %v921_v52  ;;  %v953_v10 = vpop.permute.xlu0 %952 }
 0x16c   :  { %v965_v62 = vsel %vm960_vm5, %v953_v10, %v955_v55 }
 0x16d   :  { %v1000_v40 = vmul.f32 3.502588, %v988_v28  ;;  %v1012_v3 = vmul.f32 4.497412, %v988_v28  ;;  %v987_v47 = vadd.f32 %v965_v62, %v920_v49 }
 0x16e   :  { %v959_v18 = vpop.permute.xlu1 %958 }
 0x16f   :  { %v1041_v20 = vrot.slane %v1012_v3, 1  ;;  %v1085_v0 = vrot.slane %v1012_v3, 2  ;;  %v999_v19 = vmul.f32 3.502588, %v987_v47  ;;  %v957_v14 = vpop.permute.xlu0 %956  ;;  %v1142_v42 = vrot.slane %v1000_v40, 3 }
 0x170   :  { %v1011_v50 = vmul.f32 4.497412, %v987_v47  ;;  %v990_v63 = vadd.f32 %v959_v18, %v923_v16  ;;  %v966_v26 = vsel %vm960_vm5, %v957_v14, %v959_v18 }
 0x171   :  { %v1042_v35 = vsel %vm197_vm2, %v1040_v33, %v1041_v20  ;;  %v1086_v12 = vsel %vm575_vm3, %v1084_v17, %v1085_v0  ;;  %v1139_v5 = vrot.slane %v999_v19, 3  ;;  %v989_v11 = vadd.f32 %v966_v26, %v922_v46 }
 0x172   :  { %v1066_v30 = vadd.f32 %v1042_v35, %v998_v13  ;;  %v1038_v31 = vrot.slane %v1011_v50, 1  ;;  %v1082_v8 = vrot.slane %v1011_v50, 2  ;;  %v1002_v41 = vmul.f32 3.502588, %v990_v63 }
 0x173   :  { %v1140_v54 = vsel %vm1127_vm6, %v1138_v56, %v1139_v5  ;;  %v1014_v51 = vmul.f32 4.497412, %v990_v63  ;;  %v1001_v36 = vmul.f32 3.502588, %v989_v11  ;;  %v1013_v44 = vmul.f32 4.497412, %v989_v11 }
 0x174   :  { %v1039_v34 = vsel %vm197_vm2, %v1037_v39, %v1038_v31  ;;  %v1083_v52 = vsel %vm575_vm3, %v1081_v58, %v1082_v8  ;;  %v1146_v9 = vrot.slane %v1002_v41, 3  ;;  %v1110_v22 = vadd.f32 %v1086_v12, %v1066_v30 }
 0x175   :  { %v1065_v37 = vadd.f32 %v1039_v34, %v997_v57  ;;  %v1045_v55 = vrot.slane %v1014_v51, 1  ;;  %v1089_v49 = vrot.slane %v1014_v51, 2  ;;  %v1043_v28 = vrot.slane %v1013_v44, 1 }
 0x176   :  { %v1147_v13 = vsel %vm1127_vm6, %v1142_v42, %v1146_v9  ;;  %v1087_v10 = vrot.slane %v1013_v44, 2  ;;  %v1144_v16 = vrot.slane %v1001_v36, 3  ;;  %v1143_v46 = vsel %vm1127_vm6, %v1141_v15, %v1142_v42 }
 0x177   :  { %v1109_v62 = vadd.f32 %v1083_v52, %v1065_v37  ;;  %v1046_v3 = vsel %vm197_vm2, %v1041_v20, %v1045_v55  ;;  %v1070_v47 = vadd.f32 %v1045_v55, %v1002_v41  ;;  %v1090_v33 = vsel %vm575_vm3, %v1085_v0, %v1089_v49 }
 0x178   :  { %v1068_v17 = vadd.f32 %v1046_v3, %v1000_v40  ;;  %v1044_v39 = vsel %vm197_vm2, %v1038_v31, %v1043_v28  ;;  %v1069_v58 = vadd.f32 %v1043_v28, %v1001_v36  ;;  %v1088_v57 = vsel %vm575_vm3, %v1082_v8, %v1087_v10 }
 0x179   :  { %v1114_v18 = vadd.f32 %v1089_v49, %v1070_v47  ;;  %v1067_v56 = vadd.f32 %v1044_v39, %v999_v19  ;;  %v1145_v14 = vsel %vm1127_vm6, %v1139_v5, %v1144_v16  ;;  %v1167_v50 = vadd.f32 %v1143_v46, %v1110_v22 }
 0x17a   :  { %v1112_v63 = vadd.f32 %v1090_v33, %v1068_v17  ;;  %v1113_v26 = vadd.f32 %v1087_v10, %v1069_v58  ;;  %v1166_v15 = vadd.f32 %v1140_v54, %v1109_v62 }
 0x17b   :  { %v1171_v42 = vadd.f32 %v1146_v9, %v1114_v18  ;;  %v1111_v35 = vadd.f32 %v1088_v57, %v1067_v56  ;;  %v1179_v20 = vmax.f32 %v1167_v50, 0.0 }
 0x17c   :  { %v1170_v12 = vadd.f32 %v1144_v16, %v1113_v26  ;;  %v1178_v11 = vmax.f32 %v1166_v15, 0.0  ;;  %v1169_v0 = vadd.f32 %v1147_v13, %v1112_v63 }
 0x17d   :  { %v1183_v40 = vmax.f32 %v1171_v42, 0.0  ;;  %v1168_v30 = vadd.f32 %v1145_v14, %v1111_v35  ;;  %v1191_v31 = vadd.f32 1.0, %v1179_v20 }
 0x17e   :  { %v1182_v41 = vmax.f32 %v1170_v12, 0.0  ;;  %v1190_v51 = vadd.f32 1.0, %v1178_v11  ;;  %v1181_v8 = vmax.f32 %v1169_v0, 0.0 }
 0x17f   :  { %v1195_v36 = vadd.f32 1.0, %v1183_v40  ;;  %2335 = vlog2.f32 %v1191_v31  ;;  %v1180_v19 = vmax.f32 %v1168_v30, 0.0  ;;  %v3067_v30 = vld [vmem:[%s3891_s0 + $0x8] sm:$0xff] }
 0x180   :  { %v1194_v5 = vadd.f32 1.0, %v1182_v41  ;;  %2337 = vlog2.f32 %v1190_v51  ;;  %v1193_v44 = vadd.f32 1.0, %v1181_v8  ;;  %v3070_v31 = vmul.f32 0.2147516, %v3067_v30  ;;  %v3076_v41 = vld [vmem:[%s3891_s0] sm:$0xff]  ;;  %v3086_v8 = vld [vmem:[%s3891_s0 + $0x18] sm:$0xff] }
 0x181   :  { %2339 = vlog2.f32 %v1195_v36  ;;  %v1192_v54 = vadd.f32 1.0, %v1180_v19  ;;  %v3079_v51 = vmul.f32 0.2147516, %v3076_v41  ;;  %v3089_v36 = vmul.f32 0.2147516, %v3086_v8  ;;  %v3096_v19 = vld [vmem:[%s3891_s0 + $0x10] sm:$0xff] }
 0x182   :  { %2341 = vlog2.f32 %v1194_v5  ;;  %v3099_v5 = vmul.f32 0.2147516, %v3096_v19 }
 0x183   :  { %2343 = vlog2.f32 %v1193_v44  ;;  %v3106_v44 = vld [vmem:[%s3891_s0 + $0x28] sm:$0x1f] }
 0x184   :  { %2345 = vlog2.f32 %v1192_v54  ;;  %v3109_v54 = vmul.f32 0.2147516, %v3106_v44  ;;  %v1407_v53 = vmul.f32 0.23263763, %v3106_v44 }
 0x18c   :  { %v2336_v34 = vpop.eup %2335 }
 0x18d   :  { %v2338_v52 = vpop.eup %2337  ;;  %v1211_v9 = vmul.f32 0.6931472, %v2336_v34  ;;  %v3116_v34 = vld [vmem:[%s3891_s0 + $0x20] sm:$0x1f] }
 0x18e   :  { %v2340_v22 = vpop.eup %2339  ;;  %v1209_v37 = vmul.f32 0.6931472, %v2338_v52  ;;  %v3119_v52 = vmul.f32 0.2147516, %v3116_v34 }
 0x18f   :  { %v2342_v55 = vpop.eup %2341  ;;  %v1227_v49 = vmul.f32 1.442695, %v1211_v9  ;;  %v1219_v28 = vmul.f32 0.6931472, %v2340_v22  ;;  %v3126_v9 = vld [vmem:[%s3891_s0 + $0x38] sm:$0xff] }
 0x190   :  { %v2344_v13 = vpop.eup %2343  ;;  %v1226_v10 = vmul.f32 1.442695, %v1209_v37  ;;  %v1217_v16 = vmul.f32 0.6931472, %v2342_v55  ;;  %v3129_v22 = vmul.f32 0.2147516, %v3126_v9 }
 0x191   :  { %v2346_v46 = vpop.eup %2345  ;;  %v1239_v62 = vmul.f32 0.09147929, %v1227_v49  ;;  %v1215_v3 = vmul.f32 0.6931472, %v2344_v13  ;;  %v1231_v47 = vmul.f32 1.442695, %v1219_v28  ;;  %v3285_v32 = vpop.permute.xlu1 %1278 }
 0x192   :  { %v1238_v33 = vmul.f32 0.09147929, %v1226_v10  ;;  %v1213_v17 = vmul.f32 0.6931472, %v2346_v46  ;;  %v1230_v39 = vmul.f32 1.442695, %v1217_v16  ;;  %v3289_v21 = vpop.permute.xlu0 %1276 }
 0x193   :  { %v1267_v58 = vrot.slane %v1239_v62, 7  ;;  %v1229_v57 = vmul.f32 1.442695, %v1215_v3  ;;  %v1243_v14 = vmul.f32 0.09147929, %v1231_v47  ;;  %v3136_v37 = vld [vmem:[%s3891_s0 + $0x30] sm:$0xff] }
 0x194   :  { %v1266_v18 = vrot.slane %v1238_v33, 7  ;;  %v1228_v56 = vmul.f32 1.442695, %v1213_v17  ;;  %v1242_v63 = vmul.f32 0.09147929, %v1230_v39  ;;  %v3146_v49 = vld [vmem:[%s3891_s0 + $0x48] sm:$0xff] }
 0x195   :  { %1290 = vrot.lane.b32.xlu1 %v1267_v58, %s2460_s4  ;;  %v1241_v50 = vmul.f32 0.09147929, %v1229_v57  ;;  %v1274_v15 = vrot.slane %v1243_v14, 7  ;;  %v3139_v55 = vmul.f32 0.2147516, %v3136_v37  ;;  %v3156_v13 = vld [vmem:[%s3891_s0 + $0x40] sm:$0xff]  ;;  %v3295_v1 = vpop.permute.xlu1 %1282 }
 0x196   :  { %1288 = vrot.lane.b32.xlu0 %v1266_v18, %s2460_s4  ;;  %v1240_v26 = vmul.f32 0.09147929, %v1228_v56  ;;  %v1272_v35 = vrot.slane %v1242_v63, 7  ;;  %v3149_v28 = vmul.f32 0.2147516, %v3146_v49  ;;  %3957 = vst [vmem:[#allocation40_spill] sm:$0xff] %v3285_v32 }
 0x197   :  { %v1270_v42 = vrot.slane %v1241_v50, 7  ;;  %v3159_v10 = vmul.f32 0.2147516, %v3156_v13  ;;  %v3166_v16 = vld [vmem:[%s3891_s0 + $0x58] sm:$0x1f]  ;;  %3958 = vst [vmem:[#allocation41_spill] sm:$0xff] %v3289_v21 }
 0x198   :  { %v1268_v20 = vrot.slane %v1240_v26, 7  ;;  %v3169_v46 = vmul.f32 0.2147516, %v3166_v16  ;;  %v3176_v62 = vld [vmem:[%s3891_s0 + $0x50] sm:$0x1f]  ;;  %3959 = vst [vmem:[#allocation42_spill] sm:$0xff] %v3295_v1 }
 0x199   :  { %v1271_v12 = vsel %vm704_vm4, %v1267_v58, %v1270_v42  ;;  %v1275_v11 = vsel %vm704_vm4, %v1270_v42, %v1274_v15  ;;  %v3179_v3 = vmul.f32 0.2147516, %v3176_v62  ;;  %v1403_v47 = vmul.f32 0.23263763, %v3067_v30 }
 0x19a   :  { %1294 = vrot.lane.b32.xlu1 %v1271_v12, %s2460_s4  ;;  %v1269_v0 = vsel %vm704_vm4, %v1266_v18, %v1268_v20  ;;  %v1273_v40 = vsel %vm704_vm4, %v1268_v20, %v1272_v35  ;;  %v1402_v33 = vmul.f32 0.23263763, %v3076_v41  ;;  %v1405_v17 = vmul.f32 0.23263763, %v3086_v8 }
 0x19b   :  { %1292 = vrot.lane.b32.xlu0 %v1269_v0, %s2460_s4  ;;  %v1404_v39 = vmul.f32 0.23263763, %v3096_v19  ;;  %v3193_v58 = vmul.f32 0.17133518, %v3076_v41  ;;  %v1406_v57 = vmul.f32 0.23263763, %v3116_v34 }
 0x19c   :  { %v3200_v18 = vmul.f32 0.17133518, %v3096_v19  ;;  %v3204_v56 = vmul.f32 0.17133518, %v3067_v30  ;;  %v3209_v14 = vmul.f32 0.17133518, %v3116_v34 }
 0x19d   :  { %v3214_v50 = vmul.f32 0.17133518, %v3086_v8  ;;  %v3219_v63 = vmul.f32 0.17133518, %v3136_v37  ;;  %v3224_v26 = vmul.f32 0.17133518, %v3106_v44 }
 0x19e   :  { %1298 = vrot.lane.b32.xlu1 %v1275_v11, %s2460_s4  ;;  %v3229_v15 = vmul.f32 0.17133518, %v3156_v13  ;;  %v3234_v42 = vmul.f32 0.17133518, %v3126_v9  ;;  %v3239_v35 = vmul.f32 0.17133518, %v3176_v62 }
 0x19f   :  { %1296 = vrot.lane.b32.xlu0 %v1273_v40, %s2460_s4  ;;  %v3244_v20 = vmul.f32 0.17133518, %v3146_v49  ;;  %v1817_v12 = vmul.f32 0.19147032, %v3076_v41  ;;  %v3252_v11 = vmul.f32 0.17133518, %v3166_v16 }
 0x1a0   :  { %v1819_v0 = vmul.f32 0.19147032, %v3096_v19  ;;  %v1818_v40 = vmul.f32 0.19147032, %v3067_v30  ;;  %v1824_v29 = vmul.f32 0.19147032, %v3126_v9 }
 0x1a1   :  { %v1827_v48 = vmul.f32 0.19147032, %v3176_v62  ;;  %v1826_v45 = vmul.f32 0.19147032, %v3146_v49  ;;  %v1828_v38 = vmul.f32 0.19147032, %v3166_v16 }
 0x1a2   :  { %1362 = vrot.lane.b32.xlu1 %v3070_v31, %s2457_s14  ;;  %v1409_v4 = vmul.f32 0.23263763, %v3126_v9  ;;  %v1408_v59 = vmul.f32 0.23263763, %v3136_v37  ;;  %v1411_v43 = vmul.f32 0.23263763, %v3146_v49 }
 0x1a3   :  { %1360 = vrot.lane.b32.xlu0 %v3079_v51, %s2457_s14  ;;  %v1410_v23 = vmul.f32 0.23263763, %v3156_v13  ;;  %v1412_v2 = vmul.f32 0.23263763, %v3176_v62  ;;  %v1334_v21 = vmul.f32 0.16892959, %v3156_v13 }
 0x1a4   :  { %v1748_v27 = vmul.f32 0.13719448, %v3136_v37  ;;  %v1335_v61 = vmul.f32 0.16892959, %v3176_v62 }
 0x1a6   :  { %1366 = vrot.lane.b32.xlu1 %v3089_v36, %s2457_s14 }
 0x1a7   :  { %1364 = vrot.lane.b32.xlu0 %v3099_v5, %s2457_s14 }
 0x1aa   :  { %1370 = vrot.lane.b32.xlu1 %v3109_v54, %s2457_s14 }
 0x1ab   :  { %1368 = vrot.lane.b32.xlu0 %v3119_v52, %s2457_s14 }
 0x1ae   :  { %1374 = vrot.lane.b32.xlu1 %v3129_v22, %s2457_s14 }
 0x1af   :  { %1372 = vrot.lane.b32.xlu0 %v3139_v55, %s2457_s14 }
 0x1b2   :  { %1378 = vrot.lane.b32.xlu1 %v3149_v28, %s2457_s14 }
 0x1b3   :  { %1376 = vrot.lane.b32.xlu0 %v3159_v10, %s2457_s14 }
 0x1b6   :  { %1382 = vrot.lane.b32.xlu1 %v3169_v46, %s2457_s14 }
 0x1b7   :  { %1380 = vrot.lane.b32.xlu0 %v3179_v3, %s2457_s14 }
 0x1ba   :  { %1428 = vrot.lane.b32.xlu1 %v1403_v47, %s2458_s2  ;;  %v1821_v47 = vmul.f32 0.19147032, %v3116_v34 }
 0x1bb   :  { %1426 = vrot.lane.b32.xlu0 %v1402_v33, %s2458_s2  ;;  %v1820_v33 = vmul.f32 0.19147032, %v3086_v8 }
 0x1be   :  { %1432 = vrot.lane.b32.xlu1 %v1405_v17, %s2458_s2  ;;  %v1823_v17 = vmul.f32 0.19147032, %v3136_v37 }
 0x1bf   :  { %1430 = vrot.lane.b32.xlu0 %v1404_v39, %s2458_s2  ;;  %v1822_v39 = vmul.f32 0.19147032, %v3106_v44 }
 0x1c2   :  { %1775 = vrot.lane.b32.xlu1 %v3193_v58, %s2457_s14 }
 0x1c3   :  { %1434 = vrot.lane.b32.xlu0 %v1406_v57, %s2458_s2  ;;  %v1825_v57 = vmul.f32 0.19147032, %v3156_v13 }
 0x1c6   :  { %1779 = vrot.lane.b32.xlu1 %v3200_v18, %s2457_s14 }
 0x1c7   :  { %1777 = vrot.lane.b32.xlu0 %v3204_v56, %s2457_s14 }
 0x1ca   :  { %1783 = vrot.lane.b32.xlu1 %v3209_v14, %s2457_s14 }
 0x1cb   :  { %1781 = vrot.lane.b32.xlu0 %v3214_v50, %s2457_s14 }
 0x1ce   :  { %1787 = vrot.lane.b32.xlu1 %v3219_v63, %s2457_s14 }
 0x1cf   :  { %1785 = vrot.lane.b32.xlu0 %v3224_v26, %s2457_s14 }
 0x1d2   :  { %1791 = vrot.lane.b32.xlu1 %v3229_v15, %s2457_s14 }
 0x1d3   :  { %1789 = vrot.lane.b32.xlu0 %v3234_v42, %s2457_s14 }
 0x1d6   :  { %1795 = vrot.lane.b32.xlu1 %v3239_v35, %s2457_s14 }
 0x1d7   :  { %1793 = vrot.lane.b32.xlu0 %v3244_v20, %s2457_s14 }
 0x1da   :  { %1841 = vrot.lane.b32.xlu1 %v1817_v12, %s2458_s2 }
 0x1db   :  { %1797 = vrot.lane.b32.xlu0 %v3252_v11, %s2457_s14  ;;  %s2461_s14 = smov 124  }
 0x1de   :  { %1845 = vrot.lane.b32.xlu1 %v1819_v0, %s2458_s2 }
 0x1df   :  { %1843 = vrot.lane.b32.xlu0 %v1818_v40, %s2458_s2 }
 0x1e2   :  { %1849 = vrot.lane.b32.xlu1 %v1821_v47, %s2458_s2 }
 0x1e3   :  { %1847 = vrot.lane.b32.xlu0 %v1820_v33, %s2458_s2 }
 0x1e6   :  { %1853 = vrot.lane.b32.xlu1 %v1823_v17, %s2458_s2 }
 0x1e7   :  { %1851 = vrot.lane.b32.xlu0 %v1822_v39, %s2458_s2 }
 0x1ea   :  { %1857 = vrot.lane.b32.xlu1 %v1825_v57, %s2458_s2 }
 0x1eb   :  { %1855 = vrot.lane.b32.xlu0 %v1824_v29, %s2458_s2 }
 0x1ee   :  { %1861 = vrot.lane.b32.xlu1 %v1827_v48, %s2458_s2 }
 0x1ef   :  { %1859 = vrot.lane.b32.xlu0 %v1826_v45, %s2458_s2 }
 0x1f2   :  { %1436 = vrot.lane.b32.xlu1 %v1407_v53, %s2458_s2  ;;  %v1413_v53 = vmul.f32 0.23263763, %v3166_v16 }
 0x1f3   :  { %1863 = vrot.lane.b32.xlu0 %v1828_v38, %s2458_s2 }
 0x1f6   :  { %1440 = vrot.lane.b32.xlu1 %v1409_v4, %s2458_s2  ;;  %v3297_v4 = vpop.permute.xlu0 %1280 }
 0x1f7   :  { %1438 = vrot.lane.b32.xlu0 %v1408_v59, %s2458_s2  ;;  %3960 = vst [vmem:[#allocation43_spill] sm:$0xff] %v3297_v4  ;;  %v3302_v59 = vpop.permute.xlu1 %1286  ;;  %v1514_v4 = vmul.f32 0.16892959, %v3146_v49 }
 0x1f8   :  { %3961 = vst [vmem:[#allocation44_spill] sm:$0xff] %v3302_v59 }
 0x1fa   :  { %1444 = vrot.lane.b32.xlu1 %v1411_v43, %s2458_s2  ;;  %v3305_v43 = vpop.permute.xlu0 %1284 }
 0x1fb   :  { %1442 = vrot.lane.b32.xlu0 %v1410_v23, %s2458_s2  ;;  %3962 = vst [vmem:[#allocation45_spill] sm:$0xff] %v3305_v43 }
 0x1fe   :  { %1448 = vrot.lane.b32.xlu1 %v1413_v53, %s2458_s2 }
 0x1ff   :  { %1446 = vrot.lane.b32.xlu0 %v1412_v2, %s2458_s2 }
 0x202   :  { %1885 = vrot.lane.b32.xlu1 %v1818_v40, %s2459_s3 }
 0x203   :  { %1883 = vrot.lane.b32.xlu0 %v1817_v12, %s2459_s3 }
 0x206   :  { %1889 = vrot.lane.b32.xlu1 %v1820_v33, %s2459_s3 }
 0x207   :  { %v3308_v23 = vpop.permute.xlu1 %1290  ;;  %1887 = vrot.lane.b32.xlu0 %v1819_v0, %s2459_s3 }
 0x208   :  { %3963 = vst [vmem:[#allocation46_spill] sm:$0xff] %v3308_v23  ;;  %v3311_v1 = vpop.permute.xlu0 %1288  ;;  %v1747_v23 = vmul.f32 0.13719448, %v3116_v34 }
 0x209   :  { %3964 = vst [vmem:[#allocation47_spill] sm:$0xff] %v3311_v1 }
 0x20a   :  { %1893 = vrot.lane.b32.xlu1 %v1822_v39, %s2459_s3 }
 0x20b   :  { %1891 = vrot.lane.b32.xlu0 %v1821_v47, %s2459_s3 }
 0x20c   :  { %v3315_v2 = vpop.permute.xlu1 %1294 }
 0x20d   :  { %3965 = vst [vmem:[#allocation48_spill] sm:$0xff] %v3315_v2  ;;  %v3317_v40 = vpop.permute.xlu0 %1292  ;;  %v1513_v2 = vmul.f32 0.16892959, %v3126_v9 }
 0x20e   :  { %3966 = vst [vmem:[#allocation49_spill] sm:$0xff] %v3317_v40  ;;  %1897 = vrot.lane.b32.xlu1 %v1824_v29, %s2459_s3 }
 0x20f   :  { %1895 = vrot.lane.b32.xlu0 %v1823_v17, %s2459_s3 }
 0x210   :  { %v3321_v12 = vpop.permute.xlu1 %1298 }
 0x211   :  { %3967 = vst [vmem:[#allocation50_spill] sm:$0xff] %v3321_v12  ;;  %v3323_v33 = vpop.permute.xlu0 %1296 }
 0x212   :  { %3968 = vst [vmem:[#allocation51_spill] sm:$0xff] %v3323_v33  ;;  %1901 = vrot.lane.b32.xlu1 %v1826_v45, %s2459_s3 }
 0x213   :  { %1899 = vrot.lane.b32.xlu0 %v1825_v57, %s2459_s3 }
 0x214   :  { %v3327_v0 = vpop.permute.xlu1 %1362 }
 0x215   :  { %v3329_v39 = vpop.permute.xlu0 %1360 }
 0x216   :  { %1905 = vrot.lane.b32.xlu1 %v1828_v38, %s2459_s3 }
 0x217   :  { %1903 = vrot.lane.b32.xlu0 %v1827_v48, %s2459_s3 }
 0x218   :  { %v3333_v47 = vpop.permute.xlu1 %1366 }
 0x219   :  { %v3335_v29 = vpop.permute.xlu0 %1364 }
 0x21a   :  { %1470 = vrot.lane.b32.xlu1 %v3070_v31, %s2459_s3 }
 0x21b   :  { %1468 = vrot.lane.b32.xlu0 %v3079_v51, %s2459_s3 }
 0x21c   :  { %v3341_v45 = vpop.permute.xlu1 %1370 }
 0x21d   :  { %v3343_v17 = vpop.permute.xlu0 %1368 }
 0x21e   :  { %1474 = vrot.lane.b32.xlu1 %v3089_v36, %s2459_s3 }
 0x21f   :  { %1472 = vrot.lane.b32.xlu0 %v3099_v5, %s2459_s3 }
 0x220   :  { %v3349_v38 = vpop.permute.xlu1 %1374 }
 0x221   :  { %v3351_v48 = vpop.permute.xlu0 %1372 }
 0x222   :  { %1478 = vrot.lane.b32.xlu1 %v3109_v54, %s2459_s3 }
 0x223   :  { %1476 = vrot.lane.b32.xlu0 %v3119_v52, %s2459_s3 }
 0x224   :  { %v3357_v31 = vpop.permute.xlu1 %1378 }
 0x225   :  { %v3359_v51 = vpop.permute.xlu0 %1376 }
 0x226   :  { %1482 = vrot.lane.b32.xlu1 %v3129_v22, %s2459_s3 }
 0x227   :  { %1480 = vrot.lane.b32.xlu0 %v3139_v55, %s2459_s3 }
 0x228   :  { %v3365_v36 = vpop.permute.xlu1 %1382 }
 0x229   :  { %v3367_v5 = vpop.permute.xlu0 %1380 }
 0x22a   :  { %1486 = vrot.lane.b32.xlu1 %v3149_v28, %s2459_s3 }
 0x22b   :  { %1484 = vrot.lane.b32.xlu0 %v3159_v10, %s2459_s3 }
 0x22c   :  { %v3373_v54 = vpop.permute.xlu1 %1428 }
 0x22d   :  { %v3375_v52 = vpop.permute.xlu0 %1426 }
 0x22e   :  { %1490 = vrot.lane.b32.xlu1 %v3169_v46, %s2459_s3 }
 0x22f   :  { %1488 = vrot.lane.b32.xlu0 %v3179_v3, %s2459_s3  ;;  %s2463_s3 = smov 2  }
 0x230   :  { %v3381_v22 = vpop.permute.xlu1 %1432 }
 0x231   :  { %v3383_v55 = vpop.permute.xlu0 %1430 }
 0x232   :  { %1927 = vrot.lane.b32.xlu1 %v3204_v56, %s2461_s14 }
 0x233   :  { %1925 = vrot.lane.b32.xlu0 %v3193_v58, %s2461_s14 }
 0x234   :  { %v3389_v28 = vpop.permute.xlu1 %1775 }
 0x235   :  { %v3391_v10 = vpop.permute.xlu0 %1434 }
 0x236   :  { %1931 = vrot.lane.b32.xlu1 %v3214_v50, %s2461_s14 }
 0x237   :  { %1929 = vrot.lane.b32.xlu0 %v3200_v18, %s2461_s14 }
 0x238   :  { %v3397_v46 = vpop.permute.xlu1 %1779 }
 0x239   :  { %v3399_v3 = vpop.permute.xlu0 %1777 }
 0x23a   :  { %1935 = vrot.lane.b32.xlu1 %v3224_v26, %s2461_s14 }
 0x23b   :  { %1933 = vrot.lane.b32.xlu0 %v3209_v14, %s2461_s14  ;;  %v1510_v14 = vmul.f32 0.16892959, %v3067_v30 }
 0x23c   :  { %v1784_v58 = vpop.permute.xlu1 %1783 }
 0x23d   :  { %v3405_v56 = vpop.permute.xlu0 %1781 }
 0x23e   :  { %1939 = vrot.lane.b32.xlu1 %v3234_v42, %s2461_s14 }
 0x23f   :  { %1937 = vrot.lane.b32.xlu0 %v3219_v63, %s2461_s14  ;;  %v3421_v63 = vmul.f32 0.16892959, %v3076_v41 }
 0x240   :  { %v1788_v18 = vpop.permute.xlu1 %1787 }
 0x241   :  { %v1786_v50 = vpop.permute.xlu0 %1785 }
 0x242   :  { %1943 = vrot.lane.b32.xlu1 %v3244_v20, %s2461_s14  ;;  %v1511_v20 = vmul.f32 0.16892959, %v3086_v8  ;;  %v1801_v59 = vsel %vm142_vm0, %v1784_v58, %v1786_v50  ;;  %v1515_v58 = vmul.f32 0.16892959, %v3166_v16 }
 0x243   :  { %1941 = vrot.lane.b32.xlu0 %v3229_v15, %s2461_s14  ;;  %v1813_v32 = vadd.f32 %v1801_v59, %v1747_v23  ;;  %v1749_v59 = vmul.f32 0.13719448, %v3156_v13  ;;  %v1745_v13 = vmul.f32 0.13719448, %v3076_v41 }
 0x244   :  { %v1792_v26 = vpop.permute.xlu1 %1791 }
 0x245   :  { %v1790_v57 = vpop.permute.xlu0 %1789 }
 0x246   :  { %1947 = vrot.lane.b32.xlu1 %v3252_v11, %s2461_s14  ;;  %v3430_v11 = vmul.f32 0.16892959, %v3096_v19  ;;  %v1802_v6 = vsel %vm142_vm0, %v1788_v18, %v1790_v57 }
 0x247   :  { %1945 = vrot.lane.b32.xlu0 %v3239_v35, %s2461_s14  ;;  %v1512_v35 = vmul.f32 0.16892959, %v3106_v44  ;;  %v1814_v25 = vadd.f32 %v1802_v6, %v1748_v27  ;;  %v1386_v6 = vsel %vm142_vm0, %v3343_v17, %v3341_v45 }
 0x248   :  { %v1796_v42 = vpop.permute.xlu1 %1795 }
 0x249   :  { %v1794_v53 = vpop.permute.xlu0 %1793 }
 0x24a   :  { %1530 = vrot.lane.b32.xlu1 %v1510_v14, %s2461_s14  ;;  %v1332_v14 = vmul.f32 0.16892959, %v3116_v34  ;;  %v1803_v60 = vsel %vm142_vm0, %v1792_v26, %v1794_v53  ;;  %v1750_v26 = vmul.f32 0.13719448, %v3176_v62 }
 0x24b   :  { %1528 = vrot.lane.b32.xlu0 %v3421_v63, %s2461_s14 }
 0x24c   :  { %v3427_v15 = vpop.permute.xlu1 %1841  ;;  %v1398_v45 = vadd.f32 %v1386_v6, %v1332_v14 }
 0x24d   :  { %v1798_v33 = vpop.permute.xlu0 %1797 }
 0x24e   :  { %1534 = vrot.lane.b32.xlu1 %v1511_v20, %s2461_s14  ;;  %v1333_v20 = vmul.f32 0.16892959, %v3136_v37  ;;  %v1804_v53 = vsel %vm142_vm0, %v1796_v42, %v1798_v33  ;;  %v1387_v42 = vsel %vm142_vm0, %v3351_v48, %v3349_v38  ;;  %v1970_v48 = vmul.f32 0.13719448, %v3126_v9 }
 0x24f   :  { %1532 = vrot.lane.b32.xlu0 %v3430_v11, %s2461_s14  ;;  %v1816_v41 = vadd.f32 %v1804_v53, %v1750_v26  ;;  %v1799_v9 = vsel %vm142_vm0, %v3389_v28, %v3399_v3 }
 0x250   :  { %v3436_v12 = vpop.permute.xlu1 %1845 }
 0x251   :  { %v3439_v40 = vpop.permute.xlu0 %1843 }
 0x252   :  { %1538 = vrot.lane.b32.xlu1 %v1512_v35, %s2461_s14 }
 0x253   :  { %1536 = vrot.lane.b32.xlu0 %v1332_v14, %s2461_s14  ;;  %v1969_v14 = vmul.f32 0.13719448, %v3106_v44 }
 0x254   :  { %v1850_v1 = vpop.permute.xlu1 %1849 }
 0x255   :  { %v3446_v43 = vpop.permute.xlu0 %1847 }
 0x256   :  { %1542 = vrot.lane.b32.xlu1 %v1513_v2, %s2461_s14 }
 0x257   :  { %1540 = vrot.lane.b32.xlu0 %v1333_v20, %s2461_s14 }
 0x258   :  { %v1854_v35 = vpop.permute.xlu1 %1853 }
 0x259   :  { %v1852_v7 = vpop.permute.xlu0 %1851 }
 0x25a   :  { %v1867_v34 = vsel %vm452_vm1, %v1850_v1, %v1852_v7  ;;  %1546 = vrot.lane.b32.xlu1 %v1514_v4, %s2461_s14  ;;  %v1967_v7 = vmul.f32 0.13719448, %v3067_v30  ;;  %v1815_v4 = vadd.f32 %v1803_v60, %v1749_v59  ;;  %v1746_v60 = vmul.f32 0.13719448, %v3096_v19 }
 0x25b   :  { %v3458_v2 = vadd.f32 %v1867_v34, %v1813_v32  ;;  %1544 = vrot.lane.b32.xlu0 %v1334_v21, %s2461_s14 }
 0x25c   :  { %v1858_v50 = vpop.permute.xlu1 %1857 }
 0x25d   :  { %v1856_v37 = vpop.permute.xlu0 %1855 }
 0x25e   :  { %v1868_v18 = vsel %vm452_vm1, %v1854_v35, %v1856_v37  ;;  %1550 = vrot.lane.b32.xlu1 %v1515_v58, %s2461_s14 }
 0x25f   :  { %v3467_v1 = vadd.f32 %v1868_v18, %v1814_v25  ;;  %1548 = vrot.lane.b32.xlu0 %v1335_v61, %s2461_s14  ;;  %v1968_v25 = vmul.f32 0.13719448, %v3086_v8 }
 0x260   :  { %v1862_v32 = vpop.permute.xlu1 %1861 }
 0x261   :  { %v1860_v57 = vpop.permute.xlu0 %1859 }
 0x262   :  { %v1869_v35 = vsel %vm452_vm1, %v1858_v50, %v1860_v57  ;;  %1987 = vrot.lane.b32.xlu1 %v1967_v7, %s2462_s30  ;;  %v1399_v50 = vadd.f32 %v1387_v42, %v1333_v20  ;;  %v1389_v20 = vsel %vm142_vm0, %v3367_v5, %v3365_v36  ;;  %v1865_v36 = vsel %vm452_vm1, %v3427_v15, %v3439_v40 }
 0x263   :  { %v3479_v30 = vadd.f32 %v1869_v35, %v1815_v4  ;;  %1985 = vrot.lane.b32.xlu0 %v1745_v13, %s2462_s30  ;;  %v1811_v57 = vadd.f32 %v1799_v9, %v1745_v13  ;;  %v1866_v40 = vsel %vm452_vm1, %v3436_v12, %v3446_v43 }
 0x264   :  { %v1437_v17 = vpop.permute.xlu1 %1436 }
 0x265   :  { %v1452_v62 = vsel %vm452_vm1, %v3391_v10, %v1437_v17  ;;  %v1864_v33 = vpop.permute.xlu0 %1863  ;;  %v1388_v10 = vsel %vm142_vm0, %v3359_v51, %v3357_v31  ;;  %v1971_v31 = vmul.f32 0.13719448, %v3146_v49  ;;  %v1972_v49 = vmul.f32 0.13719448, %v3166_v16 }
 0x266   :  { %v3488_v34 = vadd.f32 %v1452_v62, %v1398_v45  ;;  %v1870_v8 = vsel %vm452_vm1, %v1862_v32, %v1864_v33  ;;  %1991 = vrot.lane.b32.xlu1 %v1968_v25, %s2462_s30  ;;  %v1400_v7 = vadd.f32 %v1388_v10, %v1334_v21  ;;  %v1877_v28 = vadd.f32 %v1865_v36, %v1811_v57 }
 0x267   :  { %v1882_v58 = vadd.f32 %v1870_v8, %v1816_v41  ;;  %1989 = vrot.lane.b32.xlu0 %v1746_v60, %s2462_s30 }
 0x268   :  { %v1441_v19 = vpop.permute.xlu1 %1440 }
 0x269   :  { %v1439_v37 = vpop.permute.xlu0 %1438 }
 0x26a   :  { %v1453_v38 = vsel %vm452_vm1, %v1439_v37, %v1441_v19  ;;  %1995 = vrot.lane.b32.xlu1 %v1969_v14, %s2462_s30 }
 0x26b   :  { %v3500_v18 = vadd.f32 %v1453_v38, %v1399_v50  ;;  %1993 = vrot.lane.b32.xlu0 %v1747_v23, %s2462_s30  ;;  %v1401_v23 = vadd.f32 %v1389_v20, %v1335_v61  ;;  %v1800_v61 = vsel %vm142_vm0, %v3397_v46, %v3405_v56 }
 0x26c   :  { %v1445_v44 = vpop.permute.xlu1 %1444  ;;  %v1812_v16 = vadd.f32 %v1800_v61, %v1746_v60 }
 0x26d   :  { %v1443_v32 = vpop.permute.xlu0 %1442 }
 0x26e   :  { %v1454_v6 = vsel %vm452_vm1, %v1443_v32, %v1445_v44  ;;  %1999 = vrot.lane.b32.xlu1 %v1970_v48, %s2462_s30  ;;  %v1878_v35 = vadd.f32 %v1866_v40, %v1812_v16 }
 0x26f   :  { %v3509_v51 = vadd.f32 %v1454_v6, %v1400_v7  ;;  %1997 = vrot.lane.b32.xlu0 %v1748_v27, %s2462_s30 }
 0x270   :  { %v1449_v21 = vpop.permute.xlu1 %1448 }
 0x271   :  { %v1447_v4 = vpop.permute.xlu0 %1446 }
 0x272   :  { %v1455_v5 = vsel %vm452_vm1, %v1447_v4, %v1449_v21  ;;  %2003 = vrot.lane.b32.xlu1 %v1971_v31, %s2462_s30 }
 0x273   :  { %v3521_v53 = vadd.f32 %v1455_v5, %v1401_v23  ;;  %2001 = vrot.lane.b32.xlu0 %v1749_v59, %s2462_s30 }
 0x274   :  { %v1886_v27 = vpop.permute.xlu1 %1885 }
 0x275   :  { %v1884_v3 = vpop.permute.xlu0 %1883 }
 0x276   :  { %v1907_v15 = vsel %vm960_vm5, %v1884_v3, %v1886_v27  ;;  %2007 = vrot.lane.b32.xlu1 %v1972_v49, %s2462_s30  ;;  %v1450_v3 = vsel %vm452_vm1, %v3375_v52, %v3373_v54 }
 0x277   :  { %v3532_v13 = vadd.f32 %v1907_v15, %v1877_v28  ;;  %2005 = vrot.lane.b32.xlu0 %v1750_v26, %s2462_s30  ;;  %v1384_v28 = vsel %vm142_vm0, %v3329_v39, %v3327_v0  ;;  %v1451_v0 = vsel %vm452_vm1, %v3383_v55, %v3381_v22 }
 0x278   :  { %v1890_v59 = vpop.permute.xlu1 %1889  ;;  %v1396_v15 = vadd.f32 %v1384_v28, %v3421_v63 }
 0x279   :  { %v1888_v25 = vpop.permute.xlu0 %1887 }
 0x27a   :  { %v1908_v46 = vsel %vm960_vm5, %v1888_v25, %v1890_v59  ;;  %v1462_v25 = vadd.f32 %v1450_v3, %v1396_v15 }
 0x27b   :  { %v3536_v56 = vadd.f32 %v1908_v46, %v1878_v35  ;;  %v1385_v35 = vsel %vm142_vm0, %v3335_v29, %v3333_v47 }
 0x27c   :  { %v1894_v45 = vpop.permute.xlu1 %1893  ;;  %v1397_v52 = vadd.f32 %v1385_v35, %v3430_v11 }
 0x27d   :  { %v1892_v17 = vpop.permute.xlu0 %1891 }
 0x27e   :  { %v1909_v43 = vsel %vm960_vm5, %v1892_v17, %v1894_v45 }
 0x27f   :  { %v3540_v12 = vadd.f32 %v1909_v43, %v3458_v2  ;;  %v1463_v43 = vadd.f32 %v1451_v0, %v1397_v52 }
 0x280   :  { %v1898_v41 = vpop.permute.xlu1 %1897 }
 0x281   :  { %v1896_v60 = vpop.permute.xlu0 %1895 }
 0x282   :  { %v1910_v62 = vsel %vm960_vm5, %v1896_v60, %v1898_v41 }
 0x283   :  { %v3544_v26 = vadd.f32 %v1910_v62, %v3467_v1 }
 0x284   :  { %v1902_v33 = vpop.permute.xlu1 %1901 }
 0x285   :  { %v1900_v42 = vpop.permute.xlu0 %1899 }
 0x286   :  { %v1911_v8 = vsel %vm960_vm5, %v1900_v42, %v1902_v33 }
 0x287   :  { %v3548_v14 = vadd.f32 %v1911_v8, %v3479_v30 }
 0x288   :  { %v1906_v19 = vpop.permute.xlu1 %1905 }
 0x289   :  { %v1904_v50 = vpop.permute.xlu0 %1903 }
 0x28a   :  { %v1912_v37 = vsel %vm960_vm5, %v1904_v50, %v1906_v19 }
 0x28b   :  { %v3551_v2 = vadd.f32 %v1912_v37, %v1882_v58 }
 0x28c   :  { %v1471_v10 = vpop.permute.xlu1 %1470 }
 0x28d   :  { %v1469_v38 = vpop.permute.xlu0 %1468 }
 0x28e   :  { %v1492_v59 = vsel %vm960_vm5, %v1469_v38, %v1471_v10 }
 0x28f   :  { %v1504_v39 = vadd.f32 %v1492_v59, %v1462_v25 }
 0x290   :  { %v1475_v48 = vpop.permute.xlu1 %1474 }
 0x291   :  { %v1473_v44 = vpop.permute.xlu0 %1472 }
 0x292   :  { %v1493_v45 = vsel %vm960_vm5, %v1473_v44, %v1475_v48 }
 0x293   :  { %v1505_v55 = vadd.f32 %v1493_v45, %v1463_v43 }
 0x294   :  { %v1479_v7 = vpop.permute.xlu1 %1478 }
 0x295   :  { %v1477_v1 = vpop.permute.xlu0 %1476 }
 0x296   :  { %v1494_v47 = vsel %vm960_vm5, %v1477_v1, %v1479_v7 }
 0x297   :  { %v1506_v50 = vadd.f32 %v1494_v47, %v3488_v34 }
 0x298   :  { %v1483_v32 = vpop.permute.xlu1 %1482 }
 0x299   :  { %v1481_v20 = vpop.permute.xlu0 %1480 }
 0x29a   :  { %v1495_v29 = vsel %vm960_vm5, %v1481_v20, %v1483_v32 }
 0x29b   :  { %v1507_v37 = vadd.f32 %v1495_v29, %v3500_v18 }
 0x29c   :  { %v1487_v6 = vpop.permute.xlu1 %1486 }
 0x29d   :  { %v1485_v31 = vpop.permute.xlu0 %1484 }
 0x29e   :  { %v1496_v60 = vsel %vm960_vm5, %v1485_v31, %v1487_v6 }
 0x29f   :  { %v1508_v10 = vadd.f32 %v1496_v60, %v3509_v51 }
 0x2a0   :  { %v1491_v9 = vpop.permute.xlu1 %1490 }
 0x2a1   :  { %v1489_v21 = vpop.permute.xlu0 %1488 }
 0x2a2   :  { %v1497_v33 = vsel %vm960_vm5, %v1489_v21, %v1491_v9 }
 0x2a3   :  { %v3592_v44 = vadd.f32 %v1497_v33, %v3521_v53 }
 0x2a4   :  { %v1928_v30 = vpop.permute.xlu1 %1927 }
 0x2a5   :  { %v1926_v23 = vpop.permute.xlu0 %1925 }
 0x2a6   :  { %v1949_v11 = vsel %vm1552_vm7, %v1926_v23, %v1928_v30 }
 0x2a7   :  { %v3595_v7 = vadd.f32 %v1949_v11, %v3532_v13 }
 0x2a8   :  { %v1932_v4 = vpop.permute.xlu1 %1931 }
 0x2a9   :  { %v1930_v36 = vpop.permute.xlu0 %1929 }
 0x2aa   :  { %v1950_v1 = vsel %vm1552_vm7, %v1930_v36, %v1932_v4 }
 0x2ac   :  { %v1936_v5 = vpop.permute.xlu1 %1935 }
 0x2ad   :  { %v1934_v49 = vpop.permute.xlu0 %1933 }
 0x2ae   :  { %v1951_v13 = vsel %vm1552_vm7, %v1934_v49, %v1936_v5 }
 0x2af   :  { %v3608_v5 = vadd.f32 %v1951_v13, %v3540_v12 }
 0x2b0   :  { %v3553_v58 = vpop.permute.xlu1 %1939 }
 0x2b1   :  { %v3555_v57 = vpop.permute.xlu0 %1937 }
 0x2b2   :  { %v1952_v12 = vsel %vm1552_vm7, %v3555_v57, %v3553_v58 }
 0x2b4   :  { %v3557_v61 = vpop.permute.xlu1 %1943 }
 0x2b5   :  { %v3559_v27 = vpop.permute.xlu0 %1941 }
 0x2b8   :  { %v3567_v40 = vpop.permute.xlu1 %1947 }
 0x2b9   :  { %v3570_v16 = vpop.permute.xlu0 %1945 }
 0x2bc   :  { %v1531_v46 = vpop.permute.xlu1 %1530 }
 0x2bd   :  { %v1529_v54 = vpop.permute.xlu0 %1528 }
 0x2be   :  { %v1553_v63 = vsel %vm1552_vm7, %v1529_v54, %v1531_v46 }
 0x2bf   :  { %v1565_v17 = vadd.f32 %v1553_v63, %v1504_v39 }
 0x2c0   :  { %v1535_v41 = vpop.permute.xlu1 %1534 }
 0x2c1   :  { %v1575_v62 = vmul.f32 5.36879, %v1565_v17  ;;  %v1533_v22 = vpop.permute.xlu0 %1532  ;;  %v1571_v8 = vmul.f32 4.22324, %v1565_v17  ;;  %v1605_v19 = vmul.f32 5.815941, %v1565_v17  ;;  %v3605_v17 = vadd.f32 %v1950_v1, %v3536_v56 }
 0x2c2   :  { %v1554_v42 = vsel %vm1552_vm7, %v1533_v22, %v1535_v41 }
 0x2c3   :  { %v1566_v38 = vadd.f32 %v1554_v42, %v1505_v55  ;;  %v1587_v32 = vrot.slane %v1575_v62, 1  ;;  %v1617_v18 = vrot.slane %v1605_v19, 2  ;;  %v1635_v21 = vrot.slane %v1575_v62, 3 }
 0x2c4   :  { %v1539_v48 = vpop.permute.xlu1 %1538  ;;  %v1662_v51 = vrot.slane %v1571_v8, 4  ;;  %v1953_v42 = vsel %vm1552_vm7, %v3559_v27, %v3557_v61 }
 0x2c5   :  { %v1537_v20 = vpop.permute.xlu0 %1536  ;;  %v1572_v6 = vmul.f32 4.22324, %v1566_v38  ;;  %v1576_v31 = vmul.f32 5.36879, %v1566_v38  ;;  %v1606_v9 = vmul.f32 5.815941, %v1566_v38 }
 0x2c6   :  { %v1555_v34 = vsel %vm1552_vm7, %v1537_v20, %v1539_v48 }
 0x2c7   :  { %v1567_v30 = vadd.f32 %v1555_v34, %v1506_v50  ;;  %v1588_v23 = vrot.slane %v1576_v31, 1  ;;  %v1618_v28 = vrot.slane %v1606_v9, 2  ;;  %v1636_v53 = vrot.slane %v1576_v31, 3 }
 0x2c8   :  { %v1663_v3 = vrot.slane %v1572_v6, 4  ;;  %v1543_v15 = vpop.permute.xlu1 %1542 }
 0x2c9   :  { %v1577_v59 = vmul.f32 5.36879, %v1567_v30  ;;  %v1607_v4 = vmul.f32 5.815941, %v1567_v30  ;;  %v1653_v36 = vmul.f32 4.22324, %v1567_v30  ;;  %v1541_v35 = vpop.permute.xlu0 %1540  ;;  %v1589_v25 = vsel %vm197_vm2, %v1587_v32, %v1588_v23 }
 0x2ca   :  { %v1619_v46 = vsel %vm575_vm3, %v1617_v18, %v1618_v28  ;;  %v1637_v0 = vsel %vm1127_vm6, %v1635_v21, %v1636_v53  ;;  %v1664_v39 = vsel %vm1661_vm8, %v1662_v51, %v1663_v3  ;;  %v1601_v54 = vadd.f32 %v1589_v25, %v1571_v8 }
 0x2cb   :  { %v1590_v52 = vrot.slane %v1577_v59, 1  ;;  %v1620_v63 = vrot.slane %v1607_v4, 2  ;;  %v1638_v45 = vrot.slane %v1577_v59, 3  ;;  %v1665_v49 = vrot.slane %v1653_v36, 4 }
 0x2cc   :  { %v1556_v43 = vsel %vm1552_vm7, %v1541_v35, %v1543_v15  ;;  %v1547_v41 = vpop.permute.xlu1 %1546  ;;  %v1631_v47 = vadd.f32 %v1619_v46, %v1601_v54 }
 0x2cd   :  { %v1591_v29 = vsel %vm197_vm2, %v1588_v23, %v1590_v52  ;;  %v1621_v60 = vsel %vm575_vm3, %v1618_v28, %v1620_v63  ;;  %v1639_v62 = vsel %vm1127_vm6, %v1636_v53, %v1638_v45  ;;  %v1545_v22 = vpop.permute.xlu0 %1544  ;;  %v1666_v33 = vsel %vm1661_vm8, %v1663_v3, %v1665_v49 }
 0x2ce   :  { %v1602_v55 = vadd.f32 %v1591_v29, %v1572_v6  ;;  %v1568_v56 = vadd.f32 %v1556_v43, %v1507_v37  ;;  %v1557_v11 = vsel %vm1552_vm7, %v1545_v22, %v1547_v41  ;;  %v1649_v8 = vadd.f32 %v1637_v0, %v1631_v47 }
 0x2cf   :  { %v1569_v19 = vadd.f32 %v1557_v11, %v1508_v10  ;;  %v1954_v63 = vsel %vm1552_vm7, %v3570_v16, %v3567_v40  ;;  %v1964_v11 = vadd.f32 %v1952_v12, %v3544_v26 }
 0x2d0   :  { %v1632_v50 = vadd.f32 %v1621_v60, %v1602_v55  ;;  %v1573_v38 = vmul.f32 4.22324, %v1568_v56  ;;  %v1578_v48 = vmul.f32 5.36879, %v1568_v56  ;;  %v1608_v1 = vmul.f32 5.815941, %v1568_v56  ;;  %v1551_v32 = vpop.permute.xlu1 %1550 }
 0x2d1   :  { %v1574_v20 = vmul.f32 4.22324, %v1569_v19  ;;  %v1579_v6 = vmul.f32 5.36879, %v1569_v19  ;;  %v1609_v37 = vmul.f32 5.815941, %v1569_v19  ;;  %v1549_v31 = vpop.permute.xlu0 %1548  ;;  %v1676_v9 = vadd.f32 %v1664_v39, %v1649_v8 }
 0x2d2   :  { %v1650_v34 = vadd.f32 %v1639_v62, %v1632_v50  ;;  %v1592_v18 = vrot.slane %v1578_v48, 1  ;;  %v1622_v21 = vrot.slane %v1608_v1, 2  ;;  %v1640_v58 = vrot.slane %v1578_v48, 3 }
 0x2d3   :  { %v1667_v57 = vrot.slane %v1573_v38, 4  ;;  %v1593_v51 = vrot.slane %v1579_v6, 1  ;;  %v1623_v30 = vrot.slane %v1609_v37, 2  ;;  %v1641_v61 = vrot.slane %v1579_v6, 3 }
 0x2d4   :  { %v1677_v27 = vadd.f32 %v1666_v33, %v1650_v34  ;;  %v1668_v10 = vrot.slane %v1574_v20, 4  ;;  %v1558_v23 = vsel %vm1552_vm7, %v1549_v31, %v1551_v32  ;;  %v1988_v28 = vpop.permute.xlu1 %1987  ;;  %v1680_v53 = vmax.f32 %v1676_v9, 0.0 }
 0x2d5   :  { %v1594_v3 = vsel %vm197_vm2, %v1592_v18, %v1593_v51  ;;  %v1624_v15 = vsel %vm575_vm3, %v1622_v21, %v1623_v30  ;;  %v1642_v13 = vsel %vm1127_vm6, %v1640_v58, %v1641_v61  ;;  %v1570_v59 = vadd.f32 %v1558_v23, %v3592_v44  ;;  %v1986_v4 = vpop.permute.xlu0 %1985 }
 0x2d6   :  { %v1603_v36 = vadd.f32 %v1594_v3, %v1573_v38  ;;  %v1669_v35 = vsel %vm1661_vm8, %v1667_v57, %v1668_v10  ;;  %v2010_v25 = vsel %vm2009_vm9, %v1986_v4, %v1988_v28  ;;  %v1684_v46 = vadd.f32 1.0, %v1680_v53 }
 0x2d7   :  { %v1580_v0 = vmul.f32 5.36879, %v1570_v59  ;;  %v1610_v39 = vmul.f32 5.815941, %v1570_v59  ;;  %v1654_v54 = vmul.f32 4.22324, %v1570_v59  ;;  %v2022_v52 = vadd.f32 %v2010_v25, %v3595_v7 }
 0x2d8   :  { %v1633_v45 = vadd.f32 %v1624_v15, %v1603_v36  ;;  %v1992_v49 = vpop.permute.xlu1 %1991  ;;  %2347 = vlog2.f32 %v1684_v46  ;;  %v1681_v44 = vmax.f32 %v1677_v27, 0.0  ;;  %v1965_v8 = vadd.f32 %v1953_v42, %v3548_v14 }
 0x2d9   :  { %v1595_v43 = vrot.slane %v1580_v0, 1  ;;  %v1625_v41 = vrot.slane %v1610_v39, 2  ;;  %v1643_v47 = vrot.slane %v1580_v0, 3  ;;  %v1670_v29 = vrot.slane %v1654_v54, 4  ;;  %v1990_v60 = vpop.permute.xlu0 %1989 }
 0x2da   :  { %v1651_v62 = vadd.f32 %v1642_v13, %v1633_v45  ;;  %v2028_v22 = vmul.f32 4.9390016, %v2022_v52  ;;  %v2032_v55 = vmul.f32 6.1680665, %v2022_v52  ;;  %v2062_v33 = vmul.f32 6.892932, %v2022_v52 }
 0x2db   :  { %v1596_v7 = vsel %vm197_vm2, %v1593_v51, %v1595_v43  ;;  %v1626_v56 = vsel %vm575_vm3, %v1623_v30, %v1625_v41  ;;  %v1644_v40 = vsel %vm1127_vm6, %v1641_v61, %v1643_v47  ;;  %v1671_v16 = vsel %vm1661_vm8, %v1668_v10, %v1670_v29 }
 0x2dc   :  { %v3640_v19 = vadd.f32 %v1954_v63, %v3551_v2  ;;  %v1604_v50 = vadd.f32 %v1596_v7, %v1574_v20  ;;  %v1996_v38 = vpop.permute.xlu1 %1995  ;;  %v2044_v48 = vrot.slane %v2032_v55, 1  ;;  %v2074_v1 = vrot.slane %v2062_v33, 2 }
 0x2dd   :  { %v2011_v32 = vsel %vm2009_vm9, %v1990_v60, %v1992_v49  ;;  %v1994_v6 = vpop.permute.xlu0 %1993  ;;  %v1685_v37 = vadd.f32 1.0, %v1681_v44  ;;  %v3645_v18 = vadd.f32 %v1669_v35, %v1651_v62  ;;  %v2092_v26 = vrot.slane %v2062_v33, 3 }
 0x2de   :  { %v1634_v31 = vadd.f32 %v1626_v56, %v1604_v50  ;;  %v2023_v9 = vadd.f32 %v2011_v32, %v3605_v17  ;;  %v2012_v34 = vsel %vm2009_vm9, %v1994_v6, %v1996_v38  ;;  %v2110_v14 = vrot.slane %v2032_v55, 4 }
 0x2df   :  { %v2137_v12 = vrot.slane %v2028_v22, 5  ;;  %v2024_v2 = vadd.f32 %v2012_v34, %v3608_v5  ;;  %2349 = vlog2.f32 %v1685_v37 }
 0x2e0   :  { %v1652_v42 = vadd.f32 %v1644_v40, %v1634_v31  ;;  %v2029_v20 = vmul.f32 4.9390016, %v2023_v9  ;;  %v2033_v21 = vmul.f32 6.1680665, %v2023_v9  ;;  %v2063_v58 = vmul.f32 6.892932, %v2023_v9  ;;  %v2000_v57 = vpop.permute.xlu1 %1999 }
 0x2e1   :  { %v2034_v51 = vmul.f32 6.1680665, %v2024_v2  ;;  %v2064_v30 = vmul.f32 6.892932, %v2024_v2  ;;  %v2128_v61 = vmul.f32 4.9390016, %v2024_v2  ;;  %v1998_v27 = vpop.permute.xlu0 %1997 }
 0x2e2   :  { %v3648_v17 = vadd.f32 %v1671_v16, %v1652_v42  ;;  %v2045_v10 = vrot.slane %v2033_v21, 1  ;;  %v2075_v23 = vrot.slane %v2063_v58, 2  ;;  %v2093_v28 = vrot.slane %v2063_v58, 3 }
 0x2e3   :  { %v2111_v53 = vrot.slane %v2033_v21, 4  ;;  %v2138_v3 = vrot.slane %v2029_v20, 5  ;;  %v2047_v15 = vrot.slane %v2034_v51, 1  ;;  %v2077_v13 = vrot.slane %v2064_v30, 2 }
 0x2e4   :  { %v2046_v5 = vsel %vm197_vm2, %v2044_v48, %v2045_v10  ;;  %v2076_v59 = vsel %vm575_vm3, %v2074_v1, %v2075_v23  ;;  %v2094_v4 = vsel %vm1127_vm6, %v2092_v26, %v2093_v28  ;;  %v2095_v36 = vrot.slane %v2064_v30, 3  ;;  %v2004_v35 = vpop.permute.xlu1 %2003 }
 0x2e5   :  { %v2348_v25 = vpop.eup %2347  ;;  %v2058_v46 = vadd.f32 %v2046_v5, %v2028_v22  ;;  %v2112_v0 = vsel %vm1661_vm8, %v2110_v14, %v2111_v53  ;;  %v2139_v39 = vsel %vm2136_vm10, %v2137_v12, %v2138_v3  ;;  %v2048_v54 = vsel %vm197_vm2, %v2045_v10, %v2047_v15  ;;  %v2002_v52 = vpop.permute.xlu0 %2001 }
 0x2e6   :  { %v2059_v63 = vadd.f32 %v2048_v54, %v2029_v20  ;;  %v2078_v45 = vsel %vm575_vm3, %v2075_v23, %v2077_v13  ;;  %v2096_v49 = vsel %vm1127_vm6, %v2093_v28, %v2095_v36  ;;  %v2113_v44 = vrot.slane %v2034_v51, 4 }
 0x2e7   :  { %v2088_v43 = vadd.f32 %v2076_v59, %v2058_v46  ;;  %v2140_v41 = vrot.slane %v2128_v61, 5  ;;  %v2013_v47 = vsel %vm2009_vm9, %v1998_v27, %v2000_v57  ;;  %v2014_v29 = vsel %vm2009_vm9, %v2002_v52, %v2004_v35 }
 0x2e8   :  { %v2089_v60 = vadd.f32 %v2078_v45, %v2059_v63  ;;  %v2114_v62 = vsel %vm1661_vm8, %v2111_v53, %v2113_v44  ;;  %v2025_v22 = vadd.f32 %v2013_v47, %v1964_v11  ;;  %v2026_v55 = vadd.f32 %v2014_v29, %v1965_v8  ;;  %v2008_v11 = vpop.permute.xlu1 %2007 }
 0x2e9   :  { %v2106_v33 = vadd.f32 %v2094_v4, %v2088_v43  ;;  %v2141_v7 = vsel %vm2136_vm10, %v2138_v3, %v2140_v41  ;;  %v1689_v56 = vmul.f32 0.6931472, %v2348_v25  ;;  %v1682_v40 = vmax.f32 %v3645_v18, 0.0  ;;  %v2006_v8 = vpop.permute.xlu0 %2005 }
 0x2ea   :  { %v2107_v16 = vadd.f32 %v2096_v49, %v2089_v60  ;;  %v2030_v50 = vmul.f32 4.9390016, %v2025_v22  ;;  %v2035_v38 = vmul.f32 6.1680665, %v2025_v22  ;;  %v2065_v48 = vmul.f32 6.892932, %v2025_v22 }
 0x2eb   :  { %v2124_v1 = vadd.f32 %v2112_v0, %v2106_v33  ;;  %v2031_v32 = vmul.f32 4.9390016, %v2026_v55  ;;  %v2036_v6 = vmul.f32 6.1680665, %v2026_v55  ;;  %v2066_v37 = vmul.f32 6.892932, %v2026_v55 }
 0x2ec   :  { %v2125_v31 = vadd.f32 %v2114_v62, %v2107_v16  ;;  %v2049_v9 = vrot.slane %v2035_v38, 1  ;;  %v2079_v34 = vrot.slane %v2065_v48, 2  ;;  %v2097_v26 = vrot.slane %v2065_v48, 3  ;;  %v2350_v20 = vpop.eup %2349 }
 0x2ed   :  { %v2115_v14 = vrot.slane %v2035_v38, 4  ;;  %v2142_v12 = vrot.slane %v2030_v50, 5  ;;  %v2050_v2 = vrot.slane %v2036_v6, 1  ;;  %v2080_v42 = vrot.slane %v2066_v37, 2 }
 0x2ee   :  { %v2152_v18 = vadd.f32 %v2141_v7, %v2125_v31  ;;  %v2098_v21 = vrot.slane %v2066_v37, 3  ;;  %v2116_v58 = vrot.slane %v2036_v6, 4  ;;  %v2143_v57 = vrot.slane %v2031_v32, 5 }
 0x2ef   :  { %v2051_v51 = vsel %vm197_vm2, %v2049_v9, %v2050_v2  ;;  %v2081_v30 = vsel %vm575_vm3, %v2079_v34, %v2080_v42  ;;  %v2015_v61 = vsel %vm2009_vm9, %v2006_v8, %v2008_v11  ;;  %v1696_v27 = vmul.f32 1.442695, %v1689_v56 }
 0x2f0   :  { %v2060_v10 = vadd.f32 %v2051_v51, %v2030_v50  ;;  %v2099_v23 = vsel %vm1127_vm6, %v2097_v26, %v2098_v21  ;;  %v2117_v28 = vsel %vm1661_vm8, %v2115_v14, %v2116_v58  ;;  %v2144_v53 = vsel %vm2136_vm10, %v2142_v12, %v2143_v57 }
 0x2f1   :  { %v2027_v3 = vadd.f32 %v2015_v61, %v3640_v19  ;;  %v1700_v15 = vmul.f32 0.16192912, %v1696_v27  ;;  %v1691_v13 = vmul.f32 0.6931472, %v2350_v20  ;;  %v1686_v5 = vadd.f32 1.0, %v1682_v40 }
 0x2f2   :  { %v2090_v59 = vadd.f32 %v2081_v30, %v2060_v10  ;;  %v1683_v4 = vmax.f32 %v3648_v17, 0.0  ;;  %v2151_v36 = vadd.f32 %v2139_v39, %v2124_v1  ;;  %v2156_v35 = vmax.f32 %v2152_v18, 0.0 }
 0x2f3   :  { %v2037_v25 = vmul.f32 6.1680665, %v2027_v3  ;;  %v2067_v46 = vmul.f32 6.892932, %v2027_v3  ;;  %v2129_v0 = vmul.f32 4.9390016, %v2027_v3  ;;  %2351 = vlog2.f32 %v1686_v5 }
 0x2f4   :  { %v2108_v54 = vadd.f32 %v2099_v23, %v2090_v59  ;;  %v1709_v52 = vrot.slane %v1700_v15, 6  ;;  %v1697_v63 = vmul.f32 1.442695, %v1691_v13  ;;  %v1687_v45 = vadd.f32 1.0, %v1683_v4 }
 0x2f5   :  { %v2052_v49 = vrot.slane %v2037_v25, 1  ;;  %v2082_v44 = vrot.slane %v2067_v46, 2  ;;  %v2100_v43 = vrot.slane %v2067_v46, 3  ;;  %v2118_v19 = vrot.slane %v2037_v25, 4 }
 0x2f6   :  { %v2126_v41 = vadd.f32 %v2117_v28, %v2108_v54  ;;  %v2145_v47 = vrot.slane %v2129_v0, 5  ;;  %1715 = vrot.lane.b32.xlu0 %v1709_v52, %s2463_s3  ;;  %v1701_v17 = vmul.f32 0.16192912, %v1697_v63  ;;  %2353 = vlog2.f32 %v1687_v45  ;;  %v3969_v45 = vld [vmem:[#allocation17_spill] sm:$0xff] }
 0x2f7   :  { %v2053_v39 = vsel %vm197_vm2, %v2050_v2, %v2052_v49  ;;  %v2083_v29 = vsel %vm575_vm3, %v2080_v42, %v2082_v44  ;;  %v2101_v60 = vsel %vm1127_vm6, %v2098_v21, %v2100_v43  ;;  %v2119_v62 = vsel %vm1661_vm8, %v2116_v58, %v2118_v19  ;;  %v3970_v44 = vld [vmem:[#allocation19_spill] sm:$0xff]  ;;  %v3971_v43 = vld [vmem:[#allocation18_spill] sm:$0xff] }
 0x2f8   :  { %v2061_v22 = vadd.f32 %v2053_v39, %v2031_v32  ;;  %v2146_v55 = vsel %vm2136_vm10, %v2143_v57, %v2145_v47  ;;  %v1710_v33 = vrot.slane %v1701_v17, 6  ;;  %v2155_v7 = vmax.f32 %v2151_v36, 0.0  ;;  %v3972_v17 = vld [vmem:[#allocation7_spill] sm:$0xff] }
 0x2f9   :  { %v2160_v56 = vadd.f32 1.0, %v2156_v35  ;;  %v2153_v40 = vadd.f32 %v2144_v53, %v2126_v41  ;;  %v144_v49 = vsel %vm142_vm0, %v3969_v45, %v2727_v24  ;;  %v143_v19 = vsel %vm142_vm0, %v3971_v43, %v3970_v44  ;;  %v2424_v41 = vld [vmem:[%s3891_s0] sm:$0xff] }
 0x2fa   :  { %v2091_v16 = vadd.f32 %v2083_v29, %v2061_v22  ;;  %1719 = vrot.lane.b32.xlu0 %v1710_v33, %s2463_s3  ;;  %v1711_v50 = vsel %vm1708_vm11, %v1709_v52, %v1710_v33  ;;  %v2159_v38 = vadd.f32 1.0, %v2155_v7  ;;  %v2423_v52 = vld [vmem:[%s3891_s0 + $0x8] sm:$0xff]  ;;  %v21_v47 = vmax.f32 %v2424_v41, 0.0  ;;  %v3973_v29 = vld [vmem:[#allocation8_spill] sm:$0xff]  ;;  %v3975_v22 = vld [vmem:[#allocation21_spill] sm:$0xff] }
 0x2fb   :  { %1717 = vrot.lane.b32.xlu1 %v1711_v50, %s2463_s3  ;;  %2355 = vlog2.f32 %v2160_v56  ;;  %v2157_v48 = vmax.f32 %v2153_v40, 0.0  ;;  %v22_v63 = vmax.f32 %v2423_v52, 0.0  ;;  %v164_v39 = vadd.f32 %v2727_v24, %v3972_v17  ;;  %v3976_v33 = vld [vmem:[#allocation5_spill] sm:$0xff]  ;;  %v3977_v56 = vld [vmem:[#allocation6_spill] sm:$0xff]  ;;  %v3989_v52 = vld [vmem:[#allocation11_spill] sm:$0xff] }
 0x2fc   :  { %v2109_v1 = vadd.f32 %v2101_v60, %v2091_v16  ;;  %2357 = vlog2.f32 %v2159_v38  ;;  %v162_v60 = vadd.f32 %v3970_v44, %v3973_v29  ;;  %v163_v7 = vadd.f32 %v144_v49, %v3976_v33  ;;  %v3978_v38 = vld [vmem:[#allocation10_spill] sm:$0xff]  ;;  %v3990_v41 = vld [vmem:[#allocation16_spill] sm:$0xff]  ;;  %v2430_v17 = vld [vmem:[%s3891_s0 + $0x10] sm:$0xff] }
 0x2fd   :  { %v2161_v6 = vadd.f32 1.0, %v2157_v48  ;;  %v161_v40 = vadd.f32 %v143_v19, %v3977_v56  ;;  %v34_v16 = vadd.f32 1.0, %v22_v63  ;;  %v33_v50 = vadd.f32 1.0, %v21_v47  ;;  %v3991_v56 = vld [vmem:[#allocation15_spill] sm:$0xff] }
 0x2fe   :  { %v2127_v32 = vadd.f32 %v2119_v62, %v2109_v1  ;;  %v3974_v62 = vld [vmem:[#allocation20_spill] sm:$0xff]  ;;  %v2425_v1 = vld [vmem:[%s3891_s0 + $0x30] sm:$0xff] }
 0x2ff   :  { %2359 = vlog2.f32 %v2161_v6  ;;  %v27_v24 = vmax.f32 %v2425_v1, 0.0  ;;  %v2426_v6 = vld [vmem:[%s3891_s0 + $0x38] sm:$0xff] }
 0x300   :  { %v2352_v37 = vpop.eup %2351  ;;  %v2154_v31 = vadd.f32 %v2146_v55, %v2127_v32  ;;  %v145_v55 = vsel %vm142_vm0, %v3975_v22, %v3974_v62  ;;  %v28_v32 = vmax.f32 %v2426_v6, 0.0 }
 0x301   :  { %v1693_v9 = vmul.f32 0.6931472, %v2352_v37  ;;  %v165_v48 = vadd.f32 %v145_v55, %v3978_v38  ;;  %v3720_v37 = vmul.f32 2.0, %v164_v39  ;;  %v23_v39 = vmax.f32 %v2430_v17, 0.0 }
 0x302   :  { %v2158_v34 = vmax.f32 %v2154_v31, 0.0  ;;  %v174_v31 = vmul.f32 2.0, %v162_v60 }
 0x303   :  { %v2354_v26 = vpop.eup %2353  ;;  %v1698_v11 = vmul.f32 1.442695, %v1693_v9  ;;  %v3979_v9 = vld [vmem:[#allocation9_spill] sm:$0xff] }
 0x304   :  { %v1695_v8 = vmul.f32 0.6931472, %v2354_v26  ;;  %v2162_v14 = vadd.f32 1.0, %v2158_v34  ;;  %v166_v34 = vadd.f32 %v3974_v62, %v3979_v9  ;;  %v175_v26 = vmul.f32 2.0, %v163_v7 }
 0x305   :  { %v1702_v12 = vmul.f32 0.16192912, %v1698_v11  ;;  %v173_v11 = vmul.f32 2.0, %v161_v40 }
 0x306   :  { %v1699_v2 = vmul.f32 1.442695, %v1695_v8  ;;  %2361 = vlog2.f32 %v2162_v14  ;;  %v3980_v8 = vld [vmem:[#allocation24_spill] sm:$0xff]  ;;  %v3981_v14 = vld [vmem:[#allocation25_spill] sm:$0xff] }
 0x307   :  { %v1712_v42 = vrot.slane %v1702_v12, 6  ;;  %v147_v12 = vsel %vm142_vm0, %v3981_v14, %v3980_v8  ;;  %2363 = vlog2.f32 %v34_v16 }
 0x308   :  { %v2356_v20 = vpop.eup %2355  ;;  %v1703_v18 = vmul.f32 0.16192912, %v1699_v2  ;;  %2365 = vlog2.f32 %v33_v50  ;;  %v177_v2 = vmul.f32 2.0, %v165_v48  ;;  %v2431_v48 = vld [vmem:[%s3891_s0 + $0x48] sm:$0xff] }
 0x309   :  { %v2358_v21 = vpop.eup %2357  ;;  %1721 = vrot.lane.b32.xlu1 %v1712_v42, %s2463_s3  ;;  %v2166_v58 = vmul.f32 0.6931472, %v2356_v20  ;;  %v3983_v20 = vld [vmem:[#allocation23_spill] sm:$0xff]  ;;  %v30_v1 = vmax.f32 %v2431_v48, 0.0 }
 0x30a   :  { %v1713_v57 = vrot.slane %v1703_v18, 6  ;;  %v2164_v51 = vmul.f32 0.6931472, %v2358_v21  ;;  %v39_v21 = vadd.f32 1.0, %v27_v24 }
 0x30b   :  { %v2172_v30 = vmul.f32 1.442695, %v2166_v58  ;;  %v40_v58 = vadd.f32 1.0, %v28_v32 }
 0x30c   :  { %v2360_v61 = vpop.eup %2359  ;;  %v1714_v27 = vsel %vm1708_vm11, %v1712_v42, %v1713_v57  ;;  %v2171_v10 = vmul.f32 1.442695, %v2164_v51  ;;  %v3982_v42 = vld [vmem:[#allocation22_spill] sm:$0xff]  ;;  %v201_v51 = vrot.slane %v174_v31, 1 }
 0x30d   :  { %1725 = vrot.lane.b32.xlu1 %v1713_v57, %s2463_s3  ;;  %1723 = vrot.lane.b32.xlu0 %v1714_v27, %s2463_s3  ;;  %v2176_v23 = vmul.f32 0.21949081, %v2172_v30  ;;  %v2168_v28 = vmul.f32 0.6931472, %v2360_v61  ;;  %v146_v18 = vsel %vm142_vm0, %v3983_v20, %v3982_v42  ;;  %v202_v57 = vrot.slane %v3720_v37, 1  ;;  %v3984_v61 = vld [vmem:[#allocation14_spill] sm:$0xff] }
 0x30e   :  { %v2175_v53 = vmul.f32 0.21949081, %v2171_v10  ;;  %v178_v30 = vmul.f32 2.0, %v166_v34  ;;  %v169_v27 = vadd.f32 %v147_v12, %v3984_v61  ;;  %v199_v10 = vrot.slane %v175_v26, 1 }
 0x30f   :  { %v2184_v3 = vrot.slane %v2176_v23, 6  ;;  %v2173_v15 = vmul.f32 1.442695, %v2168_v28  ;;  %v198_v23 = vrot.slane %v173_v11, 1  ;;  %v3985_v28 = vld [vmem:[#allocation13_spill] sm:$0xff]  ;;  %v168_v63 = vadd.f32 %v3982_v42, %v3989_v52 }
 0x310   :  { %v2183_v13 = vrot.slane %v2175_v53, 6  ;;  %v170_v53 = vadd.f32 %v3980_v8, %v3985_v28  ;;  %2367 = vlog2.f32 %v40_v58  ;;  %v203_v45 = vsel %vm197_vm2, %v201_v51, %v202_v57 }
 0x311   :  { %v2177_v5 = vmul.f32 0.21949081, %v2173_v15  ;;  %v206_v49 = vrot.slane %v178_v30, 1  ;;  %v3750_v44 = vmul.f32 2.0, %v169_v27  ;;  %2369 = vlog2.f32 %v39_v21 }
 0x312   :  { %2189 = vrot.lane.b32.xlu0 %v2183_v13, %s2463_s3  ;;  %v2185_v59 = vsel %vm1708_vm11, %v2183_v13, %v2184_v3  ;;  %v3986_v13 = vld [vmem:[#allocation12_spill] sm:$0xff]  ;;  %v200_v43 = vsel %vm197_vm2, %v198_v23, %v199_v10  ;;  %v3753_v19 = vmul.f32 2.0, %v170_v53  ;;  %v231_v55 = vadd.f32 %v203_v45, %v174_v31 }
 0x313   :  { %v2362_v4 = vpop.eup %2361  ;;  %2191 = vrot.lane.b32.xlu1 %v2185_v59, %s2463_s3  ;;  %v2186_v36 = vrot.slane %v2177_v5, 6  ;;  %v167_v5 = vadd.f32 %v146_v18, %v3986_v13  ;;  %v3987_v59 = vld [vmem:[#allocation26_spill] sm:$0xff]  ;;  %v180_v7 = vmul.f32 2.0, %v168_v63  ;;  %v230_v16 = vadd.f32 %v200_v43, %v173_v11  ;;  %v2432_v11 = vld [vmem:[%s3891_s0 + $0x40] sm:$0xff] }
 0x314   :  { %v2170_v35 = vmul.f32 0.6931472, %v2362_v4  ;;  %v3988_v4 = vld [vmem:[#allocation27_spill] sm:$0xff]  ;;  %v172_v40 = vadd.f32 %v3987_v59, %v3991_v56  ;;  %v207_v50 = vsel %vm197_vm2, %v202_v57, %v206_v49  ;;  %v209_v38 = vrot.slane %v3750_v44, 1  ;;  %v3770_v9 = vpop.eup %2363 }
 0x315   :  { %v179_v29 = vmul.f32 2.0, %v167_v5  ;;  %v212_v6 = vrot.slane %v3753_v19, 1  ;;  %v35_v31 = vadd.f32 1.0, %v23_v39  ;;  %v29_v14 = vmax.f32 %v2432_v11, 0.0  ;;  %v2366_v12 = vpop.eup %2365 }
 0x316   :  { %2193 = vrot.lane.b32.xlu0 %v2184_v3, %s2463_s3  ;;  %v2174_v25 = vmul.f32 1.442695, %v2170_v35  ;;  %v2427_v3 = vld [vmem:[%s3891_s0 + $0x28] sm:$0x1f]  ;;  %v2428_v35 = vld [vmem:[%s3891_s0 + $0x18] sm:$0xff]  ;;  %v243_v42 = vmax.f32 %v231_v55, 0.0  ;;  %v233_v20 = vadd.f32 %v207_v50, %v3720_v37  ;;  %v235_v51 = vadd.f32 %v206_v49, %v178_v30 }
 0x317   :  { %2195 = vrot.lane.b32.xlu1 %v2186_v36, %s2463_s3  ;;  %v26_v15 = vmax.f32 %v2427_v3, 0.0  ;;  %v208_v8 = vrot.slane %v179_v29, 1  ;;  %v184_v18 = vmul.f32 2.0, %v172_v40  ;;  %v242_v21 = vmax.f32 %v230_v16, 0.0  ;;  %v2433_v30 = vld [vmem:[%s3891_s0 + $0x58] sm:$0x1f] }
 0x318   :  { %v2178_v46 = vmul.f32 0.21949081, %v2174_v25  ;;  %v24_v25 = vmax.f32 %v2428_v35, 0.0  ;;  %v42_v57 = vadd.f32 1.0, %v30_v1  ;;  %v41_v23 = vadd.f32 1.0, %v29_v14 }
 0x319   :  { %v38_v22 = vadd.f32 1.0, %v26_v15  ;;  %v210_v58 = vsel %vm197_vm2, %v208_v8, %v209_v38  ;;  %v255_v28 = vadd.f32 1.0, %v243_v42  ;;  %v245_v53 = vmax.f32 %v233_v20, 0.0 }
 0x31a   :  { %v2187_v0 = vrot.slane %v2178_v46, 6  ;;  %v2429_v46 = vld [vmem:[%s3891_s0 + $0x20] sm:$0x1f]  ;;  %v36_v60 = vadd.f32 1.0, %v24_v25  ;;  %v236_v3 = vadd.f32 %v210_v58, %v179_v29  ;;  %v216_v37 = vrot.slane %v184_v18, 1 }
 0x31b   :  { %2371 = vlog2.f32 %v38_v22  ;;  %v254_v13 = vadd.f32 1.0, %v242_v21  ;;  %v257_v52 = vadd.f32 1.0, %v245_v53  ;;  %v46_v16 = vmul.f32 0.6931472, %v2366_v12 }
 0x31c   :  { %2199 = vrot.lane.b32.xlu1 %v2187_v0, %s2463_s3  ;;  %v2188_v54 = vsel %vm1708_vm11, %v2186_v36, %v2187_v0  ;;  %v148_v36 = vsel %vm142_vm0, %v3988_v4, %v3987_v59  ;;  %v25_v0 = vmax.f32 %v2429_v46, 0.0  ;;  %2373 = vlog2.f32 %v36_v60 }
 0x31d   :  { %2197 = vrot.lane.b32.xlu0 %v2188_v54, %s2463_s3  ;;  %v204_v54 = vrot.slane %v177_v2, 1  ;;  %v171_v47 = vadd.f32 %v148_v36, %v3990_v41  ;;  %2375 = vlog2.f32 %v35_v31  ;;  %v2368_v15 = vpop.eup %2367  ;;  %v32_v59 = vmax.f32 %v2433_v30, 0.0 }
 0x31e   :  { %v37_v62 = vadd.f32 1.0, %v25_v0  ;;  %v2370_v4 = vpop.eup %2369  ;;  %v247_v36 = vmax.f32 %v235_v51, 0.0  ;;  %v2434_v0 = vld [vmem:[%s3891_s0 + $0x50] sm:$0x1f]  ;;  %v248_v63 = vmax.f32 %v236_v3, 0.0  ;;  %v217_v45 = vsel %vm197_vm2, %v212_v6, %v216_v37  ;;  %s2464_s0 = smov [#allocation2]  }
 0x31f   :  { %v205_v33 = vsel %vm197_vm2, %v199_v10, %v204_v54  ;;  %v234_v24 = vadd.f32 %v204_v54, %v177_v2  ;;  %v3768_v32 = vmul.f32 2.0, %v171_v47  ;;  %v211_v2 = vrot.slane %v180_v7, 1 }
 0x320   :  { %v232_v34 = vadd.f32 %v205_v33, %v175_v26  ;;  %2377 = vlog2.f32 %v37_v62  ;;  %v31_v54 = vmax.f32 %v2434_v0, 0.0  ;;  %v44_v41 = vadd.f32 1.0, %v32_v59 }
 0x321   :  { %v246_v26 = vmax.f32 %v234_v24, 0.0  ;;  %v213_v61 = vsel %vm197_vm2, %v211_v2, %v212_v6  ;;  %v214_v27 = vrot.slane %v3768_v32, 1  ;;  %2379 = vlog2.f32 %v42_v57 }
 0x322   :  { %v244_v10 = vmax.f32 %v232_v34, 0.0  ;;  %v237_v5 = vadd.f32 %v213_v61, %v180_v7  ;;  %2381 = vlog2.f32 %v41_v23  ;;  %v259_v47 = vadd.f32 1.0, %v247_v36 }
 0x323   :  { %v258_v35 = vadd.f32 1.0, %v246_v26  ;;  %v215_v25 = vsel %vm197_vm2, %v209_v38, %v214_v27  ;;  %2383 = vlog2.f32 %v255_v28  ;;  %v239_v17 = vadd.f32 %v217_v45, %v3753_v19 }
 0x324   :  { %v256_v46 = vadd.f32 1.0, %v244_v10  ;;  %2385 = vlog2.f32 %v254_v13  ;;  %v249_v49 = vmax.f32 %v237_v5, 0.0  ;;  %v238_v43 = vadd.f32 %v215_v25, %v3750_v44 }
 0x325   :  { %2387 = vlog2.f32 %v258_v35  ;;  %v43_v39 = vadd.f32 1.0, %v31_v54  ;;  %v260_v60 = vadd.f32 1.0, %v248_v63  ;;  %v241_v33 = vadd.f32 %v216_v37, %v184_v18 }
 0x326   :  { %2389 = vlog2.f32 %v256_v46  ;;  %v261_v62 = vadd.f32 1.0, %v249_v49  ;;  %v250_v22 = vmax.f32 %v238_v43, 0.0  ;;  %v251_v7 = vmax.f32 %v239_v17, 0.0 }
 0x327   :  { %2391 = vlog2.f32 %v257_v52  ;;  %v240_v56 = vadd.f32 %v214_v27, %v3768_v32  ;;  %v48_v44 = vmul.f32 0.6931472, %v3770_v9  ;;  %v60_v19 = vmul.f32 0.6931472, %v2368_v15 }
 0x328   :  { %v2372_v29 = vpop.eup %2371  ;;  %2393 = vlog2.f32 %v44_v41  ;;  %v262_v50 = vadd.f32 1.0, %v250_v22  ;;  %v253_v48 = vmax.f32 %v241_v33, 0.0  ;;  %v58_v1 = vmul.f32 0.6931472, %v2370_v4 }
 0x329   :  { %v2374_v55 = vpop.eup %2373  ;;  %2395 = vlog2.f32 %v259_v47  ;;  %v263_v6 = vadd.f32 1.0, %v251_v7  ;;  %v252_v31 = vmax.f32 %v240_v56, 0.0  ;;  %v71_v34 = vmul.f32 1.442695, %v48_v44 }
 0x32a   :  { %2397 = vlog2.f32 %v43_v39  ;;  %v2376_v40 = vpop.eup %2375  ;;  %v56_v8 = vmul.f32 0.6931472, %v2372_v29  ;;  %v70_v14 = vmul.f32 1.442695, %v46_v16  ;;  %v77_v32 = vmul.f32 1.442695, %v60_v19 }
 0x32b   :  { %2399 = vlog2.f32 %v260_v60  ;;  %v52_v42 = vmul.f32 0.6931472, %v2374_v55  ;;  %v50_v20 = vmul.f32 0.6931472, %v2376_v40  ;;  %v265_v18 = vadd.f32 1.0, %v253_v48 }
 0x32c   :  { %2401 = vlog2.f32 %v261_v62  ;;  %v76_v21 = vmul.f32 1.442695, %v58_v1  ;;  %v264_v57 = vadd.f32 1.0, %v252_v31  ;;  %v83_v51 = vmul.f32 -0.346195, %v71_v34 }
 0x32d   :  { %v2378_v38 = vpop.eup %2377  ;;  %2403 = vlog2.f32 %v262_v50  ;;  %v75_v26 = vmul.f32 1.442695, %v56_v8  ;;  %v82_v27 = vmul.f32 -0.346195, %v70_v14  ;;  %v3791_v10 = vmul.f32 -0.346195, %v77_v32 }
 0x32e   :  { %v2380_v24 = vpop.eup %2379  ;;  %v54_v2 = vmul.f32 0.6931472, %v2378_v38  ;;  %2405 = vlog2.f32 %v263_v6  ;;  %v73_v23 = vmul.f32 1.442695, %v52_v42  ;;  %v72_v3 = vmul.f32 1.442695, %v50_v20 }
 0x32f   :  { %v2382_v11 = vpop.eup %2381  ;;  %2407 = vlog2.f32 %v265_v18  ;;  %v3793_v5 = vmul.f32 -0.346195, %v76_v21  ;;  %v64_v30 = vmul.f32 0.6931472, %v2380_v24  ;;  %v3795_v4 = vmul.f32 -0.346195, %v75_v26 }
 0x330   :  { %v2384_v9 = vpop.eup %2383  ;;  %v74_v37 = vmul.f32 1.442695, %v54_v2  ;;  %2409 = vlog2.f32 %v264_v57  ;;  %v62_v35 = vmul.f32 0.6931472, %v2382_v11  ;;  %v85_v46 = vmul.f32 -0.346195, %v73_v23 }
 0x331   :  { %v2386_v12 = vpop.eup %2385  ;;  %v269_v13 = vmul.f32 0.6931472, %v2384_v9  ;;  %v84_v45 = vmul.f32 -0.346195, %v72_v3  ;;  %v79_v17 = vmul.f32 1.442695, %v64_v30 }
 0x332   :  { %v2388_v58 = vpop.eup %2387  ;;  %v267_v53 = vmul.f32 0.6931472, %v2386_v12  ;;  %v86_v49 = vmul.f32 -0.346195, %v74_v37  ;;  %v78_v29 = vmul.f32 1.442695, %v62_v35 }
 0x333   :  { %v2390_v61 = vpop.eup %2389  ;;  %v275_v36 = vmul.f32 0.6931472, %v2388_v58  ;;  %v291_v41 = vmul.f32 1.442695, %v269_v13  ;;  %v3799_v1 = vmul.f32 -0.346195, %v79_v17 }
 0x334   :  { %v2392_v28 = vpop.eup %2391  ;;  %v271_v0 = vmul.f32 0.6931472, %v2390_v61  ;;  %v290_v63 = vmul.f32 1.442695, %v267_v53  ;;  %v3797_v48 = vmul.f32 -0.346195, %v78_v29 }
 0x335   :  { %v2394_v15 = vpop.eup %2393  ;;  %v273_v54 = vmul.f32 0.6931472, %v2392_v28  ;;  %v294_v39 = vmul.f32 1.442695, %v275_v36  ;;  %v303_v19 = vmul.f32 -0.12735786, %v291_v41 }
 0x336   :  { %v2396_v59 = vpop.eup %2395  ;;  %v68_v60 = vmul.f32 0.6931472, %v2394_v15  ;;  %v292_v22 = vmul.f32 1.442695, %v271_v0  ;;  %v302_v56 = vmul.f32 -0.12735786, %v290_v63 }
 0x337   :  { %v2398_v25 = vpop.eup %2397  ;;  %v277_v47 = vmul.f32 0.6931472, %v2396_v59  ;;  %v293_v55 = vmul.f32 1.442695, %v273_v54  ;;  %v306_v38 = vmul.f32 -0.12735786, %v294_v39  ;;  %v315_v12 = vadd.f32 %v303_v19, %v83_v51 }
 0x338   :  { %v2400_v52 = vpop.eup %2399  ;;  %v66_v33 = vmul.f32 0.6931472, %v2398_v25  ;;  %v304_v6 = vmul.f32 -0.12735786, %v292_v22  ;;  %v81_v34 = vmul.f32 1.442695, %v68_v60  ;;  %v314_v18 = vadd.f32 %v302_v56, %v82_v27 }
 0x339   :  { %v2402_v43 = vpop.eup %2401  ;;  %v279_v44 = vmul.f32 0.6931472, %v2400_v52  ;;  %v295_v50 = vmul.f32 1.442695, %v277_v47  ;;  %v305_v31 = vmul.f32 -0.12735786, %v293_v55  ;;  %v318_v28 = vadd.f32 %v306_v38, %v86_v49 }
 0x33a   :  { %v281_v40 = vmul.f32 0.6931472, %v2402_v43  ;;  %v2404_v16 = vpop.eup %2403  ;;  %v3992_v11 = vld [vmem:[#allocation28_spill] sm:$0xff]  ;;  %v3993_v14 = vld [vmem:[#allocation29_spill] sm:$0xff]  ;;  %v80_v58 = vmul.f32 1.442695, %v66_v33  ;;  %v316_v36 = vadd.f32 %v304_v6, %v84_v45 }
 0x33b   :  { %v2406_v24 = vpop.eup %2405  ;;  %v750_v32 = vsel %vm749_vm12, %v3993_v14, %v3992_v11  ;;  %v296_v42 = vmul.f32 1.442695, %v279_v44  ;;  %v283_v20 = vmul.f32 0.6931472, %v2404_v16  ;;  %v307_v21 = vmul.f32 -0.12735786, %v295_v50 }
 0x33c   :  { %v297_v9 = vmul.f32 1.442695, %v281_v40  ;;  %v2408_v57 = vpop.eup %2407  ;;  %v3994_v26 = vld [vmem:[#allocation32_spill] sm:$0xff]  ;;  %v3995_v61 = vld [vmem:[#allocation33_spill] sm:$0xff]  ;;  %v285_v53 = vmul.f32 0.6931472, %v2406_v24  ;;  %v768_v30 = vadd.f32 %v3993_v14, %v314_v18  ;;  %v769_v59 = vadd.f32 %v750_v32, %v315_v12 }
 0x33d   :  { %v751_v23 = vsel %vm749_vm12, %v3995_v61, %v3994_v26  ;;  %v3996_v3 = vld [vmem:[#allocation40_spill] sm:$0xff]  ;;  %v3997_v37 = vld [vmem:[#allocation41_spill] sm:$0xff]  ;;  %v2410_v13 = vpop.eup %2409  ;;  %v317_v51 = vadd.f32 %v305_v31, %v85_v46  ;;  %v308_v27 = vmul.f32 -0.12735786, %v296_v42  ;;  %v298_v25 = vmul.f32 1.442695, %v283_v20 }
 0x33e   :  { %v1300_v15 = vsel %vm749_vm12, %v3997_v37, %v3996_v3  ;;  %v309_v35 = vmul.f32 -0.12735786, %v297_v9  ;;  %v3998_v0 = vld [vmem:[#allocation42_spill] sm:$0xff]  ;;  %v3999_v54 = vld [vmem:[#allocation43_spill] sm:$0xff]  ;;  %v770_v49 = vadd.f32 %v3995_v61, %v316_v36  ;;  %v1318_v41 = vadd.f32 %v3997_v37, %v768_v30  ;;  %v4004_v9 = vld [vmem:[#allocation44_spill] sm:$0xff] }
 0x33f   :  { %v1301_v52 = vsel %vm749_vm12, %v3999_v54, %v3998_v0  ;;  %v771_v43 = vadd.f32 %v751_v23, %v317_v51  ;;  %v1319_v47 = vadd.f32 %v1300_v15, %v769_v59  ;;  %v319_v45 = vadd.f32 %v307_v21, %v3795_v4  ;;  %v4000_v40 = vld [vmem:[#allocation34_spill] sm:$0xff]  ;;  %v4001_v16 = vld [vmem:[#allocation35_spill] sm:$0xff]  ;;  %v4008_v37 = vld [vmem:[#allocation36_spill] sm:$0xff] }
 0x340   :  { %v299_v46 = vmul.f32 1.442695, %v285_v53  ;;  %v287_v39 = vmul.f32 0.6931472, %v2410_v13  ;;  %v289_v29 = vmul.f32 0.6931472, %v2408_v57  ;;  %v1320_v60 = vadd.f32 %v3999_v54, %v770_v49 }
 0x341   :  { %v1321_v33 = vadd.f32 %v1301_v52, %v771_v43  ;;  %v320_v56 = vadd.f32 %v308_v27, %v3793_v5  ;;  %v321_v44 = vadd.f32 %v309_v35, %v3791_v10  ;;  %v752_v19 = vsel %vm749_vm12, %v4001_v16, %v4000_v40  ;;  %v4002_v14 = vld [vmem:[#allocation30_spill] sm:$0xff]  ;;  %v4003_v32 = vld [vmem:[#allocation31_spill] sm:$0xff]  ;;  %v4005_v10 = vld [vmem:[#allocation45_spill] sm:$0xff] }
 0x342   :  { %v310_v50 = vmul.f32 -0.12735786, %v298_v25  ;;  %v772_v42 = vadd.f32 %v4001_v16, %v318_v28  ;;  %v311_v5 = vmul.f32 -0.12735786, %v299_v46  ;;  %v1302_v20 = vsel %vm749_vm12, %v4005_v10, %v4004_v9  ;;  %v4006_v23 = vld [vmem:[#allocation46_spill] sm:$0xff]  ;;  %v4007_v53 = vld [vmem:[#allocation47_spill] sm:$0xff] }
 0x343   :  { %v773_v12 = vadd.f32 %v752_v19, %v319_v45  ;;  %v301_v18 = vmul.f32 1.442695, %v289_v29  ;;  %v774_v57 = vadd.f32 %v4003_v32, %v320_v56  ;;  %v93_v26 = vmul.f32 -0.346195, %v81_v34  ;;  %v4009_v15 = vld [vmem:[#allocation37_spill] sm:$0xff]  ;;  %v4012_v56 = vld [vmem:[#allocation38_spill] sm:$0xff] }
 0x344   :  { %v300_v61 = vmul.f32 1.442695, %v287_v39  ;;  %v1303_v28 = vsel %vm749_vm12, %v4007_v53, %v4006_v23  ;;  %v754_v13 = vsel %vm749_vm12, %v4009_v15, %v4008_v37  ;;  %v1322_v30 = vadd.f32 %v4005_v10, %v772_v42 }
 0x345   :  { %v1323_v59 = vadd.f32 %v1302_v20, %v773_v12  ;;  %v322_v36 = vadd.f32 %v310_v50, %v3797_v48  ;;  %v323_v51 = vadd.f32 %v311_v5, %v3799_v1  ;;  %v92_v27 = vmul.f32 -0.346195, %v80_v58  ;;  %v4011_v1 = vld [vmem:[#allocation49_spill] sm:$0xff] }
 0x346   :  { %v1324_v34 = vadd.f32 %v4007_v53, %v774_v57  ;;  %v313_v25 = vmul.f32 -0.12735786, %v301_v18  ;;  %v312_v48 = vmul.f32 -0.12735786, %v300_v61 }
 0x347   :  { %v776_v49 = vadd.f32 %v4009_v15, %v322_v36  ;;  %v777_v43 = vadd.f32 %v754_v13, %v323_v51 }
 0x348   :  { %v325_v19 = vadd.f32 %v313_v25, %v93_v26 }
 0x349   :  { %v1326_v29 = vadd.f32 %v4011_v1, %v776_v49 }
 0x368   :  { %v1716_v62 = vpop.permute.xlu0 %1715 }
 0x369   :  { %v1733_v22 = vadd.f32 %v1716_v62, %v1318_v41  ;;  %v1734_v55 = vadd.f32 %v1716_v62, %v1319_v47  ;;  %v753_v62 = vsel %vm749_vm12, %v4003_v32, %v4002_v14  ;;  %v4010_v41 = vld [vmem:[#allocation48_spill] sm:$0xff] }
 0x36a   :  { %v775_v3 = vadd.f32 %v753_v62, %v321_v44  ;;  %v1304_v58 = vsel %vm749_vm12, %v4011_v1, %v4010_v41  ;;  %v4013_v44 = vld [vmem:[#allocation39_spill] sm:$0xff] }
 0x36b   :  { %v755_v40 = vsel %vm749_vm12, %v4013_v44, %v4012_v56 }
 0x36c   :  { %v3806_v2 = vpop.permute.xlu0 %1719  ;;  %v1325_v52 = vadd.f32 %v1303_v28, %v775_v3 }
 0x36d   :  { %v1718_v7 = vpop.permute.xlu1 %1717  ;;  %v1737_v0 = vadd.f32 %v3806_v2, %v1322_v30  ;;  %v1738_v54 = vadd.f32 %v3806_v2, %v1323_v59 }
 0x36e   :  { %v1735_v24 = vadd.f32 %v1718_v7, %v1320_v60  ;;  %v1736_v4 = vadd.f32 %v1718_v7, %v1321_v33  ;;  %v1327_v60 = vadd.f32 %v1304_v58, %v777_v43  ;;  %v324_v33 = vadd.f32 %v312_v48, %v92_v27 }
 0x37b   :  { %v3801_v8 = vpop.permute.xlu1 %1721 }
 0x37c   :  { %v1739_v45 = vadd.f32 %v3801_v8, %v1324_v34  ;;  %v1740_v46 = vadd.f32 %v3801_v8, %v1325_v52 }
 0x37f   :  { %v3818_v63 = vpop.permute.xlu0 %1723  ;;  %v3822_v17 = vpop.permute.xlu1 %1725 }
 0x380   :  { %v1741_v8 = vadd.f32 %v3818_v63, %v1326_v29  ;;  %v1742_v50 = vadd.f32 %v3818_v63, %v1327_v60 }
 0x384   :  { %v2190_v38 = vpop.permute.xlu0 %2189 }
 0x385   :  { %v2207_v6 = vadd.f32 %v2190_v38, %v1733_v22  ;;  %v2208_v31 = vadd.f32 %v2190_v38, %v1734_v55  ;;  %v2192_v11 = vpop.permute.xlu1 %2191  ;;  %v778_v38 = vadd.f32 %v4013_v44, %v324_v33 }
 0x386   :  { %v2209_v7 = vadd.f32 %v2192_v11, %v1735_v24  ;;  %v2210_v21 = vadd.f32 %v2192_v11, %v1736_v4  ;;  %v4014_v24 = vld [vmem:[#allocation50_spill] sm:$0xff]  ;;  %v4015_v4 = vld [vmem:[#allocation51_spill] sm:$0xff] }
 0x387   :  { %2233 = vrot.lane.b32.xlu1 %v2208_v31, %s2458_s2  ;;  %2231 = vrot.lane.b32.xlu0 %v2207_v6, %s2458_s2  ;;  %v1305_v6 = vsel %vm749_vm12, %v4015_v4, %v4014_v24  ;;  %v779_v31 = vadd.f32 %v755_v40, %v325_v19  ;;  %v1328_v32 = vadd.f32 %v4015_v4, %v778_v38 }
 0x388   :  { %v2194_v35 = vpop.permute.xlu0 %2193 }
 0x389   :  { %v2196_v47 = vpop.permute.xlu1 %2195  ;;  %v2211_v39 = vadd.f32 %v2194_v35, %v1737_v0  ;;  %v2212_v2 = vadd.f32 %v2194_v35, %v1738_v54  ;;  %v1329_v62 = vadd.f32 %v1305_v6, %v779_v31  ;;  %v1743_v5 = vadd.f32 %v3822_v17, %v1328_v32 }
 0x38a   :  { %v2213_v22 = vadd.f32 %v2196_v47, %v1739_v45  ;;  %v2214_v55 = vadd.f32 %v2196_v47, %v1740_v46 }
 0x38b   :  { %2237 = vrot.lane.b32.xlu1 %v2210_v21, %s2458_s2  ;;  %2235 = vrot.lane.b32.xlu0 %v2209_v7, %s2458_s2  ;;  %v1744_v63 = vadd.f32 %v3822_v17, %v1329_v62 }
 0x38e   :  { %v2200_v42 = vpop.permute.xlu1 %2199 }
 0x38f   :  { %2241 = vrot.lane.b32.xlu1 %v2212_v2, %s2458_s2  ;;  %2239 = vrot.lane.b32.xlu0 %v2211_v39, %s2458_s2  ;;  %v2198_v16 = vpop.permute.xlu0 %2197  ;;  %v2217_v9 = vadd.f32 %v2200_v42, %v1743_v5  ;;  %v2218_v10 = vadd.f32 %v2200_v42, %v1744_v63 }
 0x390   :  { %v2215_v11 = vadd.f32 %v2198_v16, %v1741_v8  ;;  %v2216_v14 = vadd.f32 %v2198_v16, %v1742_v50 }
 0x393   :  { %2245 = vrot.lane.b32.xlu1 %v2214_v55, %s2458_s2  ;;  %2243 = vrot.lane.b32.xlu0 %v2213_v22, %s2458_s2 }
 0x397   :  { %2249 = vrot.lane.b32.xlu1 %v2216_v14, %s2458_s2  ;;  %2247 = vrot.lane.b32.xlu0 %v2215_v11, %s2458_s2 }
 0x39b   :  { %2253 = vrot.lane.b32.xlu1 %v2218_v10, %s2458_s2  ;;  %2251 = vrot.lane.b32.xlu0 %v2217_v9, %s2458_s2  ;;  %s2278_s2 = sshll.u32 %s2464_s0, 4  ;;  %s2279_s2 = int_to_ptr.vmem [resolvable:$true] %s2278_s2 }
 0x39c   :  { %s2435_s29 = scalar_lea.vmem %s2279_s2, 512  ;;  %p2440_p1 = scmp.lt.s32.totalorder %s2279_s2, %s2279_s2 }
 0x39d   :  { %p2436_p0 = scmp.ne.s32.totalorder %s2279_s2, %s2435_s29  ;;  %p2441_p2 = scmp.lt.s32.totalorder %s2435_s29, %s2435_s29 }
 0x39f   :  { %p2442_p3 = por %p2441_p2, %p2440_p1 }
 0x3a1   :  { %p2443_p4 = pnand %p2442_p3, %p2436_p0 }
 0x3f9   :  { %v2234_v20 = vpop.permute.xlu1 %2233  ;;  %v2232_v12 = vpop.permute.xlu0 %2231 }
 0x3fa   :  { %v2255_v18 = vsel %vm452_vm1, %v2232_v12, %v2234_v20 }
 0x3fb   :  { %2267 = vst [vmem:[#allocation2 - $0x2] sm:$0xfc] %v2255_v18 }
 0x3fd   :  { %v2238_v7 = vpop.permute.xlu1 %2237  ;;  %v2236_v21 = vpop.permute.xlu0 %2235 }
 0x3fe   :  { %v2256_v57 = vsel %vm452_vm1, %v2236_v21, %v2238_v7 }
 0x3ff   :  { %2268 = vst [vmem:[#allocation2 + $0x6] sm:$0xff] %v2256_v57 }
 0x401   :  { %v2242_v17 = vpop.permute.xlu1 %2241  ;;  %v2240_v26 = vpop.permute.xlu0 %2239 }
 0x402   :  { %v2257_v61 = vsel %vm452_vm1, %v2240_v26, %v2242_v17 }
 0x403   :  { %2269 = vst [vmem:[#allocation2 + $0xe] sm:$0x3] %v2257_v61 }
 0x405   :  { %v2246_v23 = vpop.permute.xlu1 %2245  ;;  %v2244_v53 = vpop.permute.xlu0 %2243 }
 0x406   :  { %v2258_v28 = vsel %vm452_vm1, %v2244_v53, %v2246_v23 }
 0x407   :  { %2270 = vst [vmem:[#allocation2 + $0xe] sm:$0xfc] %v2258_v28 }
 0x409   :  { %v2250_v3 = vpop.permute.xlu1 %2249  ;;  %v2248_v37 = vpop.permute.xlu0 %2247 }
 0x40a   :  { %v2259_v15 = vsel %vm452_vm1, %v2248_v37, %v2250_v3 }
 0x40b   :  { %2271 = vst [vmem:[#allocation2 + $0x16] sm:$0xff] %v2259_v15 }
 0x40d   :  { %v2254_v13 = vpop.permute.xlu1 %2253  ;;  %v2252_v30 = vpop.permute.xlu0 %2251 }
 0x40e   :  { %v2260_v59 = vsel %vm452_vm1, %v2252_v30, %v2254_v13 }
 0x40f   :  { %2272 = vst [vmem:[#allocation2 + $0x1e] sm:$0x3] %v2260_v59 }
 0x410   :  { %2446 = shalt.err (!%p2443_p4)
}
 0x411   :  { %s2465_s14 = smov 128   ;;  %s2466_s30 = smov 8  }
 0x412   :  { %2284 = dma.vmem_to_hbm [thread:$0]  %s2279_s2, 512, %s3892_s1, [#allocation3], %s2465_s14, %s2465_s14, %s2466_s30  }
 0x413   :  { %2455 = dma.done.wait [#allocation3], 512  }
 0x414   :  { %2456 = vsyncadd [#allocation3], 4294966784 }
 0x415   :  { %2288 = vsyncpa [#allocation3], 1 }

</bundles_post_ra>
